<compile_context>
chip_gen: v7x
topology: tpu7x:2x2x1
jax: 0.10.0
libtpu: 0.0.40
codegen_flags: <defaults>
</compile_context>

<pallas_src>
import functools

import jax
import jax.numpy as jnp
from jax.experimental import pallas as pl
from jax.experimental.pallas import tpu as pltpu


# ----------------------------------------------------------------------------
# VMEM budget (generation-aware)
# ----------------------------------------------------------------------------
@functools.lru_cache(maxsize=1)
def _vmem_budget():
    try:
        cap = int(pltpu.get_tpu_info().vmem_capacity_bytes)
    except Exception:
        cap = 64 * 1024 * 1024
    if cap >= 128 * 1024 * 1024:          # v5e / v6e: 128 MiB physical
        return 48 * 1024 * 1024, 100 * 1024 * 1024
    return 22 * 1024 * 1024, 44 * 1024 * 1024   # v7x: 64 MiB per TC


def _round_up(x, m):
    return ((x + m - 1) // m) * m


def _largest_divisor_leq(n, cap):
    cap = int(max(1, min(n, cap)))
    for d in range(cap, 0, -1):
        if n % d == 0:
            return d
    return 1


def _choose_tiles(M, K, Np, out_bytes, budget):
    """Returns (tm, tk, single_k)."""
    def bytes_single(tm):
        return (2 * tm * K * 2 + 2 * K * Np * 2 + 2 * Np * 4
                + 2 * tm * Np * out_bytes + 4 * Np * 4)

    cands = []
    if M <= 4096:
        cands.append(M)
    cands += [c for c in (2048, 1024, 512, 256, 128, 64, 32, 16, 8)
              if c < M and M % c == 0]
    if not cands:
        cands = [_largest_divisor_leq(M, 1024)]

    # Path A: full weight resident, no K grid axis (the norm at ngf<=64).
    for tm in cands:
        if bytes_single(tm) <= budget:
            return tm, K, True

    # Path B: tile K with an f32 accumulator (rare: very large K*Np).
    tm = cands[-1]

    def bytes_tiled(tm_, tk_):
        return (2 * tm_ * tk_ * 2 + 2 * tk_ * Np * 2 + 2 * Np * 4
                + tm_ * Np * 4 + 2 * tm_ * Np * out_bytes + 4 * Np * 4)

    fixed = tm * Np * 4 + 2 * tm * Np * out_bytes + 6 * Np * 4
    cap_k = max(1, (budget - fixed) // max(1, 2 * tm * 2 + 2 * Np * 2))
    tk = _largest_divisor_leq(K, cap_k)
    while bytes_tiled(tm, tk) > budget and tk > 1:
        tk = _largest_divisor_leq(K, tk - 1)
    return tm, tk, False


# ----------------------------------------------------------------------------
# Fused matmul kernels:  out = post_act( pre_act(A) @ B + bias )
# ----------------------------------------------------------------------------
def _pre(a, pre_act):
    if pre_act == "leaky_relu":
        return jnp.where(a >= 0, a, a * 0.2)
    if pre_act == "relu":
        return jnp.maximum(a, 0)
    return a


def _post(r, post_act):
    if post_act == "tanh":
        return jnp.tanh(r)
    if post_act == "relu":
        return jnp.maximum(r, 0.0)
    if post_act == "leaky_relu":
        return jnp.where(r >= 0, r, 0.2 * r)
    return r


def _mm1_kernel(a_ref, b_ref, bias_ref, o_ref, *, pre_act, post_act):
    a = _pre(a_ref[...], pre_act)
    r = jnp.dot(a, b_ref[...], preferred_element_type=jnp.float32) + bias_ref[...]
    o_ref[...] = _post(r, post_act).astype(o_ref.dtype)


def _mm1_stats_kernel(a_ref, b_ref, bias_ref, o_ref, st_ref, *, pre_act, post_act):
    a = _pre(a_ref[...], pre_act)
    r = jnp.dot(a, b_ref[...], preferred_element_type=jnp.float32) + bias_ref[...]
    s0 = jnp.sum(r, axis=0, keepdims=True)
    s1 = jnp.sum(r * r, axis=0, keepdims=True)
    st_ref[0] = jnp.concatenate([s0, s1], axis=0)
    o_ref[...] = _post(r, post_act).astype(o_ref.dtype)


def _mmk_kernel(a_ref, b_ref, bias_ref, o_ref, acc_ref, *, pre_act, post_act):
    k = pl.program_id(1)

    @pl.when(k == 0)
    def _():
        acc_ref[...] = jnp.zeros_like(acc_ref)

    a = _pre(a_ref[...], pre_act)
    acc_ref[...] += jnp.dot(a, b_ref[...], preferred_element_type=jnp.float32)

    @pl.when(k == pl.num_programs(1) - 1)
    def _():
        r = acc_ref[...] + bias_ref[...]
        o_ref[...] = _post(r, post_act).astype(o_ref.dtype)


def _mmk_stats_kernel(a_ref, b_ref, bias_ref, o_ref, st_ref, acc_ref, *,
                      pre_act, post_act):
    k = pl.program_id(1)

    @pl.when(k == 0)
    def _():
        acc_ref[...] = jnp.zeros_like(acc_ref)

    a = _pre(a_ref[...], pre_act)
    acc_ref[...] += jnp.dot(a, b_ref[...], preferred_element_type=jnp.float32)

    @pl.when(k == pl.num_programs(1) - 1)
    def _():
        r = acc_ref[...] + bias_ref[...]
        s0 = jnp.sum(r, axis=0, keepdims=True)
        s1 = jnp.sum(r * r, axis=0, keepdims=True)
        st_ref[0] = jnp.concatenate([s0, s1], axis=0)
        o_ref[...] = _post(r, post_act).astype(o_ref.dtype)


def fused_matmul(a, b, bias, *, pre_act=None, post_act=None,
                 out_dtype=jnp.bfloat16, want_stats=False):
    """(M,K)@(K,Np)+bias with fused pre/post activations; Np % 128 == 0.

    If want_stats, additionally returns per-M-tile channel (sum, sum_sq),
    shape (M//tm, 2, Np) f32 (for fused BatchNorm statistics)."""
    M, K = a.shape
    Kb, Np = b.shape
    assert Kb == K and Np % 128 == 0
    out_bytes = jnp.dtype(out_dtype).itemsize
    budget, vmem_limit = _vmem_budget()
    tm, tk, single_k = _choose_tiles(M, K, Np, out_bytes, budget)
    n_m = M // tm
    bias2 = bias.reshape(1, Np).astype(jnp.float32)

    out_shapes = [jax.ShapeDtypeStruct((M, Np), out_dtype)]
    if single_k:
        grid = (n_m,)
        sem = ("parallel",)
        in_specs = [pl.BlockSpec((tm, K), lambda i: (i, 0)),
                    pl.BlockSpec((K, Np), lambda i: (0, 0)),
                    pl.BlockSpec((1, Np), lambda i: (0, 0))]
        out_specs = [pl.BlockSpec((tm, Np), lambda i: (i, 0))]
        scratch = []
        if want_stats:
            out_shapes.append(jax.ShapeDtypeStruct((n_m, 2, Np), jnp.float32))
            out_specs.append(pl.BlockSpec((1, 2, Np), lambda i: (i, 0, 0)))
            kern = functools.partial(_mm1_stats_kernel,
                                     pre_act=pre_act, post_act=post_act)
        else:
            kern = functools.partial(_mm1_kernel,
                                     pre_act=pre_act, post_act=post_act)
    else:
        n_k = K // tk
        grid = (n_m, n_k)
        sem = ("parallel", "arbitrary")
        in_specs = [pl.BlockSpec((tm, tk), lambda i, k: (i, k)),
                    pl.BlockSpec((tk, Np), lambda i, k: (k, 0)),
                    pl.BlockSpec((1, Np), lambda i, k: (0, 0))]
        out_specs = [pl.BlockSpec((tm, Np), lambda i, k: (i, 0))]
        scratch = [pltpu.VMEM((tm, Np), jnp.float32)]
        if want_stats:
            out_shapes.append(jax.ShapeDtypeStruct((n_m, 2, Np), jnp.float32))
            out_specs.append(pl.BlockSpec((1, 2, Np), lambda i, k: (i, 0, 0)))
            kern = functools.partial(_mmk_stats_kernel,
                                     pre_act=pre_act, post_act=post_act)
        else:
            kern = functools.partial(_mmk_kernel,
                                     pre_act=pre_act, post_act=post_act)

    return pl.pallas_call(
        kern,
        out_shape=tuple(out_shapes) if want_stats else out_shapes[0],
        grid=grid,
        in_specs=in_specs,
        out_specs=tuple(out_specs) if want_stats else out_specs[0],
        scratch_shapes=scratch,
        compiler_params=pltpu.CompilerParams(
            dimension_semantics=sem,
            vmem_limit_bytes=vmem_limit),
    )(a, b, bias2)


# ----------------------------------------------------------------------------
# BatchNorm (training-mode batch statistics) from fused kernel stats
# ----------------------------------------------------------------------------
def apply_bn(x, s, ss, count, bn, eps=1e-5):
    """x: NHWC bf16; s/ss: per-channel sum / sum-of-squares (f32); count: int."""
    mean = s / count
    var = jnp.maximum(ss / count - mean * mean, 0.0)     # biased (training mode)
    scale = bn["g"] * jax.lax.rsqrt(var + eps)
    shift = bn["b"] - mean * scale
    # C-sized affine; XLA fuses it into the consumer's im2col gather.
    return (x.astype(jnp.float32) * scale + shift).astype(jnp.bfloat16)


# ----------------------------------------------------------------------------
# Conv2d(k=4,s=2,p=1) and ConvTranspose2d(k=4,s=2,p=1) via the fused matmul
# ----------------------------------------------------------------------------
def conv_down(x, cp, *, pre_act=None, post_act=None,
              out_dtype=jnp.bfloat16, want_stats=False):
    """x: NHWC. cp["W"]: (16*Cin, Cout) bf16 packed at init; cp["b"]: (Cout,)."""
    N, H, W, Cin = x.shape
    Wm, bias = cp["W"], cp["b"]
    Cout = Wm.shape[1]
    Np = _round_up(Cout, 128)
    if Np != Cout:                         # lane-dense output
        Wm = jnp.pad(Wm, ((0, 0), (0, Np - Cout)))
        bias = jnp.pad(bias, (0, Np - Cout))
    OH, OW = H // 2, W // 2
    xp = jnp.pad(x.astype(jnp.bfloat16), ((0, 0), (1, 1), (1, 1), (0, 0)))
    cols = [xp[:, kh:kh + 2 * OH:2, kw:kw + 2 * OW:2, :]
            for kh in range(4) for kw in range(4)]
    A = jnp.stack(cols, axis=3).reshape(N * OH * OW, 16 * Cin)

    res = fused_matmul(A, Wm, bias, pre_act=pre_act, post_act=post_act,
                       out_dtype=out_dtype, want_stats=want_stats)
    if want_stats:
        out, st = res
        out = out[:, :Cout].reshape(N, OH, OW, Cout)
        st = jnp.sum(st, axis=0)                      # (2, Np)
        return out, (st[0, :Cout], st[1, :Cout], N * OH * OW)
    return res[:, :Cout].reshape(N, OH, OW, Cout)


def conv_up(x, cp, *, pre_act=None, post_act=None,
            out_dtype=jnp.bfloat16, want_stats=False):
    """ConvTranspose2d via 4 output-parity phases (one lane-dense matmul).

    x: NHWC. cp["W"]: (9*Cin, 4*Cout) bf16 packed at init (phase-major columns);
    cp["b"]: (4*Cout,) f32."""
    N, H, W, Cin = x.shape
    Wall, bias4 = cp["W"], cp["b"]
    Cout = Wall.shape[1] // 4
    Cp = _round_up(Cout, 32)               # 4*Cp is a multiple of 128
    if Cp != Cout:
        Wall = jnp.pad(Wall.reshape(9 * Cin, 4, Cout),
                       ((0, 0), (0, 0), (0, Cp - Cout))).reshape(9 * Cin, 4 * Cp)
        bias4 = jnp.pad(bias4.reshape(4, Cout),
                        ((0, 0), (0, Cp - Cout))).reshape(4 * Cp)
    xp = jnp.pad(x.astype(jnp.bfloat16), ((0, 0), (1, 1), (1, 1), (0, 0)))
    taps = [xp[:, u:u + H, v:v + W, :] for u in range(3) for v in range(3)]
    A = jnp.stack(taps, axis=3).reshape(N * H * W, 9 * Cin)

    res = fused_matmul(A, Wall, bias4, pre_act=pre_act, post_act=post_act,
                       out_dtype=out_dtype, want_stats=want_stats)

    def unpack(o):
        o = o.reshape(N, H, W, 2, 2, Cp)[..., :Cout]
        return jnp.transpose(o, (0, 1, 3, 2, 4, 5)).reshape(N, 2 * H, 2 * W, Cout)

    if want_stats:
        out, st = res
        st = jnp.sum(st, axis=0).reshape(2, 4, Cp)[:, :, :Cout]
        s = jnp.sum(st[0], axis=0)
        ss = jnp.sum(st[1], axis=0)
        return unpack(out), (s, ss, N * H * W * 4)
    return unpack(res)


# ----------------------------------------------------------------------------
# Weight packing (done ONCE at init, outside the jitted forward)
# ----------------------------------------------------------------------------
def _pack_conv_down(w, b):
    cout, cin = w.shape[0], w.shape[1]
    Wm = jnp.transpose(w, (2, 3, 1, 0)).reshape(16 * cin, cout)
    return {"W": Wm.astype(jnp.bfloat16), "b": b.astype(jnp.float32)}


def _pack_conv_up(w, b):
    """ out[n,2i+a,2j+bb] = sum_{dh,dw} x[n,i+a+dh-1,j+bb+dw-1]
                                        @ w[:,:,3+a-2(a+dh),3+bb-2(bb+dw)] """
    cin, cout = w.shape[0], w.shape[1]
    W3 = jnp.zeros((3, 3, cin, 2, 2, cout), jnp.float32)
    for a in range(2):
        for bb in range(2):
            for dh in range(2):
                for dw in range(2):
                    u, v = a + dh, bb + dw
                    W3 = W3.at[u, v, :, a, bb, :].set(
                        w[:, :, 3 + a - 2 * u, 3 + bb - 2 * v])
    Wall = W3.reshape(9 * cin, 4 * cout)
    b4 = jnp.tile(b, 4)
    return {"W": Wall.astype(jnp.bfloat16), "b": b4.astype(jnp.float32)}


# ----------------------------------------------------------------------------
# Parameter init (deterministic, synthetic) mirroring UnetGenerator.__init__
# norm_layer = BatchNorm2d  =>  use_bias = False for all convs except the
# outermost ConvTranspose2d.  Block kind is encoded by dict structure only
# (no strings in the pytree, so jax.jit accepts it).
# ----------------------------------------------------------------------------
def init_unet(key, input_nc, output_nc, num_downs, ngf):
    keys = iter(jax.random.split(key, 8 * (num_downs + 2)))

    def conv(cout, cin, use_bias):
        k1, k2 = jax.random.split(next(keys))
        w = jax.random.normal(k1, (cout, cin, 4, 4), jnp.float32) * 0.05
        b = (jax.random.normal(k2, (cout,), jnp.float32) * 0.05 if use_bias
             else jnp.zeros((cout,), jnp.float32))
        return _pack_conv_down(w, b)

    def convT(cin, cout, use_bias):
        k1, k2 = jax.random.split(next(keys))
        w = jax.random.normal(k1, (cin, cout, 4, 4), jnp.float32) * 0.05
        b = (jax.random.normal(k2, (cout,), jnp.float32) * 0.05 if use_bias
             else jnp.zeros((cout,), jnp.float32))
        return _pack_conv_up(w, b)

    def bn(c):
        k1, k2 = jax.random.split(next(keys))
        return {"g": 1.0 + 0.1 * jax.random.normal(k1, (c,), jnp.float32),
                "b": 0.1 * jax.random.normal(k2, (c,), jnp.float32)}

    # innermost: no "sub", no "downnorm"
    block = {"downconv": conv(ngf * 8, ngf * 8, False),
             "upconv": convT(ngf * 8, ngf * 8, False),
             "upnorm": bn(ngf * 8)}

    def middle(outer, inner, sub):
        return {"downconv": conv(inner, outer, False),
                "downnorm": bn(inner),
                "upconv": convT(inner * 2, outer, False),
                "upnorm": bn(outer),
                "sub": sub}

    for _ in range(num_downs - 5):
        block = middle(ngf * 8, ngf * 8, block)
    block = middle(ngf * 4, ngf * 8, block)
    block = middle(ngf * 2, ngf * 4, block)
    block = middle(ngf, ngf * 2, block)

    # outermost: has "sub" but no "downnorm"/"upnorm"; upconv has bias.
    block = {"downconv": conv(ngf, input_nc, False),
             "upconv": convT(ngf * 2, output_nc, True),
             "sub": block}
    return block


# ----------------------------------------------------------------------------
# Forward pass (mirrors UnetSkipConnectionBlock.forward, activations fused)
# ----------------------------------------------------------------------------
def block_forward(p, x):
    if "sub" not in p:
        # innermost: [LeakyReLU, downconv] -> [ReLU, upconvT, BN]; cat([x, h])
        h = conv_down(x, p["downconv"], pre_act="leaky_relu")
        h, (s, ss, cnt) = conv_up(h, p["upconv"], pre_act="relu",
                                  want_stats=True)
        h = apply_bn(h, s, ss, cnt, p["upnorm"])
        return jnp.concatenate([x.astype(h.dtype), h], axis=-1)

    if "downnorm" not in p:
        # outermost: [downconv] -> sub -> [ReLU, upconvT, Tanh]
        h = conv_down(x, p["downconv"], pre_act=None)
        h = block_forward(p["sub"], h)
        return conv_up(h, p["upconv"], pre_act="relu", post_act="tanh",
                       out_dtype=jnp.float32)

    # middle: [LeakyReLU, downconv, BN] -> sub -> [ReLU, upconvT, BN]; cat
    h, (s, ss, cnt) = conv_down(x, p["downconv"], pre_act="leaky_relu",
                                want_stats=True)
    h = apply_bn(h, s, ss, cnt, p["downnorm"])
    h = block_forward(p["sub"], h)
    h, (s, ss, cnt) = conv_up(h, p["upconv"], pre_act="relu", want_stats=True)
    h = apply_bn(h, s, ss, cnt, p["upnorm"])
    return jnp.concatenate([x.astype(h.dtype), h], axis=-1)


def unet_generator(params, x_nchw):
    """x_nchw: (N, C, H, W) like PyTorch; returns (N, output_nc, H, W) f32."""
    x = jnp.transpose(x_nchw, (0, 2, 3, 1))   # NCHW -> NHWC
    y = block_forward(params, x)
    return jnp.transpose(y, (0, 3, 1, 2))     # NHWC -> NCHW


# ----------------------------------------------------------------------------
if __name__ == "__main__":
    key = jax.random.PRNGKey(0)
    kx, kp = jax.random.split(key)

    # Small config: input_nc=4, output_nc=3, num_downs=5, ngf=8, 32x32 spatial
    # (num_downs=5 requires spatial >= 2**5).
    N, C, H, W = 2, 4, 32, 32
    INPUT_NC, OUTPUT_NC, NUM_DOWNS, NGF = 4, 3, 5, 8

    x = jax.random.normal(kx, (N, C, H, W), jnp.float32)
    params = init_unet(kp, INPUT_NC, OUTPUT_NC, NUM_DOWNS, NGF)

    fwd = jax.jit(unet_generator)
    y = fwd(params, x)
    jax.block_until_ready(y)

    assert y.shape == (N, OUTPUT_NC, H, W), y.shape
    assert bool(jnp.all(jnp.isfinite(y)))
    print("KERNEL_OK")
</pallas_src>

<mosaic_0001>
module attributes {stable_mosaic.version = 11 : i64} {
  func.func @_mm1_kernel(%arg0: i32, %arg1: memref<512x64xbf16, #tpu.memory_space<vmem>>, %arg2: memref<64x128xbf16, #tpu.memory_space<vmem>>, %arg3: memref<1x128xf32, #tpu.memory_space<vmem>>, %arg4: memref<512x128xbf16, #tpu.memory_space<vmem>>) attributes {dimension_semantics = [#tpu.dimension_semantics<parallel>], iteration_bounds = array<i64: 1>, scalar_prefetch = 0 : i64, scratch_operands = 0 : i64, tpu.core_type = #tpu.core_type<tc>, window_params = [{transform_indices = @transform_0, window_bounds = array<i64: 512, 64>}, {pipeline_mode = #tpu.pipeline_mode<synchronous>, transform_indices = @transform_1, window_bounds = array<i64: 64, 128>}, {pipeline_mode = #tpu.pipeline_mode<synchronous>, transform_indices = @transform_2, window_bounds = array<i64: 1, 128>}, {transform_indices = @transform_3, window_bounds = array<i64: 512, 128>}]} {
    %c0 = arith.constant 0 : index
    %c0_0 = arith.constant 0 : index
    %0 = vector.load %arg1[%c0, %c0_0] : memref<512x64xbf16, #tpu.memory_space<vmem>>, vector<512x64xbf16>
    %c0_1 = arith.constant 0 : index
    %c0_2 = arith.constant 0 : index
    %1 = vector.load %arg2[%c0_1, %c0_2] : memref<64x128xbf16, #tpu.memory_space<vmem>>, vector<64x128xbf16>
    %cst = arith.constant dense<0.000000e+00> : vector<512x128xf32>
    %2 = tpu.matmul %0, %1, %cst {dimension_numbers = #tpu.dot_dimension_numbers<[1], [0], [0], [1], [0, 0, 1, 1], [], []>} : vector<512x64xbf16>, vector<64x128xbf16>, vector<512x128xf32> -> vector<512x128xf32>
    %c0_3 = arith.constant 0 : index
    %c0_4 = arith.constant 0 : index
    %3 = vector.load %arg3[%c0_3, %c0_4] : memref<1x128xf32, #tpu.memory_space<vmem>>, vector<1x128xf32>
    %4 = vector.broadcast %3 : vector<1x128xf32> to vector<512x128xf32>
    %5 = arith.addf %2, %4 : vector<512x128xf32>
    %6 = arith.truncf %5 : vector<512x128xf32> to vector<512x128xbf16>
    %c0_5 = arith.constant 0 : index
    %c0_6 = arith.constant 0 : index
    %7 = vector.load %arg4[%c0_5, %c0_6] : memref<512x128xbf16, #tpu.memory_space<vmem>>, vector<512x128xbf16>
    tpu.vector_store %arg4[%c0_5, %c0_6], %6 {strides = array<i32>} : memref<512x128xbf16, #tpu.memory_space<vmem>>, vector<512x128xbf16>,
    return
  }
  func.func @transform_0(%arg0: i32) -> (i32, i32) {
    %c0_i32 = arith.constant 0 : i32
    %c0_i32_0 = arith.constant 0 : i32
    return %arg0, %c0_i32 : i32, i32
  }
  func.func @transform_1(%arg0: i32) -> (i32, i32) {
    %c0_i32 = arith.constant 0 : i32
    %c0_i32_0 = arith.constant 0 : i32
    %c0_i32_1 = arith.constant 0 : i32
    return %c0_i32, %c0_i32_0 : i32, i32
  }
  func.func @transform_2(%arg0: i32) -> (i32, i32) {
    %c0_i32 = arith.constant 0 : i32
    %c0_i32_0 = arith.constant 0 : i32
    %c0_i32_1 = arith.constant 0 : i32
    return %c0_i32, %c0_i32_0 : i32, i32
  }
  func.func @transform_3(%arg0: i32) -> (i32, i32) {
    %c0_i32 = arith.constant 0 : i32
    %c0_i32_0 = arith.constant 0 : i32
    return %arg0, %c0_i32 : i32, i32
  }
}

module attributes {stable_mosaic.version = 11 : i64} {
  func.func @_mm1_stats_kernel(%arg0: i32, %arg1: memref<128x128xbf16, #tpu.memory_space<vmem>>, %arg2: memref<128x128xbf16, #tpu.memory_space<vmem>>, %arg3: memref<1x128xf32, #tpu.memory_space<vmem>>, %arg4: memref<128x128xbf16, #tpu.memory_space<vmem>>, %arg5: memref<1x2x128xf32, #tpu.memory_space<vmem>>) attributes {dimension_semantics = [#tpu.dimension_semantics<parallel>], iteration_bounds = array<i64: 1>, scalar_prefetch = 0 : i64, scratch_operands = 0 : i64, tpu.core_type = #tpu.core_type<tc>, window_params = [{transform_indices = @transform_0, window_bounds = array<i64: 128, 128>}, {pipeline_mode = #tpu.pipeline_mode<synchronous>, transform_indices = @transform_1, window_bounds = array<i64: 128, 128>}, {pipeline_mode = #tpu.pipeline_mode<synchronous>, transform_indices = @transform_2, window_bounds = array<i64: 1, 128>}, {transform_indices = @transform_3, window_bounds = array<i64: 128, 128>}, {transform_indices = @transform_4, window_bounds = array<i64: 1, 2, 128>}]} {
    %c0 = arith.constant 0 : index
    %c0_0 = arith.constant 0 : index
    %0 = vector.load %arg1[%c0, %c0_0] : memref<128x128xbf16, #tpu.memory_space<vmem>>, vector<128x128xbf16>
    %cst = arith.constant 0.000000e+00 : bf16
    %1 = vector.broadcast %cst : bf16 to vector<128x128xbf16>
    %2 = arith.cmpf oge, %0, %1 : vector<128x128xbf16>
    %cst_1 = arith.constant 2.001950e-01 : bf16
    %3 = vector.broadcast %cst_1 : bf16 to vector<128x128xbf16>
    %4 = arith.mulf %0, %3 : vector<128x128xbf16>
    %5 = arith.select %2, %0, %4 : vector<128x128xi1>, vector<128x128xbf16>
    %c0_2 = arith.constant 0 : index
    %c0_3 = arith.constant 0 : index
    %6 = vector.load %arg2[%c0_2, %c0_3] : memref<128x128xbf16, #tpu.memory_space<vmem>>, vector<128x128xbf16>
    %cst_4 = arith.constant dense<0.000000e+00> : vector<128x128xf32>
    %7 = tpu.matmul %5, %6, %cst_4 {dimension_numbers = #tpu.dot_dimension_numbers<[1], [0], [0], [1], [0, 0, 1, 1], [], []>} : vector<128x128xbf16>, vector<128x128xbf16>, vector<128x128xf32> -> vector<128x128xf32>
    %c0_5 = arith.constant 0 : index
    %c0_6 = arith.constant 0 : index
    %8 = vector.load %arg3[%c0_5, %c0_6] : memref<1x128xf32, #tpu.memory_space<vmem>>, vector<1x128xf32>
    %9 = vector.broadcast %8 : vector<1x128xf32> to vector<128x128xf32>
    %10 = arith.addf %7, %9 : vector<128x128xf32>
    %cst_7 = arith.constant dense<0.000000e+00> : vector<128xf32>
    %11 = vector.multi_reduction <add>, %10, %cst_7 [0] : vector<128x128xf32> to vector<128xf32>
    %12 = vector.shape_cast %11 : vector<128xf32> to vector<1x128xf32>
    %13 = arith.mulf %10, %10 : vector<128x128xf32>
    %cst_8 = arith.constant dense<0.000000e+00> : vector<128xf32>
    %14 = vector.multi_reduction <add>, %13, %cst_8 [0] : vector<128x128xf32> to vector<128xf32>
    %15 = vector.shape_cast %14 : vector<128xf32> to vector<1x128xf32>
    %16 = tpu.concatenate %12, %15 in 0 : vector<1x128xf32>, vector<1x128xf32> -> vector<2x128xf32>
    %c0_9 = arith.constant 0 : index
    %c0_10 = arith.constant 0 : index
    %c0_11 = arith.constant 0 : index
    %17 = vector.load %arg5[%c0_9, %c0_10, %c0_11] : memref<1x2x128xf32, #tpu.memory_space<vmem>>, vector<1x2x128xf32>
    %18 = vector.shape_cast %17 : vector<1x2x128xf32> to vector<2x128xf32>
    %19 = vector.shape_cast %16 : vector<2x128xf32> to vector<1x2x128xf32>
    tpu.vector_store %arg5[%c0_9, %c0_10, %c0_11], %19 {strides = array<i32>} : memref<1x2x128xf32, #tpu.memory_space<vmem>>, vector<1x2x128xf32>,
    %20 = arith.truncf %10 : vector<128x128xf32> to vector<128x128xbf16>
    %c0_12 = arith.constant 0 : index
    %c0_13 = arith.constant 0 : index
    %21 = vector.load %arg4[%c0_12, %c0_13] : memref<128x128xbf16, #tpu.memory_space<vmem>>, vector<128x128xbf16>
    tpu.vector_store %arg4[%c0_12, %c0_13], %20 {strides = array<i32>} : memref<128x128xbf16, #tpu.memory_space<vmem>>, vector<128x128xbf16>,
    return
  }
  func.func @transform_0(%arg0: i32) -> (i32, i32) {
    %c0_i32 = arith.constant 0 : i32
    %c0_i32_0 = arith.constant 0 : i32
    return %arg0, %c0_i32 : i32, i32
  }
  func.func @transform_1(%arg0: i32) -> (i32, i32) {
    %c0_i32 = arith.constant 0 : i32
    %c0_i32_0 = arith.constant 0 : i32
    %c0_i32_1 = arith.constant 0 : i32
    return %c0_i32, %c0_i32_0 : i32, i32
  }
  func.func @transform_2(%arg0: i32) -> (i32, i32) {
    %c0_i32 = arith.constant 0 : i32
    %c0_i32_0 = arith.constant 0 : i32
    %c0_i32_1 = arith.constant 0 : i32
    return %c0_i32, %c0_i32_0 : i32, i32
  }
  func.func @transform_3(%arg0: i32) -> (i32, i32) {
    %c0_i32 = arith.constant 0 : i32
    %c0_i32_0 = arith.constant 0 : i32
    return %arg0, %c0_i32 : i32, i32
  }
  func.func @transform_4(%arg0: i32) -> (i32, i32, i32) {
    %c0_i32 = arith.constant 0 : i32
    %c0_i32_0 = arith.constant 0 : i32
    %c0_i32_1 = arith.constant 0 : i32
    return %arg0, %c0_i32, %c0_i32_0 : i32, i32, i32
  }
}

module attributes {stable_mosaic.version = 11 : i64} {
  func.func @_mm1_stats_kernel(%arg0: i32, %arg1: memref<32x256xbf16, #tpu.memory_space<vmem>>, %arg2: memref<256x128xbf16, #tpu.memory_space<vmem>>, %arg3: memref<1x128xf32, #tpu.memory_space<vmem>>, %arg4: memref<32x128xbf16, #tpu.memory_space<vmem>>, %arg5: memref<1x2x128xf32, #tpu.memory_space<vmem>>) attributes {dimension_semantics = [#tpu.dimension_semantics<parallel>], iteration_bounds = array<i64: 1>, scalar_prefetch = 0 : i64, scratch_operands = 0 : i64, tpu.core_type = #tpu.core_type<tc>, window_params = [{transform_indices = @transform_0, window_bounds = array<i64: 32, 256>}, {pipeline_mode = #tpu.pipeline_mode<synchronous>, transform_indices = @transform_1, window_bounds = array<i64: 256, 128>}, {pipeline_mode = #tpu.pipeline_mode<synchronous>, transform_indices = @transform_2, window_bounds = array<i64: 1, 128>}, {transform_indices = @transform_3, window_bounds = array<i64: 32, 128>}, {transform_indices = @transform_4, window_bounds = array<i64: 1, 2, 128>}]} {
    %c0 = arith.constant 0 : index
    %c0_0 = arith.constant 0 : index
    %0 = vector.load %arg1[%c0, %c0_0] : memref<32x256xbf16, #tpu.memory_space<vmem>>, vector<32x256xbf16>
    %cst = arith.constant 0.000000e+00 : bf16
    %1 = vector.broadcast %cst : bf16 to vector<32x256xbf16>
    %2 = arith.cmpf oge, %0, %1 : vector<32x256xbf16>
    %cst_1 = arith.constant 2.001950e-01 : bf16
    %3 = vector.broadcast %cst_1 : bf16 to vector<32x256xbf16>
    %4 = arith.mulf %0, %3 : vector<32x256xbf16>
    %5 = arith.select %2, %0, %4 : vector<32x256xi1>, vector<32x256xbf16>
    %c0_2 = arith.constant 0 : index
    %c0_3 = arith.constant 0 : index
    %6 = vector.load %arg2[%c0_2, %c0_3] : memref<256x128xbf16, #tpu.memory_space<vmem>>, vector<256x128xbf16>
    %cst_4 = arith.constant dense<0.000000e+00> : vector<32x128xf32>
    %7 = tpu.matmul %5, %6, %cst_4 {dimension_numbers = #tpu.dot_dimension_numbers<[1], [0], [0], [1], [0, 0, 1, 1], [], []>} : vector<32x256xbf16>, vector<256x128xbf16>, vector<32x128xf32> -> vector<32x128xf32>
    %c0_5 = arith.constant 0 : index
    %c0_6 = arith.constant 0 : index
    %8 = vector.load %arg3[%c0_5, %c0_6] : memref<1x128xf32, #tpu.memory_space<vmem>>, vector<1x128xf32>
    %9 = vector.broadcast %8 : vector<1x128xf32> to vector<32x128xf32>
    %10 = arith.addf %7, %9 : vector<32x128xf32>
    %cst_7 = arith.constant dense<0.000000e+00> : vector<128xf32>
    %11 = vector.multi_reduction <add>, %10, %cst_7 [0] : vector<32x128xf32> to vector<128xf32>
    %12 = vector.shape_cast %11 : vector<128xf32> to vector<1x128xf32>
    %13 = arith.mulf %10, %10 : vector<32x128xf32>
    %cst_8 = arith.constant dense<0.000000e+00> : vector<128xf32>
    %14 = vector.multi_reduction <add>, %13, %cst_8 [0] : vector<32x128xf32> to vector<128xf32>
    %15 = vector.shape_cast %14 : vector<128xf32> to vector<1x128xf32>
    %16 = tpu.concatenate %12, %15 in 0 : vector<1x128xf32>, vector<1x128xf32> -> vector<2x128xf32>
    %c0_9 = arith.constant 0 : index
    %c0_10 = arith.constant 0 : index
    %c0_11 = arith.constant 0 : index
    %17 = vector.load %arg5[%c0_9, %c0_10, %c0_11] : memref<1x2x128xf32, #tpu.memory_space<vmem>>, vector<1x2x128xf32>
    %18 = vector.shape_cast %17 : vector<1x2x128xf32> to vector<2x128xf32>
    %19 = vector.shape_cast %16 : vector<2x128xf32> to vector<1x2x128xf32>
    tpu.vector_store %arg5[%c0_9, %c0_10, %c0_11], %19 {strides = array<i32>} : memref<1x2x128xf32, #tpu.memory_space<vmem>>, vector<1x2x128xf32>,
    %20 = arith.truncf %10 : vector<32x128xf32> to vector<32x128xbf16>
    %c0_12 = arith.constant 0 : index
    %c0_13 = arith.constant 0 : index
    %21 = vector.load %arg4[%c0_12, %c0_13] : memref<32x128xbf16, #tpu.memory_space<vmem>>, vector<32x128xbf16>
    tpu.vector_store %arg4[%c0_12, %c0_13], %20 {strides = array<i32>} : memref<32x128xbf16, #tpu.memory_space<vmem>>, vector<32x128xbf16>,
    return
  }
  func.func @transform_0(%arg0: i32) -> (i32, i32) {
    %c0_i32 = arith.constant 0 : i32
    %c0_i32_0 = arith.constant 0 : i32
    return %arg0, %c0_i32 : i32, i32
  }
  func.func @transform_1(%arg0: i32) -> (i32, i32) {
    %c0_i32 = arith.constant 0 : i32
    %c0_i32_0 = arith.constant 0 : i32
    %c0_i32_1 = arith.constant 0 : i32
    return %c0_i32, %c0_i32_0 : i32, i32
  }
  func.func @transform_2(%arg0: i32) -> (i32, i32) {
    %c0_i32 = arith.constant 0 : i32
    %c0_i32_0 = arith.constant 0 : i32
    %c0_i32_1 = arith.constant 0 : i32
    return %c0_i32, %c0_i32_0 : i32, i32
  }
  func.func @transform_3(%arg0: i32) -> (i32, i32) {
    %c0_i32 = arith.constant 0 : i32
    %c0_i32_0 = arith.constant 0 : i32
    return %arg0, %c0_i32 : i32, i32
  }
  func.func @transform_4(%arg0: i32) -> (i32, i32, i32) {
    %c0_i32 = arith.constant 0 : i32
    %c0_i32_0 = arith.constant 0 : i32
    %c0_i32_1 = arith.constant 0 : i32
    return %arg0, %c0_i32, %c0_i32_0 : i32, i32, i32
  }
}

module attributes {stable_mosaic.version = 11 : i64} {
  func.func @_mm1_stats_kernel(%arg0: i32, %arg1: memref<8x512xbf16, #tpu.memory_space<vmem>>, %arg2: memref<512x128xbf16, #tpu.memory_space<vmem>>, %arg3: memref<1x128xf32, #tpu.memory_space<vmem>>, %arg4: memref<8x128xbf16, #tpu.memory_space<vmem>>, %arg5: memref<1x2x128xf32, #tpu.memory_space<vmem>>) attributes {dimension_semantics = [#tpu.dimension_semantics<parallel>], iteration_bounds = array<i64: 1>, scalar_prefetch = 0 : i64, scratch_operands = 0 : i64, tpu.core_type = #tpu.core_type<tc>, window_params = [{transform_indices = @transform_0, window_bounds = array<i64: 8, 512>}, {pipeline_mode = #tpu.pipeline_mode<synchronous>, transform_indices = @transform_1, window_bounds = array<i64: 512, 128>}, {pipeline_mode = #tpu.pipeline_mode<synchronous>, transform_indices = @transform_2, window_bounds = array<i64: 1, 128>}, {transform_indices = @transform_3, window_bounds = array<i64: 8, 128>}, {transform_indices = @transform_4, window_bounds = array<i64: 1, 2, 128>}]} {
    %c0 = arith.constant 0 : index
    %c0_0 = arith.constant 0 : index
    %0 = vector.load %arg1[%c0, %c0_0] : memref<8x512xbf16, #tpu.memory_space<vmem>>, vector<8x512xbf16>
    %cst = arith.constant 0.000000e+00 : bf16
    %1 = vector.broadcast %cst : bf16 to vector<8x512xbf16>
    %2 = arith.cmpf oge, %0, %1 : vector<8x512xbf16>
    %cst_1 = arith.constant 2.001950e-01 : bf16
    %3 = vector.broadcast %cst_1 : bf16 to vector<8x512xbf16>
    %4 = arith.mulf %0, %3 : vector<8x512xbf16>
    %5 = arith.select %2, %0, %4 : vector<8x512xi1>, vector<8x512xbf16>
    %c0_2 = arith.constant 0 : index
    %c0_3 = arith.constant 0 : index
    %6 = vector.load %arg2[%c0_2, %c0_3] : memref<512x128xbf16, #tpu.memory_space<vmem>>, vector<512x128xbf16>
    %cst_4 = arith.constant dense<0.000000e+00> : vector<8x128xf32>
    %7 = tpu.matmul %5, %6, %cst_4 {dimension_numbers = #tpu.dot_dimension_numbers<[1], [0], [0], [1], [0, 0, 1, 1], [], []>} : vector<8x512xbf16>, vector<512x128xbf16>, vector<8x128xf32> -> vector<8x128xf32>
    %c0_5 = arith.constant 0 : index
    %c0_6 = arith.constant 0 : index
    %8 = vector.load %arg3[%c0_5, %c0_6] : memref<1x128xf32, #tpu.memory_space<vmem>>, vector<1x128xf32>
    %9 = vector.broadcast %8 : vector<1x128xf32> to vector<8x128xf32>
    %10 = arith.addf %7, %9 : vector<8x128xf32>
    %cst_7 = arith.constant dense<0.000000e+00> : vector<128xf32>
    %11 = vector.multi_reduction <add>, %10, %cst_7 [0] : vector<8x128xf32> to vector<128xf32>
    %12 = vector.shape_cast %11 : vector<128xf32> to vector<1x128xf32>
    %13 = arith.mulf %10, %10 : vector<8x128xf32>
    %cst_8 = arith.constant dense<0.000000e+00> : vector<128xf32>
    %14 = vector.multi_reduction <add>, %13, %cst_8 [0] : vector<8x128xf32> to vector<128xf32>
    %15 = vector.shape_cast %14 : vector<128xf32> to vector<1x128xf32>
    %16 = tpu.concatenate %12, %15 in 0 : vector<1x128xf32>, vector<1x128xf32> -> vector<2x128xf32>
    %c0_9 = arith.constant 0 : index
    %c0_10 = arith.constant 0 : index
    %c0_11 = arith.constant 0 : index
    %17 = vector.load %arg5[%c0_9, %c0_10, %c0_11] : memref<1x2x128xf32, #tpu.memory_space<vmem>>, vector<1x2x128xf32>
    %18 = vector.shape_cast %17 : vector<1x2x128xf32> to vector<2x128xf32>
    %19 = vector.shape_cast %16 : vector<2x128xf32> to vector<1x2x128xf32>
    tpu.vector_store %arg5[%c0_9, %c0_10, %c0_11], %19 {strides = array<i32>} : memref<1x2x128xf32, #tpu.memory_space<vmem>>, vector<1x2x128xf32>,
    %20 = arith.truncf %10 : vector<8x128xf32> to vector<8x128xbf16>
    %c0_12 = arith.constant 0 : index
    %c0_13 = arith.constant 0 : index
    %21 = vector.load %arg4[%c0_12, %c0_13] : memref<8x128xbf16, #tpu.memory_space<vmem>>, vector<8x128xbf16>
    tpu.vector_store %arg4[%c0_12, %c0_13], %20 {strides = array<i32>} : memref<8x128xbf16, #tpu.memory_space<vmem>>, vector<8x128xbf16>,
    return
  }
  func.func @transform_0(%arg0: i32) -> (i32, i32) {
    %c0_i32 = arith.constant 0 : i32
    %c0_i32_0 = arith.constant 0 : i32
    return %arg0, %c0_i32 : i32, i32
  }
  func.func @transform_1(%arg0: i32) -> (i32, i32) {
    %c0_i32 = arith.constant 0 : i32
    %c0_i32_0 = arith.constant 0 : i32
    %c0_i32_1 = arith.constant 0 : i32
    return %c0_i32, %c0_i32_0 : i32, i32
  }
  func.func @transform_2(%arg0: i32) -> (i32, i32) {
    %c0_i32 = arith.constant 0 : i32
    %c0_i32_0 = arith.constant 0 : i32
    %c0_i32_1 = arith.constant 0 : i32
    return %c0_i32, %c0_i32_0 : i32, i32
  }
  func.func @transform_3(%arg0: i32) -> (i32, i32) {
    %c0_i32 = arith.constant 0 : i32
    %c0_i32_0 = arith.constant 0 : i32
    return %arg0, %c0_i32 : i32, i32
  }
  func.func @transform_4(%arg0: i32) -> (i32, i32, i32) {
    %c0_i32 = arith.constant 0 : i32
    %c0_i32_0 = arith.constant 0 : i32
    %c0_i32_1 = arith.constant 0 : i32
    return %arg0, %c0_i32, %c0_i32_0 : i32, i32, i32
  }
}

module attributes {stable_mosaic.version = 11 : i64} {
  func.func @_mm1_stats_kernel(%arg0: i32, %arg1: memref<2x576xbf16, #tpu.memory_space<vmem>>, %arg2: memref<576x256xbf16, #tpu.memory_space<vmem>>, %arg3: memref<1x256xf32, #tpu.memory_space<vmem>>, %arg4: memref<2x256xbf16, #tpu.memory_space<vmem>>, %arg5: memref<1x2x256xf32, #tpu.memory_space<vmem>>) attributes {dimension_semantics = [#tpu.dimension_semantics<parallel>], iteration_bounds = array<i64: 1>, scalar_prefetch = 0 : i64, scratch_operands = 0 : i64, tpu.core_type = #tpu.core_type<tc>, window_params = [{transform_indices = @transform_0, window_bounds = array<i64: 2, 576>}, {pipeline_mode = #tpu.pipeline_mode<synchronous>, transform_indices = @transform_1, window_bounds = array<i64: 576, 256>}, {pipeline_mode = #tpu.pipeline_mode<synchronous>, transform_indices = @transform_2, window_bounds = array<i64: 1, 256>}, {transform_indices = @transform_3, window_bounds = array<i64: 2, 256>}, {transform_indices = @transform_4, window_bounds = array<i64: 1, 2, 256>}]} {
    %c0 = arith.constant 0 : index
    %c0_0 = arith.constant 0 : index
    %0 = vector.load %arg1[%c0, %c0_0] : memref<2x576xbf16, #tpu.memory_space<vmem>>, vector<2x576xbf16>
    %cst = arith.constant 0.000000e+00 : bf16
    %1 = vector.broadcast %cst : bf16 to vector<2x576xbf16>
    %2 = arith.maximumf %0, %1 : vector<2x576xbf16>
    %c0_1 = arith.constant 0 : index
    %c0_2 = arith.constant 0 : index
    %3 = vector.load %arg2[%c0_1, %c0_2] : memref<576x256xbf16, #tpu.memory_space<vmem>>, vector<576x256xbf16>
    %cst_3 = arith.constant dense<0.000000e+00> : vector<2x256xf32>
    %4 = tpu.matmul %2, %3, %cst_3 {dimension_numbers = #tpu.dot_dimension_numbers<[1], [0], [0], [1], [0, 0, 1, 1], [], []>} : vector<2x576xbf16>, vector<576x256xbf16>, vector<2x256xf32> -> vector<2x256xf32>
    %c0_4 = arith.constant 0 : index
    %c0_5 = arith.constant 0 : index
    %5 = vector.load %arg3[%c0_4, %c0_5] : memref<1x256xf32, #tpu.memory_space<vmem>>, vector<1x256xf32>
    %6 = vector.broadcast %5 : vector<1x256xf32> to vector<2x256xf32>
    %7 = arith.addf %4, %6 : vector<2x256xf32>
    %cst_6 = arith.constant dense<0.000000e+00> : vector<256xf32>
    %8 = vector.multi_reduction <add>, %7, %cst_6 [0] : vector<2x256xf32> to vector<256xf32>
    %9 = vector.shape_cast %8 : vector<256xf32> to vector<1x256xf32>
    %10 = arith.mulf %7, %7 : vector<2x256xf32>
    %cst_7 = arith.constant dense<0.000000e+00> : vector<256xf32>
    %11 = vector.multi_reduction <add>, %10, %cst_7 [0] : vector<2x256xf32> to vector<256xf32>
    %12 = vector.shape_cast %11 : vector<256xf32> to vector<1x256xf32>
    %13 = tpu.concatenate %9, %12 in 0 : vector<1x256xf32>, vector<1x256xf32> -> vector<2x256xf32>
    %c0_8 = arith.constant 0 : index
    %c0_9 = arith.constant 0 : index
    %c0_10 = arith.constant 0 : index
    %14 = vector.load %arg5[%c0_8, %c0_9, %c0_10] : memref<1x2x256xf32, #tpu.memory_space<vmem>>, vector<1x2x256xf32>
    %15 = vector.shape_cast %14 : vector<1x2x256xf32> to vector<2x256xf32>
    %16 = vector.shape_cast %13 : vector<2x256xf32> to vector<1x2x256xf32>
    tpu.vector_store %arg5[%c0_8, %c0_9, %c0_10], %16 {strides = array<i32>} : memref<1x2x256xf32, #tpu.memory_space<vmem>>, vector<1x2x256xf32>,
    %17 = arith.truncf %7 : vector<2x256xf32> to vector<2x256xbf16>
    %c0_11 = arith.constant 0 : index
    %c0_12 = arith.constant 0 : index
    %18 = vector.load %arg4[%c0_11, %c0_12] : memref<2x256xbf16, #tpu.memory_space<vmem>>, vector<2x256xbf16>
    tpu.vector_store %arg4[%c0_11, %c0_12], %17 {strides = array<i32>} : memref<2x256xbf16, #tpu.memory_space<vmem>>, vector<2x256xbf16>,
    return
  }
  func.func @transform_0(%arg0: i32) -> (i32, i32) {
    %c0_i32 = arith.constant 0 : i32
    %c0_i32_0 = arith.constant 0 : i32
    return %arg0, %c0_i32 : i32, i32
  }
  func.func @transform_1(%arg0: i32) -> (i32, i32) {
    %c0_i32 = arith.constant 0 : i32
    %c0_i32_0 = arith.constant 0 : i32
    %c0_i32_1 = arith.constant 0 : i32
    return %c0_i32, %c0_i32_0 : i32, i32
  }
  func.func @transform_2(%arg0: i32) -> (i32, i32) {
    %c0_i32 = arith.constant 0 : i32
    %c0_i32_0 = arith.constant 0 : i32
    %c0_i32_1 = arith.constant 0 : i32
    return %c0_i32, %c0_i32_0 : i32, i32
  }
  func.func @transform_3(%arg0: i32) -> (i32, i32) {
    %c0_i32 = arith.constant 0 : i32
    %c0_i32_0 = arith.constant 0 : i32
    return %arg0, %c0_i32 : i32, i32
  }
  func.func @transform_4(%arg0: i32) -> (i32, i32, i32) {
    %c0_i32 = arith.constant 0 : i32
    %c0_i32_0 = arith.constant 0 : i32
    %c0_i32_1 = arith.constant 0 : i32
    return %arg0, %c0_i32, %c0_i32_0 : i32, i32, i32
  }
}

module attributes {stable_mosaic.version = 11 : i64} {
  func.func @_mm1_kernel(%arg0: i32, %arg1: memref<2x1024xbf16, #tpu.memory_space<vmem>>, %arg2: memref<1024x128xbf16, #tpu.memory_space<vmem>>, %arg3: memref<1x128xf32, #tpu.memory_space<vmem>>, %arg4: memref<2x128xbf16, #tpu.memory_space<vmem>>) attributes {dimension_semantics = [#tpu.dimension_semantics<parallel>], iteration_bounds = array<i64: 1>, scalar_prefetch = 0 : i64, scratch_operands = 0 : i64, tpu.core_type = #tpu.core_type<tc>, window_params = [{transform_indices = @transform_0, window_bounds = array<i64: 2, 1024>}, {pipeline_mode = #tpu.pipeline_mode<synchronous>, transform_indices = @transform_1, window_bounds = array<i64: 1024, 128>}, {pipeline_mode = #tpu.pipeline_mode<synchronous>, transform_indices = @transform_2, window_bounds = array<i64: 1, 128>}, {transform_indices = @transform_3, window_bounds = array<i64: 2, 128>}]} {
    %c0 = arith.constant 0 : index
    %c0_0 = arith.constant 0 : index
    %0 = vector.load %arg1[%c0, %c0_0] : memref<2x1024xbf16, #tpu.memory_space<vmem>>, vector<2x1024xbf16>
    %cst = arith.constant 0.000000e+00 : bf16
    %1 = vector.broadcast %cst : bf16 to vector<2x1024xbf16>
    %2 = arith.cmpf oge, %0, %1 : vector<2x1024xbf16>
    %cst_1 = arith.constant 2.001950e-01 : bf16
    %3 = vector.broadcast %cst_1 : bf16 to vector<2x1024xbf16>
    %4 = arith.mulf %0, %3 : vector<2x1024xbf16>
    %5 = arith.select %2, %0, %4 : vector<2x1024xi1>, vector<2x1024xbf16>
    %c0_2 = arith.constant 0 : index
    %c0_3 = arith.constant 0 : index
    %6 = vector.load %arg2[%c0_2, %c0_3] : memref<1024x128xbf16, #tpu.memory_space<vmem>>, vector<1024x128xbf16>
    %cst_4 = arith.constant dense<0.000000e+00> : vector<2x128xf32>
    %7 = tpu.matmul %5, %6, %cst_4 {dimension_numbers = #tpu.dot_dimension_numbers<[1], [0], [0], [1], [0, 0, 1, 1], [], []>} : vector<2x1024xbf16>, vector<1024x128xbf16>, vector<2x128xf32> -> vector<2x128xf32>
    %c0_5 = arith.constant 0 : index
    %c0_6 = arith.constant 0 : index
    %8 = vector.load %arg3[%c0_5, %c0_6] : memref<1x128xf32, #tpu.memory_space<vmem>>, vector<1x128xf32>
    %9 = vector.broadcast %8 : vector<1x128xf32> to vector<2x128xf32>
    %10 = arith.addf %7, %9 : vector<2x128xf32>
    %11 = arith.truncf %10 : vector<2x128xf32> to vector<2x128xbf16>
    %c0_7 = arith.constant 0 : index
    %c0_8 = arith.constant 0 : index
    %12 = vector.load %arg4[%c0_7, %c0_8] : memref<2x128xbf16, #tpu.memory_space<vmem>>, vector<2x128xbf16>
    tpu.vector_store %arg4[%c0_7, %c0_8], %11 {strides = array<i32>} : memref<2x128xbf16, #tpu.memory_space<vmem>>, vector<2x128xbf16>,
    return
  }
  func.func @transform_0(%arg0: i32) -> (i32, i32) {
    %c0_i32 = arith.constant 0 : i32
    %c0_i32_0 = arith.constant 0 : i32
    return %arg0, %c0_i32 : i32, i32
  }
  func.func @transform_1(%arg0: i32) -> (i32, i32) {
    %c0_i32 = arith.constant 0 : i32
    %c0_i32_0 = arith.constant 0 : i32
    %c0_i32_1 = arith.constant 0 : i32
    return %c0_i32, %c0_i32_0 : i32, i32
  }
  func.func @transform_2(%arg0: i32) -> (i32, i32) {
    %c0_i32 = arith.constant 0 : i32
    %c0_i32_0 = arith.constant 0 : i32
    %c0_i32_1 = arith.constant 0 : i32
    return %c0_i32, %c0_i32_0 : i32, i32
  }
  func.func @transform_3(%arg0: i32) -> (i32, i32) {
    %c0_i32 = arith.constant 0 : i32
    %c0_i32_0 = arith.constant 0 : i32
    return %arg0, %c0_i32 : i32, i32
  }
}

module attributes {stable_mosaic.version = 11 : i64} {
  func.func @_mm1_stats_kernel(%arg0: i32, %arg1: memref<8x1152xbf16, #tpu.memory_space<vmem>>, %arg2: memref<1152x128xbf16, #tpu.memory_space<vmem>>, %arg3: memref<1x128xf32, #tpu.memory_space<vmem>>, %arg4: memref<8x128xbf16, #tpu.memory_space<vmem>>, %arg5: memref<1x2x128xf32, #tpu.memory_space<vmem>>) attributes {dimension_semantics = [#tpu.dimension_semantics<parallel>], iteration_bounds = array<i64: 1>, scalar_prefetch = 0 : i64, scratch_operands = 0 : i64, tpu.core_type = #tpu.core_type<tc>, window_params = [{transform_indices = @transform_0, window_bounds = array<i64: 8, 1152>}, {pipeline_mode = #tpu.pipeline_mode<synchronous>, transform_indices = @transform_1, window_bounds = array<i64: 1152, 128>}, {pipeline_mode = #tpu.pipeline_mode<synchronous>, transform_indices = @transform_2, window_bounds = array<i64: 1, 128>}, {transform_indices = @transform_3, window_bounds = array<i64: 8, 128>}, {transform_indices = @transform_4, window_bounds = array<i64: 1, 2, 128>}]} {
    %c0 = arith.constant 0 : index
    %c0_0 = arith.constant 0 : index
    %0 = vector.load %arg1[%c0, %c0_0] : memref<8x1152xbf16, #tpu.memory_space<vmem>>, vector<8x1152xbf16>
    %cst = arith.constant 0.000000e+00 : bf16
    %1 = vector.broadcast %cst : bf16 to vector<8x1152xbf16>
    %2 = arith.maximumf %0, %1 : vector<8x1152xbf16>
    %c0_1 = arith.constant 0 : index
    %c0_2 = arith.constant 0 : index
    %3 = vector.load %arg2[%c0_1, %c0_2] : memref<1152x128xbf16, #tpu.memory_space<vmem>>, vector<1152x128xbf16>
    %cst_3 = arith.constant dense<0.000000e+00> : vector<8x128xf32>
    %4 = tpu.matmul %2, %3, %cst_3 {dimension_numbers = #tpu.dot_dimension_numbers<[1], [0], [0], [1], [0, 0, 1, 1], [], []>} : vector<8x1152xbf16>, vector<1152x128xbf16>, vector<8x128xf32> -> vector<8x128xf32>
    %c0_4 = arith.constant 0 : index
    %c0_5 = arith.constant 0 : index
    %5 = vector.load %arg3[%c0_4, %c0_5] : memref<1x128xf32, #tpu.memory_space<vmem>>, vector<1x128xf32>
    %6 = vector.broadcast %5 : vector<1x128xf32> to vector<8x128xf32>
    %7 = arith.addf %4, %6 : vector<8x128xf32>
    %cst_6 = arith.constant dense<0.000000e+00> : vector<128xf32>
    %8 = vector.multi_reduction <add>, %7, %cst_6 [0] : vector<8x128xf32> to vector<128xf32>
    %9 = vector.shape_cast %8 : vector<128xf32> to vector<1x128xf32>
    %10 = arith.mulf %7, %7 : vector<8x128xf32>
    %cst_7 = arith.constant dense<0.000000e+00> : vector<128xf32>
    %11 = vector.multi_reduction <add>, %10, %cst_7 [0] : vector<8x128xf32> to vector<128xf32>
    %12 = vector.shape_cast %11 : vector<128xf32> to vector<1x128xf32>
    %13 = tpu.concatenate %9, %12 in 0 : vector<1x128xf32>, vector<1x128xf32> -> vector<2x128xf32>
    %c0_8 = arith.constant 0 : index
    %c0_9 = arith.constant 0 : index
    %c0_10 = arith.constant 0 : index
    %14 = vector.load %arg5[%c0_8, %c0_9, %c0_10] : memref<1x2x128xf32, #tpu.memory_space<vmem>>, vector<1x2x128xf32>
    %15 = vector.shape_cast %14 : vector<1x2x128xf32> to vector<2x128xf32>
    %16 = vector.shape_cast %13 : vector<2x128xf32> to vector<1x2x128xf32>
    tpu.vector_store %arg5[%c0_8, %c0_9, %c0_10], %16 {strides = array<i32>} : memref<1x2x128xf32, #tpu.memory_space<vmem>>, vector<1x2x128xf32>,
    %17 = arith.truncf %7 : vector<8x128xf32> to vector<8x128xbf16>
    %c0_11 = arith.constant 0 : index
    %c0_12 = arith.constant 0 : index
    %18 = vector.load %arg4[%c0_11, %c0_12] : memref<8x128xbf16, #tpu.memory_space<vmem>>, vector<8x128xbf16>
    tpu.vector_store %arg4[%c0_11, %c0_12], %17 {strides = array<i32>} : memref<8x128xbf16, #tpu.memory_space<vmem>>, vector<8x128xbf16>,
    return
  }
  func.func @transform_0(%arg0: i32) -> (i32, i32) {
    %c0_i32 = arith.constant 0 : i32
    %c0_i32_0 = arith.constant 0 : i32
    return %arg0, %c0_i32 : i32, i32
  }
  func.func @transform_1(%arg0: i32) -> (i32, i32) {
    %c0_i32 = arith.constant 0 : i32
    %c0_i32_0 = arith.constant 0 : i32
    %c0_i32_1 = arith.constant 0 : i32
    return %c0_i32, %c0_i32_0 : i32, i32
  }
  func.func @transform_2(%arg0: i32) -> (i32, i32) {
    %c0_i32 = arith.constant 0 : i32
    %c0_i32_0 = arith.constant 0 : i32
    %c0_i32_1 = arith.constant 0 : i32
    return %c0_i32, %c0_i32_0 : i32, i32
  }
  func.func @transform_3(%arg0: i32) -> (i32, i32) {
    %c0_i32 = arith.constant 0 : i32
    %c0_i32_0 = arith.constant 0 : i32
    return %arg0, %c0_i32 : i32, i32
  }
  func.func @transform_4(%arg0: i32) -> (i32, i32, i32) {
    %c0_i32 = arith.constant 0 : i32
    %c0_i32_0 = arith.constant 0 : i32
    %c0_i32_1 = arith.constant 0 : i32
    return %arg0, %c0_i32, %c0_i32_0 : i32, i32, i32
  }
}

module attributes {stable_mosaic.version = 11 : i64} {
  func.func @_mm1_stats_kernel(%arg0: i32, %arg1: memref<32x576xbf16, #tpu.memory_space<vmem>>, %arg2: memref<576x128xbf16, #tpu.memory_space<vmem>>, %arg3: memref<1x128xf32, #tpu.memory_space<vmem>>, %arg4: memref<32x128xbf16, #tpu.memory_space<vmem>>, %arg5: memref<1x2x128xf32, #tpu.memory_space<vmem>>) attributes {dimension_semantics = [#tpu.dimension_semantics<parallel>], iteration_bounds = array<i64: 1>, scalar_prefetch = 0 : i64, scratch_operands = 0 : i64, tpu.core_type = #tpu.core_type<tc>, window_params = [{transform_indices = @transform_0, window_bounds = array<i64: 32, 576>}, {pipeline_mode = #tpu.pipeline_mode<synchronous>, transform_indices = @transform_1, window_bounds = array<i64: 576, 128>}, {pipeline_mode = #tpu.pipeline_mode<synchronous>, transform_indices = @transform_2, window_bounds = array<i64: 1, 128>}, {transform_indices = @transform_3, window_bounds = array<i64: 32, 128>}, {transform_indices = @transform_4, window_bounds = array<i64: 1, 2, 128>}]} {
    %c0 = arith.constant 0 : index
    %c0_0 = arith.constant 0 : index
    %0 = vector.load %arg1[%c0, %c0_0] : memref<32x576xbf16, #tpu.memory_space<vmem>>, vector<32x576xbf16>
    %cst = arith.constant 0.000000e+00 : bf16
    %1 = vector.broadcast %cst : bf16 to vector<32x576xbf16>
    %2 = arith.maximumf %0, %1 : vector<32x576xbf16>
    %c0_1 = arith.constant 0 : index
    %c0_2 = arith.constant 0 : index
    %3 = vector.load %arg2[%c0_1, %c0_2] : memref<576x128xbf16, #tpu.memory_space<vmem>>, vector<576x128xbf16>
    %cst_3 = arith.constant dense<0.000000e+00> : vector<32x128xf32>
    %4 = tpu.matmul %2, %3, %cst_3 {dimension_numbers = #tpu.dot_dimension_numbers<[1], [0], [0], [1], [0, 0, 1, 1], [], []>} : vector<32x576xbf16>, vector<576x128xbf16>, vector<32x128xf32> -> vector<32x128xf32>
    %c0_4 = arith.constant 0 : index
    %c0_5 = arith.constant 0 : index
    %5 = vector.load %arg3[%c0_4, %c0_5] : memref<1x128xf32, #tpu.memory_space<vmem>>, vector<1x128xf32>
    %6 = vector.broadcast %5 : vector<1x128xf32> to vector<32x128xf32>
    %7 = arith.addf %4, %6 : vector<32x128xf32>
    %cst_6 = arith.constant dense<0.000000e+00> : vector<128xf32>
    %8 = vector.multi_reduction <add>, %7, %cst_6 [0] : vector<32x128xf32> to vector<128xf32>
    %9 = vector.shape_cast %8 : vector<128xf32> to vector<1x128xf32>
    %10 = arith.mulf %7, %7 : vector<32x128xf32>
    %cst_7 = arith.constant dense<0.000000e+00> : vector<128xf32>
    %11 = vector.multi_reduction <add>, %10, %cst_7 [0] : vector<32x128xf32> to vector<128xf32>
    %12 = vector.shape_cast %11 : vector<128xf32> to vector<1x128xf32>
    %13 = tpu.concatenate %9, %12 in 0 : vector<1x128xf32>, vector<1x128xf32> -> vector<2x128xf32>
    %c0_8 = arith.constant 0 : index
    %c0_9 = arith.constant 0 : index
    %c0_10 = arith.constant 0 : index
    %14 = vector.load %arg5[%c0_8, %c0_9, %c0_10] : memref<1x2x128xf32, #tpu.memory_space<vmem>>, vector<1x2x128xf32>
    %15 = vector.shape_cast %14 : vector<1x2x128xf32> to vector<2x128xf32>
    %16 = vector.shape_cast %13 : vector<2x128xf32> to vector<1x2x128xf32>
    tpu.vector_store %arg5[%c0_8, %c0_9, %c0_10], %16 {strides = array<i32>} : memref<1x2x128xf32, #tpu.memory_space<vmem>>, vector<1x2x128xf32>,
    %17 = arith.truncf %7 : vector<32x128xf32> to vector<32x128xbf16>
    %c0_11 = arith.constant 0 : index
    %c0_12 = arith.constant 0 : index
    %18 = vector.load %arg4[%c0_11, %c0_12] : memref<32x128xbf16, #tpu.memory_space<vmem>>, vector<32x128xbf16>
    tpu.vector_store %arg4[%c0_11, %c0_12], %17 {strides = array<i32>} : memref<32x128xbf16, #tpu.memory_space<vmem>>, vector<32x128xbf16>,
    return
  }
  func.func @transform_0(%arg0: i32) -> (i32, i32) {
    %c0_i32 = arith.constant 0 : i32
    %c0_i32_0 = arith.constant 0 : i32
    return %arg0, %c0_i32 : i32, i32
  }
  func.func @transform_1(%arg0: i32) -> (i32, i32) {
    %c0_i32 = arith.constant 0 : i32
    %c0_i32_0 = arith.constant 0 : i32
    %c0_i32_1 = arith.constant 0 : i32
    return %c0_i32, %c0_i32_0 : i32, i32
  }
  func.func @transform_2(%arg0: i32) -> (i32, i32) {
    %c0_i32 = arith.constant 0 : i32
    %c0_i32_0 = arith.constant 0 : i32
    %c0_i32_1 = arith.constant 0 : i32
    return %c0_i32, %c0_i32_0 : i32, i32
  }
  func.func @transform_3(%arg0: i32) -> (i32, i32) {
    %c0_i32 = arith.constant 0 : i32
    %c0_i32_0 = arith.constant 0 : i32
    return %arg0, %c0_i32 : i32, i32
  }
  func.func @transform_4(%arg0: i32) -> (i32, i32, i32) {
    %c0_i32 = arith.constant 0 : i32
    %c0_i32_0 = arith.constant 0 : i32
    %c0_i32_1 = arith.constant 0 : i32
    return %arg0, %c0_i32, %c0_i32_0 : i32, i32, i32
  }
}

module attributes {stable_mosaic.version = 11 : i64} {
  func.func @_mm1_stats_kernel(%arg0: i32, %arg1: memref<128x288xbf16, #tpu.memory_space<vmem>>, %arg2: memref<288x128xbf16, #tpu.memory_space<vmem>>, %arg3: memref<1x128xf32, #tpu.memory_space<vmem>>, %arg4: memref<128x128xbf16, #tpu.memory_space<vmem>>, %arg5: memref<1x2x128xf32, #tpu.memory_space<vmem>>) attributes {dimension_semantics = [#tpu.dimension_semantics<parallel>], iteration_bounds = array<i64: 1>, scalar_prefetch = 0 : i64, scratch_operands = 0 : i64, tpu.core_type = #tpu.core_type<tc>, window_params = [{transform_indices = @transform_0, window_bounds = array<i64: 128, 288>}, {pipeline_mode = #tpu.pipeline_mode<synchronous>, transform_indices = @transform_1, window_bounds = array<i64: 288, 128>}, {pipeline_mode = #tpu.pipeline_mode<synchronous>, transform_indices = @transform_2, window_bounds = array<i64: 1, 128>}, {transform_indices = @transform_3, window_bounds = array<i64: 128, 128>}, {transform_indices = @transform_4, window_bounds = array<i64: 1, 2, 128>}]} {
    %c0 = arith.constant 0 : index
    %c0_0 = arith.constant 0 : index
    %0 = vector.load %arg1[%c0, %c0_0] : memref<128x288xbf16, #tpu.memory_space<vmem>>, vector<128x288xbf16>
    %cst = arith.constant 0.000000e+00 : bf16
    %1 = vector.broadcast %cst : bf16 to vector<128x288xbf16>
    %2 = arith.maximumf %0, %1 : vector<128x288xbf16>
    %c0_1 = arith.constant 0 : index
    %c0_2 = arith.constant 0 : index
    %3 = vector.load %arg2[%c0_1, %c0_2] : memref<288x128xbf16, #tpu.memory_space<vmem>>, vector<288x128xbf16>
    %cst_3 = arith.constant dense<0.000000e+00> : vector<128x128xf32>
    %4 = tpu.matmul %2, %3, %cst_3 {dimension_numbers = #tpu.dot_dimension_numbers<[1], [0], [0], [1], [0, 0, 1, 1], [], []>} : vector<128x288xbf16>, vector<288x128xbf16>, vector<128x128xf32> -> vector<128x128xf32>
    %c0_4 = arith.constant 0 : index
    %c0_5 = arith.constant 0 : index
    %5 = vector.load %arg3[%c0_4, %c0_5] : memref<1x128xf32, #tpu.memory_space<vmem>>, vector<1x128xf32>
    %6 = vector.broadcast %5 : vector<1x128xf32> to vector<128x128xf32>
    %7 = arith.addf %4, %6 : vector<128x128xf32>
    %cst_6 = arith.constant dense<0.000000e+00> : vector<128xf32>
    %8 = vector.multi_reduction <add>, %7, %cst_6 [0] : vector<128x128xf32> to vector<128xf32>
    %9 = vector.shape_cast %8 : vector<128xf32> to vector<1x128xf32>
    %10 = arith.mulf %7, %7 : vector<128x128xf32>
    %cst_7 = arith.constant dense<0.000000e+00> : vector<128xf32>
    %11 = vector.multi_reduction <add>, %10, %cst_7 [0] : vector<128x128xf32> to vector<128xf32>
    %12 = vector.shape_cast %11 : vector<128xf32> to vector<1x128xf32>
    %13 = tpu.concatenate %9, %12 in 0 : vector<1x128xf32>, vector<1x128xf32> -> vector<2x128xf32>
    %c0_8 = arith.constant 0 : index
    %c0_9 = arith.constant 0 : index
    %c0_10 = arith.constant 0 : index
    %14 = vector.load %arg5[%c0_8, %c0_9, %c0_10] : memref<1x2x128xf32, #tpu.memory_space<vmem>>, vector<1x2x128xf32>
    %15 = vector.shape_cast %14 : vector<1x2x128xf32> to vector<2x128xf32>
    %16 = vector.shape_cast %13 : vector<2x128xf32> to vector<1x2x128xf32>
    tpu.vector_store %arg5[%c0_8, %c0_9, %c0_10], %16 {strides = array<i32>} : memref<1x2x128xf32, #tpu.memory_space<vmem>>, vector<1x2x128xf32>,
    %17 = arith.truncf %7 : vector<128x128xf32> to vector<128x128xbf16>
    %c0_11 = arith.constant 0 : index
    %c0_12 = arith.constant 0 : index
    %18 = vector.load %arg4[%c0_11, %c0_12] : memref<128x128xbf16, #tpu.memory_space<vmem>>, vector<128x128xbf16>
    tpu.vector_store %arg4[%c0_11, %c0_12], %17 {strides = array<i32>} : memref<128x128xbf16, #tpu.memory_space<vmem>>, vector<128x128xbf16>,
    return
  }
  func.func @transform_0(%arg0: i32) -> (i32, i32) {
    %c0_i32 = arith.constant 0 : i32
    %c0_i32_0 = arith.constant 0 : i32
    return %arg0, %c0_i32 : i32, i32
  }
  func.func @transform_1(%arg0: i32) -> (i32, i32) {
    %c0_i32 = arith.constant 0 : i32
    %c0_i32_0 = arith.constant 0 : i32
    %c0_i32_1 = arith.constant 0 : i32
    return %c0_i32, %c0_i32_0 : i32, i32
  }
  func.func @transform_2(%arg0: i32) -> (i32, i32) {
    %c0_i32 = arith.constant 0 : i32
    %c0_i32_0 = arith.constant 0 : i32
    %c0_i32_1 = arith.constant 0 : i32
    return %c0_i32, %c0_i32_0 : i32, i32
  }
  func.func @transform_3(%arg0: i32) -> (i32, i32) {
    %c0_i32 = arith.constant 0 : i32
    %c0_i32_0 = arith.constant 0 : i32
    return %arg0, %c0_i32 : i32, i32
  }
  func.func @transform_4(%arg0: i32) -> (i32, i32, i32) {
    %c0_i32 = arith.constant 0 : i32
    %c0_i32_0 = arith.constant 0 : i32
    %c0_i32_1 = arith.constant 0 : i32
    return %arg0, %c0_i32, %c0_i32_0 : i32, i32, i32
  }
}

module attributes {stable_mosaic.version = 11 : i64} {
  func.func @_mm1_kernel(%arg0: i32, %arg1: memref<512x144xbf16, #tpu.memory_space<vmem>>, %arg2: memref<144x128xbf16, #tpu.memory_space<vmem>>, %arg3: memref<1x128xf32, #tpu.memory_space<vmem>>, %arg4: memref<512x128xf32, #tpu.memory_space<vmem>>) attributes {dimension_semantics = [#tpu.dimension_semantics<parallel>], iteration_bounds = array<i64: 1>, scalar_prefetch = 0 : i64, scratch_operands = 0 : i64, tpu.core_type = #tpu.core_type<tc>, window_params = [{transform_indices = @transform_0, window_bounds = array<i64: 512, 144>}, {pipeline_mode = #tpu.pipeline_mode<synchronous>, transform_indices = @transform_1, window_bounds = array<i64: 144, 128>}, {pipeline_mode = #tpu.pipeline_mode<synchronous>, transform_indices = @transform_2, window_bounds = array<i64: 1, 128>}, {transform_indices = @transform_3, window_bounds = array<i64: 512, 128>}]} {
    %c0 = arith.constant 0 : index
    %c0_0 = arith.constant 0 : index
    %0 = vector.load %arg1[%c0, %c0_0] : memref<512x144xbf16, #tpu.memory_space<vmem>>, vector<512x144xbf16>
    %cst = arith.constant 0.000000e+00 : bf16
    %1 = vector.broadcast %cst : bf16 to vector<512x144xbf16>
    %2 = arith.maximumf %0, %1 : vector<512x144xbf16>
    %c0_1 = arith.constant 0 : index
    %c0_2 = arith.constant 0 : index
    %3 = vector.load %arg2[%c0_1, %c0_2] : memref<144x128xbf16, #tpu.memory_space<vmem>>, vector<144x128xbf16>
    %cst_3 = arith.constant dense<0.000000e+00> : vector<512x128xf32>
    %4 = tpu.matmul %2, %3, %cst_3 {dimension_numbers = #tpu.dot_dimension_numbers<[1], [0], [0], [1], [0, 0, 1, 1], [], []>} : vector<512x144xbf16>, vector<144x128xbf16>, vector<512x128xf32> -> vector<512x128xf32>
    %c0_4 = arith.constant 0 : index
    %c0_5 = arith.constant 0 : index
    %5 = vector.load %arg3[%c0_4, %c0_5] : memref<1x128xf32, #tpu.memory_space<vmem>>, vector<1x128xf32>
    %6 = vector.broadcast %5 : vector<1x128xf32> to vector<512x128xf32>
    %7 = arith.addf %4, %6 : vector<512x128xf32>
    %8 = math.tanh %7 : vector<512x128xf32>
    %c0_6 = arith.constant 0 : index
    %c0_7 = arith.constant 0 : index
    %9 = vector.load %arg4[%c0_6, %c0_7] : memref<512x128xf32, #tpu.memory_space<vmem>>, vector<512x128xf32>
    tpu.vector_store %arg4[%c0_6, %c0_7], %8 {strides = array<i32>} : memref<512x128xf32, #tpu.memory_space<vmem>>, vector<512x128xf32>,
    return
  }
  func.func @transform_0(%arg0: i32) -> (i32, i32) {
    %c0_i32 = arith.constant 0 : i32
    %c0_i32_0 = arith.constant 0 : i32
    return %arg0, %c0_i32 : i32, i32
  }
  func.func @transform_1(%arg0: i32) -> (i32, i32) {
    %c0_i32 = arith.constant 0 : i32
    %c0_i32_0 = arith.constant 0 : i32
    %c0_i32_1 = arith.constant 0 : i32
    return %c0_i32, %c0_i32_0 : i32, i32
  }
  func.func @transform_2(%arg0: i32) -> (i32, i32) {
    %c0_i32 = arith.constant 0 : i32
    %c0_i32_0 = arith.constant 0 : i32
    %c0_i32_1 = arith.constant 0 : i32
    return %c0_i32, %c0_i32_0 : i32, i32
  }
  func.func @transform_3(%arg0: i32) -> (i32, i32) {
    %c0_i32 = arith.constant 0 : i32
    %c0_i32_0 = arith.constant 0 : i32
    return %arg0, %c0_i32 : i32, i32
  }
}

</mosaic_0001>

<bundles_post_ra>
// kernel: unet_generator.10
= control target key start
LH: loop header
LB: loop body
LE: loop exit
PB: predicated region body
PF: predicated region fallthrough
CT: control target
= control target key end

     0   :  { %vm278_vm0 = vcmask 523264   ;;  %s1853_s1 = inlined_call_operand.vmem [shape: bf16[64,128], index: 1, kind: input, shape index: {}]   ;;  %s1854_s0 = inlined_call_operand.vmem [shape: bf16[512,64], index: 0, kind: input, shape index: {}]   ;;  %s1855_s2 = inlined_call_operand.vmem [shape: f32[1,128], index: 2, kind: input, shape index: {}]   ;;  %s1856_s3 = inlined_call_operand.vmem [shape: bf16[512,128], index: 3, kind: output, shape index: {}]  }
   0x1   :  { %v1492_v0 = vld [vmem:[%s1853_s1] sm:$0xff]   ;;  %v1493_v1 = vld [vmem:[%s1853_s1 + $0x8] sm:$0xff]   ;;  %v1494_v2 = vld [vmem:[%s1853_s1 + $0x10] sm:$0xff]  }
   0x2   :  { %1412 = vmatprep.subr.bf16.mxu0 %v1492_v0  ;;  %1484 = vmatprep.subr.bf16.mxu1 %v1492_v0  ;;  %v1496_v3 = vld [vmem:[%s1854_s0] sm:$0xff]   ;;  %v1495_v5 = vld [vmem:[%s1853_s1 + $0x18] sm:$0xff]   ;;  %v1498_v6 = vld [vmem:[%s1854_s0 + $0x8] sm:$0xff]  }
   0x3   :  { %1413 = vmatpush3.bf16.msra.mxu0 %v1492_v0  ;;  %1488 = vmatpush3.bf16.msra.mxu1 %v1492_v0  ;;  %v1497_v4 = vld [vmem:[%s1854_s0 + $0x80] sm:$0xff]   ;;  %v1499_v7 = vld [vmem:[%s1854_s0 + $0x88] sm:$0xff]   ;;  %v1500_v8 = vld [vmem:[%s1854_s0 + $0x10] sm:$0xff]  }
   0x4   :  { %1414 = vmatprep.subr.bf16.mxu0 %v1493_v1  ;;  %1485 = vmatprep.subr.bf16.mxu1 %v1493_v1  ;;  %v1501_v9 = vld [vmem:[%s1854_s0 + $0x90] sm:$0xff]   ;;  %v1502_v10 = vld [vmem:[%s1854_s0 + $0x18] sm:$0xff]   ;;  %v1504_v12 = vld [vmem:[%s1854_s0 + $0x20] sm:$0xff]  }
   0x5   :  { %1420 = vmatprep.mubr.msk.bf16.mxu0 %vm278_vm0, %v1496_v3  ;;  %1452 = vmatprep.mubr.msk.bf16.mxu1 %vm278_vm0, %v1497_v4  ;;  %v1503_v11 = vld [vmem:[%s1854_s0 + $0x98] sm:$0xff]   ;;  %v1505_v13 = vld [vmem:[%s1854_s0 + $0xa0] sm:$0xff]   ;;  %v1506_v14 = vld [vmem:[%s1854_s0 + $0x28] sm:$0xff]  }
   0x6   :  { %v1507_v15 = vld [vmem:[%s1854_s0 + $0xa8] sm:$0xff]   ;;  %v1508_v16 = vld [vmem:[%s1854_s0 + $0x30] sm:$0xff]   ;;  %v1510_v18 = vld [vmem:[%s1854_s0 + $0x38] sm:$0xff]  }
   0x7   :  { %1415 = vmatpush3.bf16.msra.mxu0 %v1493_v1  ;;  %1489 = vmatpush3.bf16.msra.mxu1 %v1493_v1  ;;  %v1509_v17 = vld [vmem:[%s1854_s0 + $0xb0] sm:$0xff]   ;;  %v1511_v19 = vld [vmem:[%s1854_s0 + $0xb8] sm:$0xff]   ;;  %v1512_v20 = vld [vmem:[%s1854_s0 + $0x40] sm:$0xff]  }
   0x8   :  { %1416 = vmatprep.subr.bf16.mxu0 %v1494_v2  ;;  %1486 = vmatprep.subr.bf16.mxu1 %v1494_v2  ;;  %v1513_v21 = vld [vmem:[%s1854_s0 + $0xc0] sm:$0xff]   ;;  %v1514_v22 = vld [vmem:[%s1854_s0 + $0x48] sm:$0xff]   ;;  %v1516_v24 = vld [vmem:[%s1854_s0 + $0x50] sm:$0xff]  }
   0x9   :  { %v1515_v23 = vld [vmem:[%s1854_s0 + $0xc8] sm:$0xff]   ;;  %v1517_v25 = vld [vmem:[%s1854_s0 + $0xd0] sm:$0xff]   ;;  %v1518_v26 = vld [vmem:[%s1854_s0 + $0x58] sm:$0xff]  }
   0xa   :  { %v1519_v27 = vld [vmem:[%s1854_s0 + $0xd8] sm:$0xff]   ;;  %v1520_v28 = vld [vmem:[%s1854_s0 + $0x60] sm:$0xff]   ;;  %v1522_v30 = vld [vmem:[%s1854_s0 + $0x68] sm:$0xff]  }
   0xb   :  { %1417 = vmatpush3.bf16.msra.mxu0 %v1494_v2  ;;  %1490 = vmatpush3.bf16.msra.mxu1 %v1494_v2  ;;  %v1521_v29 = vld [vmem:[%s1854_s0 + $0xe0] sm:$0xff]   ;;  %v1523_v31 = vld [vmem:[%s1854_s0 + $0xe8] sm:$0xff]   ;;  %v1524_v32 = vld [vmem:[%s1854_s0 + $0x70] sm:$0xff]  }
   0xc   :  { %1418 = vmatprep.subr.bf16.mxu0 %v1495_v5  ;;  %1487 = vmatprep.subr.bf16.mxu1 %v1495_v5  ;;  %v1525_v33 = vld [vmem:[%s1854_s0 + $0xf0] sm:$0xff]   ;;  %v1526_v34 = vld [vmem:[%s1854_s0 + $0x78] sm:$0xff]   ;;  %v1691_v37 = vld [vmem:[%s1855_s2] ss:$0 sm:$0xff] }
   0xd   :  { %v1527_v35 = vld [vmem:[%s1854_s0 + $0xf8] sm:$0xff]  }
   0xf   :  { %1419 = vmatpush3.bf16.msra.mxu0 %v1495_v5  ;;  %1491 = vmatpush3.bf16.msra.mxu1 %v1495_v5 }
  0x12   :  { %1421 = vmatmul.mubr.msk.bf16.vlgmr.msra.gmra.mrb[0].mxu0 %vm278_vm0, %v1498_v6  ;;  %1453 = vmatmul.mubr.msk.bf16.vlgmr.msra.gmra.mrb[0].mxu1 %vm278_vm0, %v1499_v7 }
  0x13   :  { %1424 = vmatprep.mubr.msk.bf16.mxu0 %vm278_vm0, %v1500_v8  ;;  %1456 = vmatprep.mubr.msk.bf16.mxu1 %vm278_vm0, %v1501_v9 }
  0x1a   :  { %1425 = vmatmul.mubr.msk.bf16.gmra.mrb[4].mxu0 %vm278_vm0, %v1502_v10  ;;  %1457 = vmatmul.mubr.msk.bf16.gmra.mrb[4].mxu1 %vm278_vm0, %v1503_v11 }
  0x1b   :  { %1428 = vmatprep.mubr.msk.bf16.mxu0 %vm278_vm0, %v1504_v12  ;;  %1460 = vmatprep.mubr.msk.bf16.mxu1 %vm278_vm0, %v1505_v13 }
  0x22   :  { %1429 = vmatmul.mubr.msk.bf16.gmra.mrb[8].mxu0 %vm278_vm0, %v1506_v14  ;;  %1461 = vmatmul.mubr.msk.bf16.gmra.mrb[8].mxu1 %vm278_vm0, %v1507_v15 }
  0x23   :  { %1432 = vmatprep.mubr.msk.bf16.mxu0 %vm278_vm0, %v1508_v16  ;;  %1464 = vmatprep.mubr.msk.bf16.mxu1 %vm278_vm0, %v1509_v17 }
  0x2a   :  { %1433 = vmatmul.mubr.msk.bf16.gmra.mrb[12].mxu0 %vm278_vm0, %v1510_v18  ;;  %1465 = vmatmul.mubr.msk.bf16.gmra.mrb[12].mxu1 %vm278_vm0, %v1511_v19 }
  0x2b   :  { %1436 = vmatprep.mubr.msk.bf16.mxu0 %vm278_vm0, %v1512_v20  ;;  %1468 = vmatprep.mubr.msk.bf16.mxu1 %vm278_vm0, %v1513_v21 }
  0x32   :  { %1437 = vmatmul.mubr.msk.bf16.gmra.mrb[16].mxu0 %vm278_vm0, %v1514_v22  ;;  %1469 = vmatmul.mubr.msk.bf16.gmra.mrb[16].mxu1 %vm278_vm0, %v1515_v23 }
  0x33   :  { %1440 = vmatprep.mubr.msk.bf16.mxu0 %vm278_vm0, %v1516_v24  ;;  %1472 = vmatprep.mubr.msk.bf16.mxu1 %vm278_vm0, %v1517_v25 }
  0x3a   :  { %1441 = vmatmul.mubr.msk.bf16.gmra.mrb[20].mxu0 %vm278_vm0, %v1518_v26  ;;  %1473 = vmatmul.mubr.msk.bf16.gmra.mrb[20].mxu1 %vm278_vm0, %v1519_v27 }
  0x3b   :  { %1444 = vmatprep.mubr.msk.bf16.mxu0 %vm278_vm0, %v1520_v28  ;;  %1476 = vmatprep.mubr.msk.bf16.mxu1 %vm278_vm0, %v1521_v29 }
  0x42   :  { %1445 = vmatmul.mubr.msk.bf16.gmra.mrb[24].mxu0 %vm278_vm0, %v1522_v30  ;;  %1477 = vmatmul.mubr.msk.bf16.gmra.mrb[24].mxu1 %vm278_vm0, %v1523_v31 }
  0x43   :  { %1448 = vmatprep.mubr.msk.bf16.mxu0 %vm278_vm0, %v1524_v32  ;;  %1480 = vmatprep.mubr.msk.bf16.mxu1 %vm278_vm0, %v1525_v33 }
  0x4a   :  { %1449 = vmatmul.mubr.msk.bf16.gmra.mrb[28].mxu0 %vm278_vm0, %v1526_v34  ;;  %1481 = vmatmul.mubr.msk.bf16.gmra.mrb[28].mxu1 %vm278_vm0, %v1527_v35 }
  0xe5   :  { %v1422_v36 = vpop.f32.mrb[0].mxu0  ;;  %v1454_v38 = vpop.f32.mrb[0].mxu1 }
  0xe6   :  { %v409_v39 = vpop.f32.mrb[1].mxu0  ;;  %v537_v40 = vpop.f32.mrb[1].mxu1  ;;  %v418_v43 = vadd.f32 %v1422_v36, %v1691_v37  ;;  %v546_v44 = vadd.f32 %v1454_v38, %v1691_v37 }
  0xe7   :  { %v1423_v41 = vpop.f32.mrb[2].mxu0  ;;  %v1455_v42 = vpop.f32.mrb[2].mxu1  ;;  %v410_v49 = vadd.f32 %v1691_v37, %v409_v39  ;;  %v538_v50 = vadd.f32 %v1691_v37, %v537_v40 }
  0xe8   :  { %v421_v45 = vadd.f32 %v1423_v41, %v1691_v37  ;;  %v549_v46 = vadd.f32 %v1455_v42, %v1691_v37  ;;  %v412_v47 = vpop.f32.mrb[3].mxu0  ;;  %v540_v48 = vpop.f32.mrb[3].mxu1 }
  0xe9   :  { %v413_v51 = vadd.f32 %v1691_v37, %v412_v47  ;;  %v541_v52 = vadd.f32 %v1691_v37, %v540_v48 }
  0xea   :  { %v1193_v53 = vpack.c.bf16 %v421_v45, %v418_v43  ;;  %v1273_v54 = vpack.c.bf16 %v549_v46, %v546_v44 }
  0xeb   :  { %v1188_v55 = vpack.c.bf16 %v413_v51, %v410_v49  ;;  %v1268_v56 = vpack.c.bf16 %v541_v52, %v538_v50 }
  0xec   :  { %1345 = vst [vmem:[%s1856_s3 + $0x8] sm:$0xff] %v1193_v53   ;;  %1361 = vst [vmem:[%s1856_s3 + $0x88] sm:$0xff] %v1273_v54  }
  0xed   :  { %1189 = vst [vmem:[%s1856_s3] sm:$0xff] %v1188_v55   ;;  %1360 = vst [vmem:[%s1856_s3 + $0x80] sm:$0xff] %v1268_v56   ;;  %v1426_v57 = vpop.f32.mrb[4].mxu0  ;;  %v1458_v58 = vpop.f32.mrb[4].mxu1 }
  0xee   :  { %v425_v59 = vpop.f32.mrb[5].mxu0  ;;  %v553_v60 = vpop.f32.mrb[5].mxu1  ;;  %v434_v63 = vadd.f32 %v1426_v57, %v1691_v37  ;;  %v562_v0 = vadd.f32 %v1458_v58, %v1691_v37 }
  0xef   :  { %v1427_v61 = vpop.f32.mrb[6].mxu0  ;;  %v1459_v62 = vpop.f32.mrb[6].mxu1  ;;  %v426_v5 = vadd.f32 %v1691_v37, %v425_v59  ;;  %v554_v6 = vadd.f32 %v1691_v37, %v553_v60 }
  0xf0   :  { %v437_v1 = vadd.f32 %v1427_v61, %v1691_v37  ;;  %v565_v2 = vadd.f32 %v1459_v62, %v1691_v37  ;;  %v428_v3 = vpop.f32.mrb[7].mxu0  ;;  %v556_v4 = vpop.f32.mrb[7].mxu1 }
  0xf1   :  { %v429_v7 = vadd.f32 %v1691_v37, %v428_v3  ;;  %v557_v8 = vadd.f32 %v1691_v37, %v556_v4 }
  0xf2   :  { %v1203_v9 = vpack.c.bf16 %v437_v1, %v434_v63  ;;  %v1283_v10 = vpack.c.bf16 %v565_v2, %v562_v0 }
  0xf3   :  { %v1198_v11 = vpack.c.bf16 %v429_v7, %v426_v5  ;;  %v1278_v12 = vpack.c.bf16 %v557_v8, %v554_v6 }
  0xf4   :  { %1347 = vst [vmem:[%s1856_s3 + $0x18] sm:$0xff] %v1203_v9   ;;  %1363 = vst [vmem:[%s1856_s3 + $0x98] sm:$0xff] %v1283_v10  }
  0xf5   :  { %1346 = vst [vmem:[%s1856_s3 + $0x10] sm:$0xff] %v1198_v11   ;;  %1362 = vst [vmem:[%s1856_s3 + $0x90] sm:$0xff] %v1278_v12   ;;  %v1430_v13 = vpop.f32.mrb[8].mxu0  ;;  %v1462_v14 = vpop.f32.mrb[8].mxu1 }
  0xf6   :  { %v441_v15 = vpop.f32.mrb[9].mxu0  ;;  %v569_v16 = vpop.f32.mrb[9].mxu1  ;;  %v450_v19 = vadd.f32 %v1430_v13, %v1691_v37  ;;  %v578_v20 = vadd.f32 %v1462_v14, %v1691_v37 }
  0xf7   :  { %v1431_v17 = vpop.f32.mrb[10].mxu0  ;;  %v1463_v18 = vpop.f32.mrb[10].mxu1  ;;  %v442_v25 = vadd.f32 %v1691_v37, %v441_v15  ;;  %v570_v26 = vadd.f32 %v1691_v37, %v569_v16 }
  0xf8   :  { %v453_v21 = vadd.f32 %v1431_v17, %v1691_v37  ;;  %v581_v22 = vadd.f32 %v1463_v18, %v1691_v37  ;;  %v444_v23 = vpop.f32.mrb[11].mxu0  ;;  %v572_v24 = vpop.f32.mrb[11].mxu1 }
  0xf9   :  { %v445_v27 = vadd.f32 %v1691_v37, %v444_v23  ;;  %v573_v28 = vadd.f32 %v1691_v37, %v572_v24 }
  0xfa   :  { %v1213_v29 = vpack.c.bf16 %v453_v21, %v450_v19  ;;  %v1293_v30 = vpack.c.bf16 %v581_v22, %v578_v20 }
  0xfb   :  { %v1208_v31 = vpack.c.bf16 %v445_v27, %v442_v25  ;;  %v1288_v32 = vpack.c.bf16 %v573_v28, %v570_v26 }
  0xfc   :  { %1349 = vst [vmem:[%s1856_s3 + $0x28] sm:$0xff] %v1213_v29   ;;  %1365 = vst [vmem:[%s1856_s3 + $0xa8] sm:$0xff] %v1293_v30  }
  0xfd   :  { %1348 = vst [vmem:[%s1856_s3 + $0x20] sm:$0xff] %v1208_v31   ;;  %1364 = vst [vmem:[%s1856_s3 + $0xa0] sm:$0xff] %v1288_v32   ;;  %v1434_v33 = vpop.f32.mrb[12].mxu0  ;;  %v1466_v34 = vpop.f32.mrb[12].mxu1 }
  0xfe   :  { %v457_v35 = vpop.f32.mrb[13].mxu0  ;;  %v585_v36 = vpop.f32.mrb[13].mxu1  ;;  %v466_v40 = vadd.f32 %v1434_v33, %v1691_v37  ;;  %v594_v41 = vadd.f32 %v1466_v34, %v1691_v37 }
  0xff   :  { %v1435_v38 = vpop.f32.mrb[14].mxu0  ;;  %v1467_v39 = vpop.f32.mrb[14].mxu1  ;;  %v458_v46 = vadd.f32 %v1691_v37, %v457_v35  ;;  %v586_v47 = vadd.f32 %v1691_v37, %v585_v36 }
 0x100   :  { %v469_v42 = vadd.f32 %v1435_v38, %v1691_v37  ;;  %v597_v43 = vadd.f32 %v1467_v39, %v1691_v37  ;;  %v460_v44 = vpop.f32.mrb[15].mxu0  ;;  %v588_v45 = vpop.f32.mrb[15].mxu1 }
 0x101   :  { %v461_v48 = vadd.f32 %v1691_v37, %v460_v44  ;;  %v589_v49 = vadd.f32 %v1691_v37, %v588_v45 }
 0x102   :  { %v1223_v50 = vpack.c.bf16 %v469_v42, %v466_v40  ;;  %v1303_v51 = vpack.c.bf16 %v597_v43, %v594_v41 }
 0x103   :  { %v1218_v52 = vpack.c.bf16 %v461_v48, %v458_v46  ;;  %v1298_v53 = vpack.c.bf16 %v589_v49, %v586_v47 }
 0x104   :  { %1351 = vst [vmem:[%s1856_s3 + $0x38] sm:$0xff] %v1223_v50   ;;  %1367 = vst [vmem:[%s1856_s3 + $0xb8] sm:$0xff] %v1303_v51  }
 0x105   :  { %1350 = vst [vmem:[%s1856_s3 + $0x30] sm:$0xff] %v1218_v52   ;;  %1366 = vst [vmem:[%s1856_s3 + $0xb0] sm:$0xff] %v1298_v53   ;;  %v1438_v54 = vpop.f32.mrb[16].mxu0  ;;  %v1470_v55 = vpop.f32.mrb[16].mxu1 }
 0x106   :  { %v473_v56 = vpop.f32.mrb[17].mxu0  ;;  %v601_v57 = vpop.f32.mrb[17].mxu1  ;;  %v482_v60 = vadd.f32 %v1438_v54, %v1691_v37  ;;  %v610_v61 = vadd.f32 %v1470_v55, %v1691_v37 }
 0x107   :  { %v1439_v58 = vpop.f32.mrb[18].mxu0  ;;  %v1471_v59 = vpop.f32.mrb[18].mxu1  ;;  %v474_v2 = vadd.f32 %v1691_v37, %v473_v56  ;;  %v602_v3 = vadd.f32 %v1691_v37, %v601_v57 }
 0x108   :  { %v485_v62 = vadd.f32 %v1439_v58, %v1691_v37  ;;  %v613_v63 = vadd.f32 %v1471_v59, %v1691_v37  ;;  %v476_v0 = vpop.f32.mrb[19].mxu0  ;;  %v604_v1 = vpop.f32.mrb[19].mxu1 }
 0x109   :  { %v477_v4 = vadd.f32 %v1691_v37, %v476_v0  ;;  %v605_v5 = vadd.f32 %v1691_v37, %v604_v1 }
 0x10a   :  { %v1233_v6 = vpack.c.bf16 %v485_v62, %v482_v60  ;;  %v1313_v7 = vpack.c.bf16 %v613_v63, %v610_v61 }
 0x10b   :  { %v1228_v8 = vpack.c.bf16 %v477_v4, %v474_v2  ;;  %v1308_v9 = vpack.c.bf16 %v605_v5, %v602_v3 }
 0x10c   :  { %1353 = vst [vmem:[%s1856_s3 + $0x48] sm:$0xff] %v1233_v6   ;;  %1369 = vst [vmem:[%s1856_s3 + $0xc8] sm:$0xff] %v1313_v7  }
 0x10d   :  { %1352 = vst [vmem:[%s1856_s3 + $0x40] sm:$0xff] %v1228_v8   ;;  %1368 = vst [vmem:[%s1856_s3 + $0xc0] sm:$0xff] %v1308_v9   ;;  %v1442_v10 = vpop.f32.mrb[20].mxu0  ;;  %v1474_v11 = vpop.f32.mrb[20].mxu1 }
 0x10e   :  { %v489_v12 = vpop.f32.mrb[21].mxu0  ;;  %v617_v13 = vpop.f32.mrb[21].mxu1  ;;  %v498_v16 = vadd.f32 %v1442_v10, %v1691_v37  ;;  %v626_v17 = vadd.f32 %v1474_v11, %v1691_v37 }
 0x10f   :  { %v1443_v14 = vpop.f32.mrb[22].mxu0  ;;  %v1475_v15 = vpop.f32.mrb[22].mxu1  ;;  %v490_v22 = vadd.f32 %v1691_v37, %v489_v12  ;;  %v618_v23 = vadd.f32 %v1691_v37, %v617_v13 }
 0x110   :  { %v501_v18 = vadd.f32 %v1443_v14, %v1691_v37  ;;  %v629_v19 = vadd.f32 %v1475_v15, %v1691_v37  ;;  %v492_v20 = vpop.f32.mrb[23].mxu0  ;;  %v620_v21 = vpop.f32.mrb[23].mxu1 }
 0x111   :  { %v493_v24 = vadd.f32 %v1691_v37, %v492_v20  ;;  %v621_v25 = vadd.f32 %v1691_v37, %v620_v21 }
 0x112   :  { %v1243_v26 = vpack.c.bf16 %v501_v18, %v498_v16  ;;  %v1323_v27 = vpack.c.bf16 %v629_v19, %v626_v17 }
 0x113   :  { %v1238_v28 = vpack.c.bf16 %v493_v24, %v490_v22  ;;  %v1318_v29 = vpack.c.bf16 %v621_v25, %v618_v23 }
 0x114   :  { %1355 = vst [vmem:[%s1856_s3 + $0x58] sm:$0xff] %v1243_v26   ;;  %1371 = vst [vmem:[%s1856_s3 + $0xd8] sm:$0xff] %v1323_v27  }
 0x115   :  { %1354 = vst [vmem:[%s1856_s3 + $0x50] sm:$0xff] %v1238_v28   ;;  %1370 = vst [vmem:[%s1856_s3 + $0xd0] sm:$0xff] %v1318_v29   ;;  %v1446_v30 = vpop.f32.mrb[24].mxu0  ;;  %v1478_v31 = vpop.f32.mrb[24].mxu1 }
 0x116   :  { %v505_v32 = vpop.f32.mrb[25].mxu0  ;;  %v633_v33 = vpop.f32.mrb[25].mxu1  ;;  %v514_v36 = vadd.f32 %v1446_v30, %v1691_v37  ;;  %v642_v38 = vadd.f32 %v1478_v31, %v1691_v37 }
 0x117   :  { %v1447_v34 = vpop.f32.mrb[26].mxu0  ;;  %v1479_v35 = vpop.f32.mrb[26].mxu1  ;;  %v506_v43 = vadd.f32 %v1691_v37, %v505_v32  ;;  %v634_v44 = vadd.f32 %v1691_v37, %v633_v33 }
 0x118   :  { %v517_v39 = vadd.f32 %v1447_v34, %v1691_v37  ;;  %v645_v40 = vadd.f32 %v1479_v35, %v1691_v37  ;;  %v508_v41 = vpop.f32.mrb[27].mxu0  ;;  %v636_v42 = vpop.f32.mrb[27].mxu1 }
 0x119   :  { %v509_v45 = vadd.f32 %v1691_v37, %v508_v41  ;;  %v637_v46 = vadd.f32 %v1691_v37, %v636_v42 }
 0x11a   :  { %v1253_v47 = vpack.c.bf16 %v517_v39, %v514_v36  ;;  %v1333_v48 = vpack.c.bf16 %v645_v40, %v642_v38 }
 0x11b   :  { %v1248_v49 = vpack.c.bf16 %v509_v45, %v506_v43  ;;  %v1328_v50 = vpack.c.bf16 %v637_v46, %v634_v44 }
 0x11c   :  { %1357 = vst [vmem:[%s1856_s3 + $0x68] sm:$0xff] %v1253_v47   ;;  %1373 = vst [vmem:[%s1856_s3 + $0xe8] sm:$0xff] %v1333_v48  }
 0x11d   :  { %1356 = vst [vmem:[%s1856_s3 + $0x60] sm:$0xff] %v1248_v49   ;;  %1372 = vst [vmem:[%s1856_s3 + $0xe0] sm:$0xff] %v1328_v50   ;;  %v1450_v51 = vpop.f32.mrb[28].mxu0  ;;  %v1482_v52 = vpop.f32.mrb[28].mxu1 }
 0x11e   :  { %v521_v53 = vpop.f32.mrb[29].mxu0  ;;  %v649_v54 = vpop.f32.mrb[29].mxu1  ;;  %v530_v57 = vadd.f32 %v1450_v51, %v1691_v37  ;;  %v658_v58 = vadd.f32 %v1482_v52, %v1691_v37 }
 0x11f   :  { %v1451_v55 = vpop.f32.mrb[30].mxu0  ;;  %v1483_v56 = vpop.f32.mrb[30].mxu1  ;;  %v522_v63 = vadd.f32 %v1691_v37, %v521_v53  ;;  %v650_v0 = vadd.f32 %v1691_v37, %v649_v54 }
 0x120   :  { %v533_v59 = vadd.f32 %v1451_v55, %v1691_v37  ;;  %v661_v60 = vadd.f32 %v1483_v56, %v1691_v37  ;;  %v524_v61 = vpop.f32.mrb[31].mxu0  ;;  %v652_v62 = vpop.f32.mrb[31].mxu1 }
 0x121   :  { %v525_v1 = vadd.f32 %v1691_v37, %v524_v61  ;;  %v653_v2 = vadd.f32 %v1691_v37, %v652_v62 }
 0x122   :  { %v1263_v3 = vpack.c.bf16 %v533_v59, %v530_v57  ;;  %v1343_v4 = vpack.c.bf16 %v661_v60, %v658_v58 }
 0x123   :  { %v1258_v5 = vpack.c.bf16 %v525_v1, %v522_v63  ;;  %v1338_v6 = vpack.c.bf16 %v653_v2, %v650_v0 }
 0x124   :  { %1359 = vst [vmem:[%s1856_s3 + $0x78] sm:$0xff] %v1263_v3   ;;  %1375 = vst [vmem:[%s1856_s3 + $0xf8] sm:$0xff] %v1343_v4  }
 0x125   :  { %1358 = vst [vmem:[%s1856_s3 + $0x70] sm:$0xff] %v1258_v5   ;;  %1374 = vst [vmem:[%s1856_s3 + $0xf0] sm:$0xff] %v1338_v6  }

// kernel: unet_generator.11
= control target key start
LH: loop header
LB: loop body
LE: loop exit
PB: predicated region body
PF: predicated region fallthrough
CT: control target
= control target key end

     0   :  { %s757_s1 = inlined_call_operand.vmem [shape: bf16[128,128], index: 1, kind: input, shape index: {}]   ;;  %s758_s0 = inlined_call_operand.vmem [shape: bf16[128,128], index: 0, kind: input, shape index: {}]   ;;  %s759_s2 = inlined_call_operand.vmem [shape: f32[1,128], index: 2, kind: input, shape index: {}]   ;;  %s760_s3 = inlined_call_operand.vmem [shape: bf16[128,128], index: 3, kind: output, shape index: {0}]   ;;  %s761_s4 = inlined_call_operand.vmem [shape: f32[1,2,128], index: 4, kind: output, shape index: {1}]  }
   0x1   :  { %v607_v0 = vld [vmem:[%s757_s1] sm:$0xff]   ;;  %v608_v1 = vld [vmem:[%s757_s1 + $0x8] sm:$0xff]   ;;  %v609_v2 = vld [vmem:[%s757_s1 + $0x10] sm:$0xff]  }
   0x2   :  { %559 = vmatprep.subr.bf16.mxu0 %v607_v0  ;;  %591 = vmatprep.subr.bf16.mxu1 %v607_v0  ;;  %v610_v3 = vld [vmem:[%s757_s1 + $0x18] sm:$0xff]   ;;  %v18_v4 = vld [vmem:[%s758_s0] sm:$0xf]  ;;  %v19_v5 = vld [vmem:[%s758_s0 + $0x4] sm:$0xf] }
   0x3   :  { %560 = vmatpush3.bf16.msra.mxu0 %v607_v0  ;;  %599 = vmatpush3.bf16.msra.mxu1 %v607_v0  ;;  %vm34_vm0 = vcmp.ge.bf16.partialorder %v18_v4, 0  ;;  %vm35_vm1 = vcmp.ge.bf16.partialorder %v19_v5, 0  ;;  %v50_v6 = vmul.bf16 1045249613, %v18_v4  ;;  %v51_v7 = vmul.bf16 1045249613, %v19_v5 }
   0x4   :  { %561 = vmatprep.subr.bf16.mxu0 %v608_v1  ;;  %592 = vmatprep.subr.bf16.mxu1 %v608_v1  ;;  %v611_v10 = vld [vmem:[%s757_s1 + $0x20] sm:$0xff]   ;;  %v20_v12 = vld [vmem:[%s758_s0 + $0x8] sm:$0xf]  ;;  %v613_v19 = vld [vmem:[%s757_s1 + $0x30] sm:$0xff]  }
   0x5   :  { %v66_v8 = vsel %vm34_vm0, %v18_v4, %v50_v6  ;;  %v67_v9 = vsel %vm35_vm1, %v19_v5, %v51_v7  ;;  %v26_v13 = vld [vmem:[%s758_s0 + $0x20] sm:$0xf]  ;;  %v612_v14 = vld [vmem:[%s757_s1 + $0x28] sm:$0xff]   ;;  %v27_v15 = vld [vmem:[%s758_s0 + $0x24] sm:$0xf]  ;;  %vm36_vm4 = vcmp.ge.bf16.partialorder %v20_v12, 0 }
   0x6   :  { %v448_v11 = vcombine.low %v66_v8, %v67_v9  ;;  %vm42_vm2 = vcmp.ge.bf16.partialorder %v26_v13, 0  ;;  %v58_v16 = vmul.bf16 1045249613, %v26_v13  ;;  %vm43_vm3 = vcmp.ge.bf16.partialorder %v27_v15, 0  ;;  %v21_v20 = vld [vmem:[%s758_s0 + $0xc] sm:$0xf] }
   0x7   :  { %562 = vmatpush3.bf16.msra.mxu0 %v608_v1  ;;  %600 = vmatpush3.bf16.msra.mxu1 %v608_v1  ;;  %v59_v17 = vmul.bf16 1045249613, %v27_v15  ;;  %v22_v21 = vld [vmem:[%s758_s0 + $0x10] sm:$0xf]  ;;  %v23_v23 = vld [vmem:[%s758_s0 + $0x14] sm:$0xf] }
   0x8   :  { %563 = vmatprep.subr.bf16.mxu0 %v609_v2  ;;  %593 = vmatprep.subr.bf16.mxu1 %v609_v2  ;;  %v74_v18 = vsel %vm42_vm2, %v26_v13, %v58_v16  ;;  %v28_v25 = vld [vmem:[%s758_s0 + $0x28] sm:$0xf]  ;;  %v29_v26 = vld [vmem:[%s758_s0 + $0x2c] sm:$0xf]  ;;  %v52_v27 = vmul.bf16 1045249613, %v20_v12 }
   0x9   :  { %575 = vmatprep.mubr.bf16.mxu0 %v448_v11  ;;  %v75_v22 = vsel %vm43_vm3, %v27_v15, %v59_v17  ;;  %v30_v28 = vld [vmem:[%s758_s0 + $0x30] sm:$0xf]  ;;  %v31_v29 = vld [vmem:[%s758_s0 + $0x34] sm:$0xf]  ;;  %v614_v30 = vld [vmem:[%s757_s1 + $0x38] sm:$0xff]   ;;  %vm37_vm5 = vcmp.ge.bf16.partialorder %v21_v20, 0 }
   0xa   :  { %v452_v24 = vcombine.low %v74_v18, %v75_v22  ;;  %v53_v31 = vmul.bf16 1045249613, %v21_v20  ;;  %vm38_vm6 = vcmp.ge.bf16.partialorder %v22_v21, 0  ;;  %v54_v32 = vmul.bf16 1045249613, %v22_v21 }
   0xb   :  { %564 = vmatpush3.bf16.msra.mxu0 %v609_v2  ;;  %601 = vmatpush3.bf16.msra.mxu1 %v609_v2  ;;  %v55_v33 = vmul.bf16 1045249613, %v23_v23  ;;  %v60_v34 = vmul.bf16 1045249613, %v28_v25  ;;  %v61_v35 = vmul.bf16 1045249613, %v29_v26  ;;  %v68_v38 = vsel %vm36_vm4, %v20_v12, %v52_v27 }
   0xc   :  { %565 = vmatprep.subr.bf16.mxu0 %v610_v3  ;;  %594 = vmatprep.subr.bf16.mxu1 %v610_v3  ;;  %vm44_vm7 = vcmp.ge.bf16.partialorder %v28_v25, 0  ;;  %vm45_vm8 = vcmp.ge.bf16.partialorder %v29_v26, 0  ;;  %v62_v36 = vmul.bf16 1045249613, %v30_v28  ;;  %v63_v37 = vmul.bf16 1045249613, %v31_v29 }
   0xd   :  { %583 = vmatprep.mubr.bf16.mxu1 %v452_v24  ;;  %vm39_vm9 = vcmp.ge.bf16.partialorder %v23_v23, 0  ;;  %vm46_vm10 = vcmp.ge.bf16.partialorder %v30_v28, 0  ;;  %vm47_vm11 = vcmp.ge.bf16.partialorder %v31_v29, 0  ;;  %v69_v39 = vsel %vm37_vm5, %v21_v20, %v53_v31  ;;  %v24_v41 = vld [vmem:[%s758_s0 + $0x18] sm:$0xf] }
   0xe   :  { %v70_v40 = vsel %vm38_vm6, %v22_v21, %v54_v32  ;;  %v25_v42 = vld [vmem:[%s758_s0 + $0x1c] sm:$0xf]  ;;  %v76_v43 = vsel %vm44_vm7, %v28_v25, %v60_v34  ;;  %v77_v44 = vsel %vm45_vm8, %v29_v26, %v61_v35  ;;  %v71_v45 = vsel %vm39_vm9, %v23_v23, %v55_v33  ;;  %v32_v48 = vld [vmem:[%s758_s0 + $0x38] sm:$0xf]  ;;  %v447_v0 = vld [vmem:[%s759_s2] ss:$0 sm:$0xff] }
   0xf   :  { %566 = vmatpush3.bf16.msra.mxu0 %v610_v3  ;;  %602 = vmatpush3.bf16.msra.mxu1 %v610_v3  ;;  %v78_v46 = vsel %vm46_vm10, %v30_v28, %v62_v36  ;;  %v79_v47 = vsel %vm47_vm11, %v31_v29, %v63_v37  ;;  %v33_v49 = vld [vmem:[%s758_s0 + $0x3c] sm:$0xf]  ;;  %v449_v50 = vcombine.low %v68_v38, %v69_v39  ;;  %vm40_vm12 = vcmp.ge.bf16.partialorder %v24_v41, 0 }
  0x10   :  { %567 = vmatprep.subr.bf16.mxu0 %v611_v10  ;;  %595 = vmatprep.subr.bf16.mxu1 %v611_v10  ;;  %v56_v51 = vmul.bf16 1045249613, %v24_v41  ;;  %v57_v52 = vmul.bf16 1045249613, %v25_v42  ;;  %v453_v53 = vcombine.low %v76_v43, %v77_v44  ;;  %v450_v54 = vcombine.low %v70_v40, %v71_v45 }
  0x11   :  { %v454_v55 = vcombine.low %v78_v46, %v79_v47  ;;  %v64_v56 = vmul.bf16 1045249613, %v32_v48  ;;  %v65_v57 = vmul.bf16 1045249613, %v33_v49  ;;  %vm41_vm13 = vcmp.ge.bf16.partialorder %v25_v42, 0 }
  0x12   :  { %vm48_vm14 = vcmp.ge.bf16.partialorder %v32_v48, 0  ;;  %vm49_vm15 = vcmp.ge.bf16.partialorder %v33_v49, 0  ;;  %v72_v58 = vsel %vm40_vm12, %v24_v41, %v56_v51  ;;  %v73_v59 = vsel %vm41_vm13, %v25_v42, %v57_v52 }
  0x13   :  { %568 = vmatpush3.bf16.msra.mxu0 %v611_v10  ;;  %603 = vmatpush3.bf16.msra.mxu1 %v611_v10  ;;  %v80_v60 = vsel %vm48_vm14, %v32_v48, %v64_v56  ;;  %v81_v61 = vsel %vm49_vm15, %v33_v49, %v65_v57  ;;  %v451_v62 = vcombine.low %v72_v58, %v73_v59  ;;  %vm356_vm0 = vcmask 1040384  }
  0x14   :  { %569 = vmatprep.subr.bf16.mxu0 %v612_v14  ;;  %596 = vmatprep.subr.bf16.mxu1 %v612_v14  ;;  %v455_v63 = vcombine.low %v80_v60, %v81_v61 }
  0x17   :  { %570 = vmatpush3.bf16.msra.mxu0 %v612_v14  ;;  %604 = vmatpush3.bf16.msra.mxu1 %v612_v14 }
  0x18   :  { %571 = vmatprep.subr.bf16.mxu0 %v613_v19  ;;  %597 = vmatprep.subr.bf16.mxu1 %v613_v19 }
  0x1b   :  { %572 = vmatpush3.bf16.msra.mxu0 %v613_v19  ;;  %605 = vmatpush3.bf16.msra.mxu1 %v613_v19 }
  0x1c   :  { %573 = vmatprep.subr.bf16.mxu0 %v614_v30  ;;  %598 = vmatprep.subr.bf16.mxu1 %v614_v30 }
  0x1f   :  { %574 = vmatpush3.bf16.msra.mxu0 %v614_v30  ;;  %606 = vmatpush3.bf16.msra.mxu1 %v614_v30 }
  0x22   :  { %576 = vmatmul.mubr.bf16.vlgmr.msra.gmra.mrb[0].mxu0 %v449_v50  ;;  %584 = vmatmul.mubr.bf16.vlgmr.msra.gmra.mrb[0].mxu1 %v453_v53 }
  0x23   :  { %579 = vmatprep.mubr.bf16.mxu0 %v450_v54  ;;  %587 = vmatprep.mubr.bf16.mxu1 %v454_v55 }
  0x2a   :  { %580 = vmatmul.mubr.bf16.gmra.mrb[4].mxu0 %v451_v62  ;;  %588 = vmatmul.mubr.bf16.gmra.mrb[4].mxu1 %v455_v63 }
  0xf5   :  { %v577_v1 = vpop.f32.mrb[0].mxu0  ;;  %v585_v2 = vpop.f32.mrb[0].mxu1 }
  0xf6   :  { %v235_v3 = vpop.f32.mrb[1].mxu0  ;;  %v718_v4 = vadd.f32 %v585_v2, %v447_v0  ;;  %v267_v5 = vpop.f32.mrb[1].mxu1  ;;  %v244_v9 = vadd.f32 %v577_v1, %v447_v0 }
  0xf7   :  { %v236_v6 = vadd.f32 %v447_v0, %v235_v3  ;;  %v578_v7 = vpop.f32.mrb[2].mxu0  ;;  %v586_v8 = vpop.f32.mrb[2].mxu1  ;;  %v268_v12 = vadd.f32 %v447_v0, %v267_v5 }
  0xf8   :  { %v247_v10 = vadd.f32 %v578_v7, %v447_v0  ;;  %v238_v11 = vpop.f32.mrb[3].mxu0  ;;  %v720_v13 = vadd.f32 %v586_v8, %v447_v0  ;;  %v270_v14 = vpop.f32.mrb[3].mxu1  ;;  %v321_v24 = vmul.f32 %v244_v9, %v244_v9  ;;  %v329_v5 = vmul.f32 %v718_v4, %v718_v4 }
  0xf9   :  { %v239_v15 = vadd.f32 %v447_v0, %v238_v11  ;;  %v271_v16 = vadd.f32 %v447_v0, %v270_v14  ;;  %v319_v19 = vmul.f32 %v236_v6, %v236_v6  ;;  %v327_v62 = vmul.f32 %v268_v12, %v268_v12 }
  0xfa   :  { %v504_v17 = vpack.c.bf16 %v247_v10, %v244_v9  ;;  %v524_v18 = vpack.c.bf16 %v720_v13, %v718_v4  ;;  %v322_v31 = vmul.f32 %v247_v10, %v247_v10  ;;  %v330_v8 = vmul.f32 %v720_v13, %v720_v13 }
  0xfb   :  { %v298_v20 = vadd.f32 %v239_v15, %v236_v6  ;;  %v320_v21 = vmul.f32 %v239_v15, %v239_v15  ;;  %v499_v22 = vpack.c.bf16 %v239_v15, %v236_v6  ;;  %v519_v23 = vpack.c.bf16 %v271_v16, %v268_v12 }
  0xfc   :  { %536 = vst [vmem:[%s760_s3 + $0x8] sm:$0xff] %v504_v17   ;;  %540 = vst [vmem:[%s760_s3 + $0x28] sm:$0xff] %v524_v18   ;;  %v328_v3 = vmul.f32 %v271_v16, %v271_v16 }
  0xfd   :  { %v299_v25 = vadd.f32 %v298_v20, %v244_v9  ;;  %v335_v26 = vadd.f32 %v320_v21, %v319_v19  ;;  %500 = vst [vmem:[%s760_s3] sm:$0xff] %v499_v22   ;;  %v581_v27 = vpop.f32.mrb[4].mxu0  ;;  %v589_v28 = vpop.f32.mrb[4].mxu1  ;;  %539 = vst [vmem:[%s760_s3 + $0x20] sm:$0xff] %v519_v23  }
  0xfe   :  { %v251_v29 = vpop.f32.mrb[5].mxu0  ;;  %v283_v30 = vpop.f32.mrb[5].mxu1  ;;  %v260_v37 = vadd.f32 %v581_v27, %v447_v0  ;;  %v292_v40 = vadd.f32 %v589_v28, %v447_v0 }
  0xff   :  { %v336_v32 = vadd.f32 %v335_v26, %v321_v24  ;;  %v252_v33 = vadd.f32 %v447_v0, %v251_v29  ;;  %v300_v34 = vadd.f32 %v299_v25, %v247_v10  ;;  %v582_v35 = vpop.f32.mrb[6].mxu0  ;;  %v590_v36 = vpop.f32.mrb[6].mxu1  ;;  %v284_v48 = vadd.f32 %v447_v0, %v283_v30 }
 0x100   :  { %v263_v38 = vadd.f32 %v582_v35, %v447_v0  ;;  %v254_v39 = vpop.f32.mrb[7].mxu0  ;;  %v295_v41 = vadd.f32 %v590_v36, %v447_v0  ;;  %v286_v42 = vpop.f32.mrb[7].mxu1  ;;  %v325_v55 = vmul.f32 %v260_v37, %v260_v37  ;;  %v333_v19 = vmul.f32 %v292_v40, %v292_v40 }
 0x101   :  { %v301_v43 = vadd.f32 %v300_v34, %v252_v33  ;;  %v323_v44 = vmul.f32 %v252_v33, %v252_v33  ;;  %v337_v45 = vadd.f32 %v336_v32, %v322_v31  ;;  %v255_v46 = vadd.f32 %v447_v0, %v254_v39 }
 0x102   :  { %v514_v47 = vpack.c.bf16 %v263_v38, %v260_v37  ;;  %v534_v53 = vpack.c.bf16 %v295_v41, %v292_v40  ;;  %v287_v54 = vadd.f32 %v447_v0, %v286_v42  ;;  %v326_v59 = vmul.f32 %v263_v38, %v263_v38 }
 0x103   :  { %v338_v49 = vadd.f32 %v337_v45, %v323_v44  ;;  %v302_v50 = vadd.f32 %v301_v43, %v255_v46  ;;  %v324_v51 = vmul.f32 %v255_v46, %v255_v46  ;;  %v509_v52 = vpack.c.bf16 %v255_v46, %v252_v33 }
 0x104   :  { %538 = vst [vmem:[%s760_s3 + $0x18] sm:$0xff] %v514_v47   ;;  %542 = vst [vmem:[%s760_s3 + $0x38] sm:$0xff] %v534_v53   ;;  %v529_v58 = vpack.c.bf16 %v287_v54, %v284_v48  ;;  %v331_v11 = vmul.f32 %v284_v48, %v284_v48  ;;  %v332_v18 = vmul.f32 %v287_v54, %v287_v54 }
 0x105   :  { %v303_v56 = vadd.f32 %v302_v50, %v260_v37  ;;  %v339_v57 = vadd.f32 %v338_v49, %v324_v51  ;;  %537 = vst [vmem:[%s760_s3 + $0x10] sm:$0xff] %v509_v52   ;;  %v334_v21 = vmul.f32 %v295_v41, %v295_v41 }
 0x106   :  { %541 = vst [vmem:[%s760_s3 + $0x30] sm:$0xff] %v529_v58  }
 0x107   :  { %v340_v60 = vadd.f32 %v339_v57, %v325_v55  ;;  %v304_v61 = vadd.f32 %v303_v56, %v263_v38 }
 0x109   :  { %v305_v63 = vadd.f32 %v304_v61, %v268_v12  ;;  %v341_v0 = vadd.f32 %v340_v60, %v326_v59 }
 0x10b   :  { %v342_v1 = vadd.f32 %v341_v0, %v327_v62  ;;  %v306_v2 = vadd.f32 %v305_v63, %v271_v16 }
 0x10d   :  { %v307_v6 = vadd.f32 %v306_v2, %v718_v4  ;;  %v343_v7 = vadd.f32 %v342_v1, %v328_v3 }
 0x10f   :  { %v344_v9 = vadd.f32 %v343_v7, %v329_v5  ;;  %v308_v10 = vadd.f32 %v307_v6, %v720_v13 }
 0x111   :  { %v309_v14 = vadd.f32 %v308_v10, %v284_v48  ;;  %v345_v15 = vadd.f32 %v344_v9, %v330_v8 }
 0x113   :  { %v346_v12 = vadd.f32 %v345_v15, %v331_v11  ;;  %v310_v17 = vadd.f32 %v309_v14, %v287_v54 }
 0x115   :  { %v311_v16 = vadd.f32 %v310_v17, %v292_v40  ;;  %v347_v20 = vadd.f32 %v346_v12, %v332_v18 }
 0x117   :  { %v312_v22 = vadd.f32 %v311_v16, %v295_v41  ;;  %v348_v23 = vadd.f32 %v347_v20, %v333_v19 }
 0x119   :  { %v313_v4 = vrot.slane %v312_v22, 4  ;;  %v349_v24 = vadd.f32 %v348_v23, %v334_v21 }
 0x11b   :  { %v314_v25 = vadd.f32 %v313_v4, %v312_v22  ;;  %v350_v26 = vrot.slane %v349_v24, 4 }
 0x11d   :  { %v315_v27 = vrot.slane %v314_v25, 2  ;;  %v351_v28 = vadd.f32 %v350_v26, %v349_v24 }
 0x11f   :  { %v316_v29 = vadd.f32 %v315_v27, %v314_v25  ;;  %v352_v13 = vrot.slane %v351_v28, 2 }
 0x121   :  { %v317_v30 = vrot.slane %v316_v29, 1  ;;  %v353_v31 = vadd.f32 %v352_v13, %v351_v28 }
 0x123   :  { %v354_v32 = vrot.slane %v353_v31, 1  ;;  %v318_v33 = vadd.f32 %v317_v30, %v316_v29 }
 0x125   :  { %v355_v34 = vadd.f32 %v354_v32, %v353_v31 }
 0x127   :  { %v357_v35 = vsel %vm356_vm0, %v318_v33, %v355_v34 }
 0x128   :  { %358 = vst [vmem:[%s761_s4] sm:$0x3] %v357_v35 }

// kernel: unet_generator.12
= control target key start
LH: loop header
LB: loop body
LE: loop exit
PB: predicated region body
PF: predicated region fallthrough
CT: control target
= control target key end

     0   :  { %vm260_vm4 = vcmask 1040384   ;;  %s488_s1 = inlined_call_operand.vmem [shape: bf16[256,128], index: 1, kind: input, shape index: {}]   ;;  %s489_s0 = inlined_call_operand.vmem [shape: bf16[32,256], index: 0, kind: input, shape index: {}]   ;;  %s490_s2 = inlined_call_operand.vmem [shape: f32[1,128], index: 2, kind: input, shape index: {}]   ;;  %s491_s3 = inlined_call_operand.vmem [shape: bf16[32,128], index: 3, kind: output, shape index: {0}]   ;;  %s492_s4 = inlined_call_operand.vmem [shape: f32[1,2,128], index: 4, kind: output, shape index: {1}]  }
   0x1   :  { %v375_v0 = vld [vmem:[%s488_s1 + $0x40] sm:$0xff]   ;;  %v377_v2 = vld [vmem:[%s488_s1 + $0x48] sm:$0xff]   ;;  %v379_v4 = vld [vmem:[%s488_s1 + $0x50] sm:$0xff]  }
   0x2   :  { %v376_v1 = vld [vmem:[%s488_s1] sm:$0xff]   ;;  %331 = vmatprep.subr.bf16.mxu0 %v375_v0  ;;  %359 = vmatprep.subr.bf16.mxu1 %v375_v0  ;;  %v378_v3 = vld [vmem:[%s488_s1 + $0x8] sm:$0xff]   ;;  %v380_v5 = vld [vmem:[%s488_s1 + $0x10] sm:$0xff]  }
   0x3   :  { %332 = vmatpush3.bf16.msra.mxu0 %v376_v1  ;;  %367 = vmatpush3.bf16.msra.mxu1 %v376_v1  ;;  %v381_v6 = vld [vmem:[%s488_s1 + $0x58] sm:$0xff]   ;;  %v383_v8 = vld [vmem:[%s488_s1 + $0x60] sm:$0xff]   ;;  %v385_v10 = vld [vmem:[%s488_s1 + $0x68] sm:$0xff]  }
   0x4   :  { %333 = vmatprep.subr.bf16.mxu0 %v377_v2  ;;  %360 = vmatprep.subr.bf16.mxu1 %v377_v2  ;;  %v382_v7 = vld [vmem:[%s488_s1 + $0x18] sm:$0xff]   ;;  %v384_v9 = vld [vmem:[%s488_s1 + $0x20] sm:$0xff]   ;;  %v19_v12 = vld [vmem:[%s489_s0 + $0x8] sm:$0xff] }
   0x5   :  { %v18_v11 = vld [vmem:[%s489_s0] sm:$0xff]  ;;  %v20_v13 = vld [vmem:[%s489_s0 + $0x10] sm:$0xff]  ;;  %vm23_vm1 = vcmp.ge.bf16.partialorder %v19_v12, 0  ;;  %v27_v15 = vmul.bf16 1045249613, %v19_v12  ;;  %v21_v16 = vld [vmem:[%s489_s0 + $0x18] sm:$0xff] }
   0x6   :  { %vm22_vm0 = vcmp.ge.bf16.partialorder %v18_v11, 0  ;;  %v26_v14 = vmul.bf16 1045249613, %v18_v11  ;;  %vm24_vm2 = vcmp.ge.bf16.partialorder %v20_v13, 0  ;;  %v28_v17 = vmul.bf16 1045249613, %v20_v13 }
   0x7   :  { %334 = vmatpush3.bf16.msra.mxu0 %v378_v3  ;;  %368 = vmatpush3.bf16.msra.mxu1 %v378_v3  ;;  %v386_v18 = vld [vmem:[%s488_s1 + $0x28] sm:$0xff]   ;;  %v31_v20 = vsel %vm23_vm1, %v19_v12, %v27_v15  ;;  %vm25_vm3 = vcmp.ge.bf16.partialorder %v21_v16, 0  ;;  %v29_v21 = vmul.bf16 1045249613, %v21_v16  ;;  %v387_v22 = vld [vmem:[%s488_s1 + $0x70] sm:$0xff]   ;;  %v389_v28 = vld [vmem:[%s488_s1 + $0x78] sm:$0xff]  }
   0x8   :  { %335 = vmatprep.subr.bf16.mxu0 %v379_v4  ;;  %361 = vmatprep.subr.bf16.mxu1 %v379_v4  ;;  %v30_v19 = vsel %vm22_vm0, %v18_v11, %v26_v14  ;;  %v32_v24 = vsel %vm24_vm2, %v20_v13, %v28_v17  ;;  %v388_v27 = vld [vmem:[%s488_s1 + $0x30] sm:$0xff]   ;;  %v390_v29 = vld [vmem:[%s488_s1 + $0x38] sm:$0xff]   ;;  %v291_v34 = vld [vmem:[%s490_s2] ss:$0 sm:$0xff] }
   0x9   :  { %v293_v23 = vcombine.high %v30_v19, %v31_v20  ;;  %v33_v25 = vsel %vm25_vm3, %v21_v16, %v29_v21  ;;  %v292_v30 = vcombine.low %v30_v19, %v31_v20 }
   0xa   :  { %v295_v26 = vcombine.high %v32_v24, %v33_v25  ;;  %v294_v31 = vcombine.low %v32_v24, %v33_v25 }
   0xb   :  { %336 = vmatpush3.bf16.msra.mxu0 %v380_v5  ;;  %369 = vmatpush3.bf16.msra.mxu1 %v380_v5 }
   0xc   :  { %337 = vmatprep.subr.bf16.mxu0 %v381_v6  ;;  %362 = vmatprep.subr.bf16.mxu1 %v381_v6 }
   0xd   :  { %221 = vmatprep.mubr.bf16.mxu0 %v293_v23  ;;  %229 = vmatprep.mubr.bf16.mxu1 %v295_v26 }
   0xf   :  { %338 = vmatpush3.bf16.msra.mxu0 %v382_v7  ;;  %370 = vmatpush3.bf16.msra.mxu1 %v382_v7 }
  0x10   :  { %339 = vmatprep.subr.bf16.mxu0 %v383_v8  ;;  %363 = vmatprep.subr.bf16.mxu1 %v383_v8 }
  0x13   :  { %340 = vmatpush3.bf16.msra.mxu0 %v384_v9  ;;  %371 = vmatpush3.bf16.msra.mxu1 %v384_v9 }
  0x14   :  { %341 = vmatprep.subr.bf16.mxu0 %v385_v10  ;;  %364 = vmatprep.subr.bf16.mxu1 %v385_v10 }
  0x17   :  { %342 = vmatpush3.bf16.msra.mxu0 %v386_v18  ;;  %372 = vmatpush3.bf16.msra.mxu1 %v386_v18 }
  0x18   :  { %343 = vmatprep.subr.bf16.mxu0 %v387_v22  ;;  %365 = vmatprep.subr.bf16.mxu1 %v387_v22 }
  0x1b   :  { %344 = vmatpush3.bf16.msra.mxu0 %v388_v27  ;;  %373 = vmatpush3.bf16.msra.mxu1 %v388_v27 }
  0x1c   :  { %345 = vmatprep.subr.bf16.mxu0 %v389_v28  ;;  %366 = vmatprep.subr.bf16.mxu1 %v389_v28 }
  0x1f   :  { %346 = vmatpush3.bf16.msra.mxu0 %v390_v29  ;;  %374 = vmatpush3.bf16.msra.mxu1 %v390_v29 }
  0x22   :  { %222 = vmatmul.mubr.bf16.vlgmr.msra.gmra.mrb[0].mxu0 %v292_v30  ;;  %230 = vmatmul.mubr.bf16.vlgmr.msra.gmra.mrb[0].mxu1 %v294_v31 }
  0xf5   :  { %v347_v32 = vpop.f32.mrb[0].mxu0  ;;  %v353_v33 = vpop.f32.mrb[0].mxu1 }
  0xf6   :  { %v348_v35 = vpop.f32.mrb[1].mxu0  ;;  %v354_v36 = vpop.f32.mrb[1].mxu1 }
  0xf7   :  { %v349_v37 = vadd.f32 %v348_v35, %v347_v32  ;;  %v350_v38 = vpop.f32.mrb[2].mxu0  ;;  %v355_v39 = vadd.f32 %v354_v36, %v353_v33  ;;  %v356_v40 = vpop.f32.mrb[2].mxu1 }
  0xf8   :  { %v351_v41 = vpop.f32.mrb[3].mxu0  ;;  %v357_v42 = vpop.f32.mrb[3].mxu1 }
  0xf9   :  { %v224_v43 = vadd.f32 %v349_v37, %v291_v34  ;;  %v232_v44 = vadd.f32 %v355_v39, %v291_v34  ;;  %v352_v45 = vadd.f32 %v351_v41, %v350_v38  ;;  %v358_v46 = vadd.f32 %v357_v42, %v356_v40 }
  0xfb   :  { %v227_v47 = vadd.f32 %v352_v45, %v291_v34  ;;  %v235_v48 = vadd.f32 %v358_v46, %v291_v34  ;;  %v247_v49 = vmul.f32 %v224_v43, %v224_v43  ;;  %v249_v50 = vmul.f32 %v232_v44, %v232_v44 }
  0xfd   :  { %v238_v51 = vadd.f32 %v227_v47, %v224_v43  ;;  %v248_v52 = vmul.f32 %v227_v47, %v227_v47  ;;  %v323_v53 = vpack.c.bf16 %v227_v47, %v224_v43  ;;  %v328_v54 = vpack.c.bf16 %v235_v48, %v232_v44 }
  0xfe   :  { %v250_v58 = vmul.f32 %v235_v48, %v235_v48 }
  0xff   :  { %v251_v55 = vadd.f32 %v248_v52, %v247_v49  ;;  %324 = vst [vmem:[%s491_s3] sm:$0xff] %v323_v53   ;;  %v239_v56 = vadd.f32 %v238_v51, %v232_v44  ;;  %330 = vst [vmem:[%s491_s3 + $0x8] sm:$0xff] %v328_v54  }
 0x101   :  { %v240_v57 = vadd.f32 %v239_v56, %v235_v48  ;;  %v252_v59 = vadd.f32 %v251_v55, %v249_v50 }
 0x103   :  { %v241_v60 = vrot.slane %v240_v57, 4  ;;  %v253_v61 = vadd.f32 %v252_v59, %v250_v58 }
 0x105   :  { %v242_v62 = vadd.f32 %v241_v60, %v240_v57  ;;  %v254_v63 = vrot.slane %v253_v61, 4 }
 0x107   :  { %v243_v0 = vrot.slane %v242_v62, 2  ;;  %v255_v1 = vadd.f32 %v254_v63, %v253_v61 }
 0x109   :  { %v244_v2 = vadd.f32 %v243_v0, %v242_v62  ;;  %v256_v3 = vrot.slane %v255_v1, 2 }
 0x10b   :  { %v245_v4 = vrot.slane %v244_v2, 1  ;;  %v257_v5 = vadd.f32 %v256_v3, %v255_v1 }
 0x10d   :  { %v258_v6 = vrot.slane %v257_v5, 1  ;;  %v246_v7 = vadd.f32 %v245_v4, %v244_v2 }
 0x10f   :  { %v259_v8 = vadd.f32 %v258_v6, %v257_v5 }
 0x111   :  { %v261_v9 = vsel %vm260_vm4, %v246_v7, %v259_v8 }
 0x112   :  { %262 = vst [vmem:[%s492_s4] sm:$0x3] %v261_v9 }

// kernel: unet_generator.13
= control target key start
LH: loop header
LB: loop body
LE: loop exit
PB: predicated region body
PF: predicated region fallthrough
CT: control target
= control target key end

     0   :  { %vm396_vm2 = vcmask 1040384   ;;  %s658_s1 = inlined_call_operand.vmem [shape: bf16[512,128], index: 1, kind: input, shape index: {}]   ;;  %s659_s0 = inlined_call_operand.vmem [shape: bf16[8,512], index: 0, kind: input, shape index: {}]   ;;  %s660_s2 = inlined_call_operand.vmem [shape: f32[1,128], index: 2, kind: input, shape index: {}]   ;;  %s661_s3 = inlined_call_operand.vmem [shape: bf16[8,128], index: 3, kind: output, shape index: {0}]   ;;  %s662_s4 = inlined_call_operand.vmem [shape: f32[1,2,128], index: 4, kind: output, shape index: {1}]  }
   0x1   :  { %v490_v0 = vld [vmem:[%s658_s1 + $0x40] sm:$0xff]   ;;  %v494_v4 = vld [vmem:[%s658_s1 + $0x48] sm:$0xff]   ;;  %v498_v8 = vld [vmem:[%s658_s1 + $0x50] sm:$0xff]  }
   0x2   :  { %v491_v1 = vld [vmem:[%s658_s1 + $0xc0] sm:$0xff]   ;;  %446 = vmatprep.subr.bf16.mxu0 %v490_v0  ;;  %v495_v5 = vld [vmem:[%s658_s1 + $0xc8] sm:$0xff]   ;;  %v499_v9 = vld [vmem:[%s658_s1 + $0xd0] sm:$0xff]  }
   0x3   :  { %v492_v2 = vld [vmem:[%s658_s1] sm:$0xff]   ;;  %468 = vmatprep.subr.bf16.mxu1 %v491_v1  ;;  %v496_v6 = vld [vmem:[%s658_s1 + $0x8] sm:$0xff]   ;;  %v500_v10 = vld [vmem:[%s658_s1 + $0x10] sm:$0xff]  }
   0x4   :  { %v493_v3 = vld [vmem:[%s658_s1 + $0x80] sm:$0xff]   ;;  %447 = vmatpush3.bf16.msra.mxu0 %v492_v2  ;;  %v497_v7 = vld [vmem:[%s658_s1 + $0x88] sm:$0xff]   ;;  %v501_v11 = vld [vmem:[%s658_s1 + $0x90] sm:$0xff]  }
   0x5   :  { %469 = vmatpush3.bf16.msra.mxu1 %v493_v3  ;;  %448 = vmatprep.subr.bf16.mxu0 %v494_v4  ;;  %v502_v12 = vld [vmem:[%s658_s1 + $0x58] sm:$0xff]   ;;  %v506_v16 = vld [vmem:[%s658_s1 + $0x60] sm:$0xff]   ;;  %v510_v20 = vld [vmem:[%s658_s1 + $0x68] sm:$0xff]  }
   0x6   :  { %470 = vmatprep.subr.bf16.mxu1 %v495_v5  ;;  %v503_v13 = vld [vmem:[%s658_s1 + $0xd8] sm:$0xff]   ;;  %v507_v17 = vld [vmem:[%s658_s1 + $0xe0] sm:$0xff]   ;;  %v511_v21 = vld [vmem:[%s658_s1 + $0xe8] sm:$0xff]  }
   0x7   :  { %v504_v14 = vld [vmem:[%s658_s1 + $0x18] sm:$0xff]   ;;  %v508_v18 = vld [vmem:[%s658_s1 + $0x20] sm:$0xff]   ;;  %v512_v22 = vld [vmem:[%s658_s1 + $0x28] sm:$0xff]  }
   0x8   :  { %449 = vmatpush3.bf16.msra.mxu0 %v496_v6  ;;  %v505_v15 = vld [vmem:[%s658_s1 + $0x98] sm:$0xff]   ;;  %v509_v19 = vld [vmem:[%s658_s1 + $0xa0] sm:$0xff]   ;;  %v513_v23 = vld [vmem:[%s658_s1 + $0xa8] sm:$0xff]  }
   0x9   :  { %471 = vmatpush3.bf16.msra.mxu1 %v497_v7  ;;  %450 = vmatprep.subr.bf16.mxu0 %v498_v8  ;;  %v514_v24 = vld [vmem:[%s658_s1 + $0x70] sm:$0xff]   ;;  %v518_v28 = vld [vmem:[%s658_s1 + $0x78] sm:$0xff]   ;;  %v18_v32 = vld [vmem:[%s659_s0] sm:$0xff] }
   0xa   :  { %472 = vmatprep.subr.bf16.mxu1 %v499_v9  ;;  %v515_v25 = vld [vmem:[%s658_s1 + $0xf0] sm:$0xff]   ;;  %v519_v29 = vld [vmem:[%s658_s1 + $0xf8] sm:$0xff]   ;;  %v19_v33 = vld [vmem:[%s659_s0 + $0x8] sm:$0xff]  ;;  %vm20_vm0 = vcmp.ge.bf16.partialorder %v18_v32, 0  ;;  %v22_v34 = vmul.bf16 1045249613, %v18_v32 }
   0xb   :  { %v516_v26 = vld [vmem:[%s658_s1 + $0x30] sm:$0xff]   ;;  %v520_v30 = vld [vmem:[%s658_s1 + $0x38] sm:$0xff]   ;;  %vm21_vm1 = vcmp.ge.bf16.partialorder %v19_v33, 0  ;;  %v23_v35 = vmul.bf16 1045249613, %v19_v33 }
   0xc   :  { %451 = vmatpush3.bf16.msra.mxu0 %v500_v10  ;;  %v517_v27 = vld [vmem:[%s658_s1 + $0xb0] sm:$0xff]   ;;  %v521_v31 = vld [vmem:[%s658_s1 + $0xb8] sm:$0xff]   ;;  %v24_v36 = vsel %vm20_vm0, %v18_v32, %v22_v34  ;;  %v409_v44 = vld [vmem:[%s660_s2] ss:$0 sm:$0xff] }
   0xd   :  { %473 = vmatpush3.bf16.msra.mxu1 %v501_v11  ;;  %452 = vmatprep.subr.bf16.mxu0 %v502_v12  ;;  %v25_v37 = vsel %vm21_vm1, %v19_v33, %v23_v35  ;;  %v410_v38 = vcombine.low %v24_v36, %v24_v36  ;;  %v411_v39 = vcombine.high %v24_v36, %v24_v36 }
   0xe   :  { %474 = vmatprep.subr.bf16.mxu1 %v503_v13  ;;  %v412_v40 = vcombine.low %v25_v37, %v25_v37  ;;  %v413_v41 = vcombine.high %v25_v37, %v25_v37 }
   0xf   :  { %335 = vmatprep.mubr.bf16.mxu0 %v411_v39 }
  0x10   :  { %453 = vmatpush3.bf16.msra.mxu0 %v504_v14  ;;  %375 = vmatprep.mubr.bf16.mxu1 %v413_v41 }
  0x11   :  { %475 = vmatpush3.bf16.msra.mxu1 %v505_v15  ;;  %454 = vmatprep.subr.bf16.mxu0 %v506_v16 }
  0x12   :  { %476 = vmatprep.subr.bf16.mxu1 %v507_v17 }
  0x14   :  { %455 = vmatpush3.bf16.msra.mxu0 %v508_v18 }
  0x15   :  { %477 = vmatpush3.bf16.msra.mxu1 %v509_v19  ;;  %456 = vmatprep.subr.bf16.mxu0 %v510_v20 }
  0x16   :  { %478 = vmatprep.subr.bf16.mxu1 %v511_v21 }
  0x18   :  { %457 = vmatpush3.bf16.msra.mxu0 %v512_v22 }
  0x19   :  { %479 = vmatpush3.bf16.msra.mxu1 %v513_v23  ;;  %458 = vmatprep.subr.bf16.mxu0 %v514_v24 }
  0x1a   :  { %480 = vmatprep.subr.bf16.mxu1 %v515_v25 }
  0x1c   :  { %459 = vmatpush3.bf16.msra.mxu0 %v516_v26 }
  0x1d   :  { %481 = vmatpush3.bf16.msra.mxu1 %v517_v27  ;;  %460 = vmatprep.subr.bf16.mxu0 %v518_v28 }
  0x1e   :  { %482 = vmatprep.subr.bf16.mxu1 %v519_v29 }
  0x20   :  { %461 = vmatpush3.bf16.msra.mxu0 %v520_v30 }
  0x21   :  { %483 = vmatpush3.bf16.msra.mxu1 %v521_v31 }
  0x23   :  { %336 = vmatmul.mubr.bf16.vlgmr.msra.gmra.mrb[0].mxu0 %v410_v38 }
  0x24   :  { %376 = vmatmul.mubr.bf16.vlgmr.msra.gmra.mrb[0].mxu1 %v412_v40 }
  0xf6   :  { %v462_v42 = vpop.f32.mrb[0].mxu0 }
  0xf7   :  { %v484_v43 = vpop.f32.mrb[0].mxu1  ;;  %v463_v45 = vpop.f32.mrb[1].mxu0 }
  0xf8   :  { %v485_v46 = vpop.f32.mrb[1].mxu1  ;;  %v464_v47 = vadd.f32 %v463_v45, %v462_v42  ;;  %v465_v49 = vpop.f32.mrb[2].mxu0 }
  0xf9   :  { %v486_v48 = vadd.f32 %v485_v46, %v484_v43  ;;  %v487_v50 = vpop.f32.mrb[2].mxu1  ;;  %v466_v51 = vpop.f32.mrb[3].mxu0 }
  0xfa   :  { %v488_v52 = vpop.f32.mrb[3].mxu1  ;;  %v338_v53 = vadd.f32 %v464_v47, %v409_v44 }
  0xfc   :  { %v378_v54 = vadd.f32 %v486_v48, %v338_v53 }
  0xfe   :  { %v383_v55 = vrot.slane %v378_v54, 4  ;;  %v389_v56 = vmul.f32 %v378_v54, %v378_v54  ;;  %v399_v57 = vpack.c.bf16 %v378_v54, %v378_v54 }
 0x100   :  { %v384_v58 = vadd.f32 %v383_v55, %v378_v54  ;;  %v390_v59 = vrot.slane %v389_v56, 4  ;;  %400 = vst [vmem:[%s661_s3] sm:$0xf] %v399_v57 }
 0x102   :  { %v385_v60 = vrot.slane %v384_v58, 2  ;;  %v391_v61 = vadd.f32 %v390_v59, %v389_v56 }
 0x104   :  { %v386_v62 = vadd.f32 %v385_v60, %v384_v58  ;;  %v392_v63 = vrot.slane %v391_v61, 2 }
 0x106   :  { %v387_v0 = vrot.slane %v386_v62, 1  ;;  %v393_v1 = vadd.f32 %v392_v63, %v391_v61 }
 0x108   :  { %v394_v2 = vrot.slane %v393_v1, 1  ;;  %v388_v3 = vadd.f32 %v387_v0, %v386_v62 }
 0x10a   :  { %v395_v4 = vadd.f32 %v394_v2, %v393_v1 }
 0x10c   :  { %v397_v5 = vsel %vm396_vm2, %v388_v3, %v395_v4 }
 0x10d   :  { %398 = vst [vmem:[%s662_s4] sm:$0x3] %v397_v5 }

// kernel: squeeze.20
= control target key start
LH: loop header
LB: loop body
LE: loop exit
PB: predicated region body
PF: predicated region fallthrough
CT: control target
= control target key end

     0   :  { %vm7_vm0 = vcmask 523264   ;;  %s39_s0 = inlined_call_operand.vmem [shape: f32[256], index: 0, kind: input, shape index: {}]   ;;  %s40_s1 = inlined_call_operand.vmem [shape: f32[4,64], index: 1, kind: output, shape index: {}]  }
   0x1   :  { %v4_v0 = vld [vmem:[%s39_s0] sm:$0x3]  ;;  %s22_s0 = smov 64  }
   0x2   :  { %5 = vst [vmem:[#allocation1] sm:$0x3] %v4_v0 }
   0x9   :  { %v9_v1 = vld [vmem:[#allocation1] sm:$0x3]  }
   0xa   :  { %v6_v2 = vld [vmem:[#allocation1] sm:$0x3]   ;;  %10 = vrot.lane.b32.xlu0 %v9_v1, %s22_s0 }
   0xb   :  { %8 = vst.msk [vmem:[#allocation0] ss:$2 sm:$0x3] %vm7_vm0, %v6_v2  }
  0x7c   :  { %v11_v3 = vpop.permute.xlu0 %10  }
  0x7d   :  { %14 = vst.msk [vmem:[#allocation0 + $0x1] ss:$2 sm:$0x3] %vm7_vm0, %v11_v3  }
  0x84   :  { %v18_v4 = vld [vmem:[#allocation0] sm:$0xf] }
  0x85   :  { %20 = vst [vmem:[%s40_s1] sm:$0xf] %v18_v4 }

// kernel: squeeze.22
= control target key start
LH: loop header
LB: loop body
LE: loop exit
PB: predicated region body
PF: predicated region fallthrough
CT: control target
= control target key end

     0   :  { %s37_s8 = smov 32   ;;  %vm7_vm0 = vcmask 261120   ;;  %s38_s9 = smov 64   ;;  %s55_s0 = inlined_call_operand.vmem [shape: f32[128], index: 0, kind: input, shape index: {}]   ;;  %s56_s1 = inlined_call_operand.vmem [shape: f32[4,32], index: 1, kind: output, shape index: {}]  }
   0x1   :  { %v4_v0 = vld [vmem:[%s55_s0] sm:$0x1]  ;;  %s36_s0 = smov 96  }
   0x2   :  { %5 = vst [vmem:[#allocation1] sm:$0x1] %v4_v0 }
   0x9   :  { %v9_v1 = vld [vmem:[#allocation1] sm:$0x1]  }
   0xa   :  { %v21_v2 = vld [vmem:[#allocation1] sm:$0x1]   ;;  %10 = vrot.lane.b32.xlu0 %v9_v1, %s36_s0 }
   0xb   :  { %22 = vrot.lane.b32.xlu1 %v21_v2, %s37_s8  ;;  %v6_v3 = vld [vmem:[#allocation1] sm:$0x1]  }
   0xc   :  { %v15_v4 = vld [vmem:[#allocation1] sm:$0x1]   ;;  %8 = vst.msk [vmem:[#allocation0] sm:$0x1] %vm7_vm0, %v6_v3  }
   0xe   :  { %16 = vrot.lane.b32.xlu0 %v15_v4, %s38_s9 }
  0x7c   :  { %v11_v5 = vpop.permute.xlu0 %10  }
  0x7d   :  { %v23_v6 = vpop.permute.xlu1 %22   ;;  %14 = vst.msk [vmem:[#allocation0 + $0x1] sm:$0x1] %vm7_vm0, %v11_v5  }
  0x7e   :  { %26 = vst.msk [vmem:[#allocation0 + $0x3] sm:$0x1] %vm7_vm0, %v23_v6  }
  0x80   :  { %v17_v7 = vpop.permute.xlu0 %16  }
  0x81   :  { %20 = vst.msk [vmem:[#allocation0 + $0x2] sm:$0x1] %vm7_vm0, %v17_v7  }
  0x88   :  { %v30_v8 = vld [vmem:[#allocation0] sm:$0xf] }
  0x89   :  { %32 = vst [vmem:[%s56_s1] sm:$0xf] %v30_v8 }

// kernel: unet_generator.15
= control target key start
LH: loop header
LB: loop body
LE: loop exit
PB: predicated region body
PF: predicated region fallthrough
CT: control target
= control target key end

     0   :  { %v93_v35 = vlaneseq  ;;  %v903_v36 = vmov 1966171168   ;;  %v904_v51 = vmov 0   ;;  %vm507_vm0 = vcmask 523264   ;;  %s1180_s1 = inlined_call_operand.vmem [shape: bf16[576,256], index: 1, kind: input, shape index: {}]   ;;  %s1181_s0 = inlined_call_operand.vmem [shape: bf16[2,576], index: 0, kind: input, shape index: {}]   ;;  %s1182_s2 = inlined_call_operand.vmem [shape: f32[1,256], index: 2, kind: input, shape index: {}]   ;;  %s1183_s3 = inlined_call_operand.vmem [shape: bf16[2,256], index: 3, kind: output, shape index: {0}]   ;;  %s1184_s4 = inlined_call_operand.vmem [shape: f32[1,2,256], index: 4, kind: output, shape index: {1}]  }
   0x1   :  { %v795_v0 = vld [vmem:[%s1180_s1 + $0x104] ss:$8 sps:$4 sm:$0xff]   ;;  %v797_v1 = vld [vmem:[%s1180_s1 + $0x100] ss:$8 sps:$4 sm:$0xff]   ;;  %v798_v2 = vld [vmem:[%s1180_s1 + $0x114] ss:$8 sps:$4 sm:$0xff]   ;;  %v106_v37 = vunpack.c.l.s4 %v903_v36 }
   0x2   :  { %552 = vmatprep.subr.bf16.mxu0 %v795_v0  ;;  %v800_v3 = vld [vmem:[%s1180_s1 + $0x110] ss:$8 sps:$4 sm:$0xff]   ;;  %v801_v4 = vld [vmem:[%s1180_s1 + $0x124] ss:$8 sps:$4 sm:$0xff]   ;;  %v806_v6 = vld [vmem:[%s1180_s1] ss:$8 sps:$4 sm:$0xff]  }
   0x3   :  { %553 = vmatpush1.bf16.msra.mxu0 %v797_v1  ;;  %v804_v5 = vld [vmem:[%s1180_s1 + $0x4] ss:$8 sps:$4 sm:$0xff]   ;;  %v803_v7 = vld [vmem:[%s1180_s1 + $0x120] ss:$8 sps:$4 sm:$0xff]   ;;  %v810_v8 = vld [vmem:[%s1180_s1 + $0x14] ss:$8 sps:$4 sm:$0xff]   ;;  %v107_v43 = vunpack.c.0.s8 %v106_v37 }
   0x4   :  { %554 = vmatprep.subr.bf16.mxu0 %v798_v2  ;;  %511 = vmatprep.subr.bf16.mxu1 %v804_v5  ;;  %v812_v9 = vld [vmem:[%s1180_s1 + $0x10] ss:$8 sps:$4 sm:$0xff]   ;;  %v807_v10 = vld [vmem:[%s1180_s1 + $0x134] ss:$8 sps:$4 sm:$0xff]   ;;  %v816_v12 = vld [vmem:[%s1180_s1 + $0x24] ss:$8 sps:$4 sm:$0xff]  }
   0x5   :  { %512 = vmatpush1.bf16.msra.mxu1 %v806_v6  ;;  %v809_v11 = vld [vmem:[%s1180_s1 + $0x130] ss:$8 sps:$4 sm:$0xff]   ;;  %v813_v13 = vld [vmem:[%s1180_s1 + $0x144] ss:$8 sps:$4 sm:$0xff]   ;;  %v818_v14 = vld [vmem:[%s1180_s1 + $0x20] ss:$8 sps:$4 sm:$0xff]  }
   0x6   :  { %513 = vmatprep.subr.bf16.mxu1 %v810_v8  ;;  %v822_v15 = vld [vmem:[%s1180_s1 + $0x34] ss:$8 sps:$4 sm:$0xff]   ;;  %v815_v16 = vld [vmem:[%s1180_s1 + $0x140] ss:$8 sps:$4 sm:$0xff]   ;;  %v824_v18 = vld [vmem:[%s1180_s1 + $0x30] ss:$8 sps:$4 sm:$0xff]  }
   0x7   :  { %555 = vmatpush1.bf16.msra.mxu0 %v800_v3  ;;  %v819_v17 = vld [vmem:[%s1180_s1 + $0x154] ss:$8 sps:$4 sm:$0xff]   ;;  %v828_v19 = vld [vmem:[%s1180_s1 + $0x44] ss:$8 sps:$4 sm:$0xff]   ;;  %v821_v20 = vld [vmem:[%s1180_s1 + $0x150] ss:$8 sps:$4 sm:$0xff]  }
   0x8   :  { %556 = vmatprep.subr.bf16.mxu0 %v801_v4  ;;  %v825_v21 = vld [vmem:[%s1180_s1 + $0x164] ss:$8 sps:$4 sm:$0xff]   ;;  %v830_v22 = vld [vmem:[%s1180_s1 + $0x40] ss:$8 sps:$4 sm:$0xff]   ;;  %v834_v23 = vld [vmem:[%s1180_s1 + $0x54] ss:$8 sps:$4 sm:$0xff]  }
   0x9   :  { %514 = vmatpush1.bf16.msra.mxu1 %v812_v9  ;;  %v827_v24 = vld [vmem:[%s1180_s1 + $0x160] ss:$8 sps:$4 sm:$0xff]   ;;  %v831_v25 = vld [vmem:[%s1180_s1 + $0x174] ss:$8 sps:$4 sm:$0xff]   ;;  %v836_v26 = vld [vmem:[%s1180_s1 + $0x50] ss:$8 sps:$4 sm:$0xff]  }
   0xa   :  { %515 = vmatprep.subr.bf16.mxu1 %v816_v12  ;;  %v840_v27 = vld [vmem:[%s1180_s1 + $0x64] ss:$8 sps:$4 sm:$0xff]   ;;  %v833_v28 = vld [vmem:[%s1180_s1 + $0x170] ss:$8 sps:$4 sm:$0xff]   ;;  %v842_v30 = vld [vmem:[%s1180_s1 + $0x60] ss:$8 sps:$4 sm:$0xff]  }
   0xb   :  { %557 = vmatpush1.bf16.msra.mxu0 %v803_v7  ;;  %v837_v29 = vld [vmem:[%s1180_s1 + $0x184] ss:$8 sps:$4 sm:$0xff]   ;;  %v846_v31 = vld [vmem:[%s1180_s1 + $0x74] ss:$8 sps:$4 sm:$0xff]   ;;  %v839_v32 = vld [vmem:[%s1180_s1 + $0x180] ss:$8 sps:$4 sm:$0xff]  }
   0xc   :  { %558 = vmatprep.subr.bf16.mxu0 %v807_v10  ;;  %v843_v33 = vld [vmem:[%s1180_s1 + $0x194] ss:$8 sps:$4 sm:$0xff]   ;;  %v848_v34 = vld [vmem:[%s1180_s1 + $0x70] ss:$8 sps:$4 sm:$0xff]   ;;  %v852_v38 = vld [vmem:[%s1180_s1 + $0x84] ss:$8 sps:$4 sm:$0xff]  }
   0xd   :  { %516 = vmatpush1.bf16.msra.mxu1 %v818_v14  ;;  %v845_v39 = vld [vmem:[%s1180_s1 + $0x190] ss:$8 sps:$4 sm:$0xff]   ;;  %v849_v40 = vld [vmem:[%s1180_s1 + $0x1a4] ss:$8 sps:$4 sm:$0xff]   ;;  %v854_v41 = vld [vmem:[%s1180_s1 + $0x80] ss:$8 sps:$4 sm:$0xff]  }
   0xe   :  { %517 = vmatprep.subr.bf16.mxu1 %v822_v15  ;;  %v1047_v42 = vshrl.u32 %v93_v35, 7  ;;  %v858_v44 = vld [vmem:[%s1180_s1 + $0x94] ss:$8 sps:$4 sm:$0xff]   ;;  %v851_v45 = vld [vmem:[%s1180_s1 + $0x1a0] ss:$8 sps:$4 sm:$0xff]   ;;  %vm634_vm1 = vcmask 1041408  }
   0xf   :  { %559 = vmatpush1.bf16.msra.mxu0 %v809_v11  ;;  %v855_v46 = vld [vmem:[%s1180_s1 + $0x1b4] ss:$8 sps:$4 sm:$0xff]   ;;  %v860_v47 = vld [vmem:[%s1180_s1 + $0x90] ss:$8 sps:$4 sm:$0xff]   ;;  %v864_v48 = vld [vmem:[%s1180_s1 + $0xa4] ss:$8 sps:$4 sm:$0xff]  }
  0x10   :  { %560 = vmatprep.subr.bf16.mxu0 %v813_v13  ;;  %v1065_v49 = vsub.s32 %v107_v43, %v1047_v42  ;;  %v17_v50 = vld [vmem:[%s1181_s0] sm:$0x1f]  ;;  %v857_v53 = vld [vmem:[%s1180_s1 + $0x1b0] ss:$8 sps:$4 sm:$0xff]   ;;  %v870_v57 = vld [vmem:[%s1180_s1 + $0xb4] ss:$8 sps:$4 sm:$0xff]  }
  0x11   :  { %518 = vmatpush1.bf16.msra.mxu1 %v824_v18  ;;  %v1070_v52 = vmax.bf16 %v904_v51, %v17_v50  ;;  %v861_v54 = vld [vmem:[%s1180_s1 + $0x1c4] ss:$8 sps:$4 sm:$0xff]   ;;  %v866_v55 = vld [vmem:[%s1180_s1 + $0xa0] ss:$8 sps:$4 sm:$0xff]   ;;  %v872_v60 = vld [vmem:[%s1180_s1 + $0xb0] ss:$8 sps:$4 sm:$0xff]  }
  0x12   :  { %519 = vmatprep.subr.bf16.mxu1 %v828_v19  ;;  %v863_v59 = vld [vmem:[%s1180_s1 + $0x1c0] ss:$8 sps:$4 sm:$0xff]   ;;  %v867_v62 = vld [vmem:[%s1180_s1 + $0x1d4] ss:$8 sps:$4 sm:$0xff]   ;;  %v876_v63 = vld [vmem:[%s1180_s1 + $0xc4] ss:$8 sps:$4 sm:$0xff]  }
  0x13   :  { %561 = vmatpush1.bf16.msra.mxu0 %v815_v16  ;;  %v111_v56 = vrot.slane %v1070_v52, %v1065_v49  ;;  %v869_v1 = vld [vmem:[%s1180_s1 + $0x1d0] ss:$8 sps:$4 sm:$0xff]   ;;  %v878_v2 = vld [vmem:[%s1180_s1 + $0xc0] ss:$8 sps:$4 sm:$0xff]   ;;  %v873_v3 = vld [vmem:[%s1180_s1 + $0x1e4] ss:$8 sps:$4 sm:$0xff]  }
  0x14   :  { %562 = vmatprep.subr.bf16.mxu0 %v819_v17  ;;  %v882_v4 = vld [vmem:[%s1180_s1 + $0xd4] ss:$8 sps:$4 sm:$0xff]   ;;  %v875_v5 = vld [vmem:[%s1180_s1 + $0x1e0] ss:$8 sps:$4 sm:$0xff]   ;;  %v884_v6 = vld [vmem:[%s1180_s1 + $0xd0] ss:$8 sps:$4 sm:$0xff]  }
  0x15   :  { %520 = vmatpush1.bf16.msra.mxu1 %v830_v22  ;;  %v119_v58 = vcombine.high %v111_v56, %v111_v56  ;;  %v879_v7 = vld [vmem:[%s1180_s1 + $0x1f4] ss:$8 sps:$4 sm:$0xff]   ;;  %v888_v8 = vld [vmem:[%s1180_s1 + $0xe4] ss:$8 sps:$4 sm:$0xff]   ;;  %v126_v9 = vrot.slane %v111_v56, %v1065_v49  ;;  %v881_v10 = vld [vmem:[%s1180_s1 + $0x1f0] ss:$8 sps:$4 sm:$0xff]  }
  0x16   :  { %521 = vmatprep.subr.bf16.mxu1 %v834_v23  ;;  %v890_v11 = vld [vmem:[%s1180_s1 + $0xe0] ss:$8 sps:$4 sm:$0xff]   ;;  %v887_v12 = vld [vmem:[%s1180_s1 + $0x204] ss:$8 sps:$4 sm:$0xff]   ;;  %v894_v13 = vld [vmem:[%s1180_s1 + $0xf4] ss:$8 sps:$4 sm:$0xff]  }
  0x17   :  { %563 = vmatpush1.bf16.msra.mxu0 %v821_v20  ;;  %v140_v61 = vrot.slane %v119_v58, %v1065_v49  ;;  %v141_v14 = vcombine.high %v126_v9, %v126_v9  ;;  %v885_v15 = vld [vmem:[%s1180_s1 + $0x200] ss:$8 sps:$4 sm:$0xff]   ;;  %v896_v16 = vld [vmem:[%s1180_s1 + $0xf0] ss:$8 sps:$4 sm:$0xff]   ;;  %v893_v17 = vld [vmem:[%s1180_s1 + $0x214] ss:$8 sps:$4 sm:$0xff]   ;;  %v104_v20 = vcombine.high %v1070_v52, %v1070_v52 }
  0x18   :  { %564 = vmatprep.subr.bf16.mxu0 %v825_v21  ;;  %v891_v18 = vld [vmem:[%s1180_s1 + $0x210] ss:$8 sps:$4 sm:$0xff]   ;;  %v899_v19 = vld [vmem:[%s1180_s1 + $0x224] ss:$8 sps:$4 sm:$0xff]   ;;  %v897_v21 = vld [vmem:[%s1180_s1 + $0x220] ss:$8 sps:$4 sm:$0xff]  }
  0x19   :  { %522 = vmatpush1.bf16.msra.mxu1 %v836_v26  ;;  %v142_v0 = vcombine.high %v140_v61, %v140_v61  ;;  %543 = vmatprep.mubr.bf16.mxu1 %v140_v61  ;;  %v902_v22 = vld [vmem:[%s1180_s1 + $0x234] ss:$8 sps:$4 sm:$0xff]   ;;  %v118_v23 = vrot.slane %v104_v20, %v1065_v49  ;;  %vm665_vm2 = vcmask 1040384  }
  0x1a   :  { %523 = vmatprep.subr.bf16.mxu1 %v840_v27  ;;  %v95_v27 = vsub.s32 0, %v1047_v42 }
  0x1b   :  { %565 = vmatpush1.bf16.msra.mxu0 %v827_v24  ;;  %584 = vmatprep.mubr.bf16.mxu0 %v142_v0  ;;  %v900_v24 = vld [vmem:[%s1180_s1 + $0x230] ss:$8 sps:$4 sm:$0xff]  }
  0x1c   :  { %566 = vmatprep.subr.bf16.mxu0 %v831_v25  ;;  %v133_v25 = vrot.slane %v118_v23, %v1065_v49 }
  0x1d   :  { %524 = vmatpush1.bf16.msra.mxu1 %v842_v30  ;;  %v99_v30 = vsub.s32 1, %v1047_v42 }
  0x1e   :  { %525 = vmatprep.subr.bf16.mxu1 %v846_v31 }
  0x1f   :  { %567 = vmatpush1.bf16.msra.mxu0 %v833_v28 }
  0x20   :  { %568 = vmatprep.subr.bf16.mxu0 %v837_v29  ;;  %v91_v29 = vld [vmem:[%s1182_s2] sm:$0x3] }
  0x21   :  { %526 = vmatpush1.bf16.msra.mxu1 %v848_v34  ;;  %v100_v34 = vrot.slane %v91_v29, %v99_v30 }
  0x22   :  { %527 = vmatprep.subr.bf16.mxu1 %v852_v38 }
  0x23   :  { %569 = vmatpush1.bf16.msra.mxu0 %v839_v32 }
  0x24   :  { %570 = vmatprep.subr.bf16.mxu0 %v843_v33  ;;  %v96_v33 = vrot.slane %v91_v29, %v95_v27 }
  0x25   :  { %528 = vmatpush1.bf16.msra.mxu1 %v854_v41 }
  0x26   :  { %529 = vmatprep.subr.bf16.mxu1 %v858_v44 }
  0x27   :  { %571 = vmatpush1.bf16.msra.mxu0 %v845_v39 }
  0x28   :  { %572 = vmatprep.subr.bf16.mxu0 %v849_v40 }
  0x29   :  { %530 = vmatpush1.bf16.msra.mxu1 %v860_v47 }
  0x2a   :  { %531 = vmatprep.subr.bf16.mxu1 %v864_v48 }
  0x2b   :  { %573 = vmatpush1.bf16.msra.mxu0 %v851_v45 }
  0x2c   :  { %574 = vmatprep.subr.bf16.mxu0 %v855_v46 }
  0x2d   :  { %532 = vmatpush1.bf16.msra.mxu1 %v866_v55 }
  0x2e   :  { %533 = vmatprep.subr.bf16.mxu1 %v870_v57 }
  0x2f   :  { %575 = vmatpush1.bf16.msra.mxu0 %v857_v53 }
  0x30   :  { %576 = vmatprep.subr.bf16.mxu0 %v861_v54 }
  0x31   :  { %534 = vmatpush1.bf16.msra.mxu1 %v872_v60 }
  0x32   :  { %535 = vmatprep.subr.bf16.mxu1 %v876_v63 }
  0x33   :  { %577 = vmatpush1.bf16.msra.mxu0 %v863_v59 }
  0x34   :  { %578 = vmatprep.subr.bf16.mxu0 %v867_v62 }
  0x35   :  { %536 = vmatpush1.bf16.msra.mxu1 %v878_v2 }
  0x36   :  { %537 = vmatprep.subr.bf16.mxu1 %v882_v4 }
  0x37   :  { %579 = vmatpush1.bf16.msra.mxu0 %v869_v1 }
  0x38   :  { %580 = vmatprep.subr.bf16.mxu0 %v873_v3 }
  0x39   :  { %538 = vmatpush1.bf16.msra.mxu1 %v884_v6 }
  0x3a   :  { %539 = vmatprep.subr.bf16.mxu1 %v888_v8 }
  0x3b   :  { %581 = vmatpush1.bf16.msra.mxu0 %v875_v5 }
  0x3c   :  { %582 = vmatprep.subr.bf16.mxu0 %v879_v7 }
  0x3d   :  { %540 = vmatpush1.bf16.msra.mxu1 %v890_v11 }
  0x3e   :  { %541 = vmatprep.subr.bf16.mxu1 %v894_v13 }
  0x3f   :  { %583 = vmatpush1.bf16.msra.mxu0 %v881_v10 }
  0x40   :  { %593 = vmatprep.subr.bf16.mxu0 %v887_v12 }
  0x41   :  { %542 = vmatpush1.bf16.msra.mxu1 %v896_v16 }
  0x42   :  { %585 = vmatmul.mubr.bf16.vlgmr.msra.gmra.mrb[0].mxu0 %v141_v14 }
  0x43   :  { %594 = vmatpush1.bf16.msra.mxu0 %v885_v15  ;;  %625 = vmatprep.mubr.bf16.mxu0 %v904_v51 }
  0x44   :  { %595 = vmatprep.subr.bf16.mxu0 %v893_v17  ;;  %544 = vmatmul.mubr.bf16.vlgmr.msra.gmra.mrb[0].mxu1 %v126_v9 }
  0x47   :  { %596 = vmatpush1.bf16.msra.mxu0 %v891_v18 }
  0x48   :  { %597 = vmatprep.subr.bf16.mxu0 %v899_v19 }
  0x4b   :  { %598 = vmatpush1.bf16.msra.mxu0 %v897_v21 }
  0x4c   :  { %599 = vmatprep.subr.bf16.mxu0 %v902_v22 }
  0x4f   :  { %600 = vmatpush1.bf16.msra.mxu0 %v900_v24 }
  0x52   :  { %781 = vmatmul.mubr.msk.bf16.vlgmr.msra.gmra.mrb[0].mxu0 %vm507_vm0, %v133_v25 }
 0x117   :  { %v545_v26 = vpop.f32.mrb[0].mxu1 }
 0x118   :  { %v547_v28 = vpop.f32.mrb[1].mxu1  ;;  %v546_v35 = vadd.f32 %v545_v26, %v96_v33 }
 0x119   :  { %v549_v31 = vpop.f32.mrb[2].mxu1  ;;  %v548_v36 = vadd.f32 %v547_v28, %v100_v34 }
 0x11a   :  { %v550_v32 = vpop.f32.mrb[3].mxu1 }
 0x125   :  { %v627_v37 = vpop.f32.mrb[0].mxu0 }
 0x126   :  { %v786_v38 = vadd.f32 %v627_v37, %v546_v35  ;;  %v629_v39 = vpop.f32.mrb[1].mxu0 }
 0x127   :  { %v788_v40 = vadd.f32 %v629_v39, %v548_v36  ;;  %v631_v41 = vpop.f32.mrb[2].mxu0 }
 0x128   :  { %v635_v43 = vsel %vm634_vm1, %v786_v38, 0.0  ;;  %v649_v44 = vmul.f32 %v786_v38, %v786_v38  ;;  %v632_v45 = vpop.f32.mrb[3].mxu0 }
 0x129   :  { %v636_v46 = vrot.slane %v635_v43, 4  ;;  %v642_v47 = vsel %vm634_vm1, %v788_v40, 0.0  ;;  %v650_v42 = vmul.f32 %v788_v40, %v788_v40  ;;  %v783_v48 = vpack.c.bf16 %v788_v40, %v786_v38 }
 0x12a   :  { %v651_v50 = vsel %vm634_vm1, %v649_v44, 0.0  ;;  %v643_v51 = vrot.slane %v642_v47, 4 }
 0x12b   :  { %v637_v52 = vadd.f32 %v636_v46, %v635_v43  ;;  %v652_v53 = vrot.slane %v651_v50, 4  ;;  %v658_v54 = vsel %vm634_vm1, %v650_v42, 0.0  ;;  %v691_v55 = vrot.slane %v783_v48, %v1065_v49 }
 0x12c   :  { %v644_v56 = vadd.f32 %v643_v51, %v642_v47  ;;  %v659_v57 = vrot.slane %v658_v54, 4 }
 0x12d   :  { %v638_v58 = vrot.slane %v637_v52, 2  ;;  %v653_v59 = vadd.f32 %v652_v53, %v651_v50  ;;  %784 = vst.sshfl [vmem:[%s1183_s3] sm:$0x5 pattern:$0x73625140] %v691_v55 }
 0x12e   :  { %v645_v60 = vrot.slane %v644_v56, 2  ;;  %v660_v61 = vadd.f32 %v659_v57, %v658_v54 }
 0x12f   :  { %v639_v62 = vadd.f32 %v638_v58, %v637_v52  ;;  %v654_v63 = vrot.slane %v653_v59, 2 }
 0x130   :  { %v646_v0 = vadd.f32 %v645_v60, %v644_v56  ;;  %v661_v1 = vrot.slane %v660_v61, 2 }
 0x131   :  { %v640_v2 = vrot.slane %v639_v62, 1  ;;  %v655_v3 = vadd.f32 %v654_v63, %v653_v59 }
 0x132   :  { %v647_v4 = vrot.slane %v646_v0, 1  ;;  %v662_v5 = vadd.f32 %v661_v1, %v660_v61 }
 0x133   :  { %v656_v6 = vrot.slane %v655_v3, 1  ;;  %v641_v7 = vadd.f32 %v640_v2, %v639_v62 }
 0x134   :  { %v663_v49 = vrot.slane %v662_v5, 1  ;;  %v648_v9 = vadd.f32 %v647_v4, %v646_v0 }
 0x135   :  { %v657_v8 = vadd.f32 %v656_v6, %v655_v3 }
 0x136   :  { %v664_v10 = vadd.f32 %v663_v49, %v662_v5 }
 0x137   :  { %v666_v11 = vsel %vm665_vm2, %v641_v7, %v657_v8 }
 0x138   :  { %v667_v12 = vsel %vm665_vm2, %v648_v9, %v664_v10 }
 0x139   :  { %v670_v13 = vcombine.low %v666_v11, %v667_v12 }
 0x13b   :  { %782 = vst.sshfl [vmem:[%s1184_s4] sm:$0x33 pattern:$0x76325410] %v670_v13 }

// kernel: unet_generator.14
= control target key start
LH: loop header
LB: loop body
LE: loop exit
PB: predicated region body
PF: predicated region fallthrough
CT: control target
= control target key end

     0   :  { %v981_v25 = vmov 1966171168   ;;  %v160_v27 = vlaneseq  ;;  %s1216_s1 = inlined_call_operand.vmem [shape: bf16[1024,128], index: 1, kind: input, shape index: {}]   ;;  %s1217_s0 = inlined_call_operand.vmem [shape: bf16[2,1024], index: 0, kind: input, shape index: {}]   ;;  %s1218_s2 = inlined_call_operand.vmem [shape: f32[1,128], index: 2, kind: input, shape index: {}]   ;;  %s1219_s3 = inlined_call_operand.vmem [shape: bf16[2,128], index: 3, kind: output, shape index: {}]  }
   0x1   :  { %v917_v0 = vld [vmem:[%s1216_s1 + $0x40] sm:$0xff]   ;;  %v921_v4 = vld [vmem:[%s1216_s1 + $0x48] sm:$0xff]   ;;  %v925_v8 = vld [vmem:[%s1216_s1 + $0x50] sm:$0xff]   ;;  %v158_v26 = vunpack.c.l.s4 %v981_v25 }
   0x2   :  { %v918_v1 = vld [vmem:[%s1216_s1 + $0xc0] sm:$0xff]   ;;  %828 = vmatprep.subr.bf16.mxu0 %v917_v0  ;;  %v922_v5 = vld [vmem:[%s1216_s1 + $0xc8] sm:$0xff]   ;;  %v926_v9 = vld [vmem:[%s1216_s1 + $0xd0] sm:$0xff]   ;;  %v161_v33 = vshrl.u32 %v160_v27, 7 }
   0x3   :  { %v919_v2 = vld [vmem:[%s1216_s1] sm:$0xff]   ;;  %850 = vmatprep.subr.bf16.mxu1 %v918_v1  ;;  %v923_v6 = vld [vmem:[%s1216_s1 + $0x8] sm:$0xff]   ;;  %v927_v10 = vld [vmem:[%s1216_s1 + $0x10] sm:$0xff]   ;;  %v159_v32 = vunpack.c.0.s8 %v158_v26 }
   0x4   :  { %v920_v3 = vld [vmem:[%s1216_s1 + $0x80] sm:$0xff]   ;;  %829 = vmatpush3.bf16.msra.mxu0 %v919_v2  ;;  %v924_v7 = vld [vmem:[%s1216_s1 + $0x88] sm:$0xff]   ;;  %v928_v11 = vld [vmem:[%s1216_s1 + $0x90] sm:$0xff]  }
   0x5   :  { %851 = vmatpush3.bf16.msra.mxu1 %v920_v3  ;;  %830 = vmatprep.subr.bf16.mxu0 %v921_v4  ;;  %v929_v12 = vld [vmem:[%s1216_s1 + $0x58] sm:$0xff]   ;;  %v933_v16 = vld [vmem:[%s1216_s1 + $0x60] sm:$0xff]   ;;  %v937_v20 = vld [vmem:[%s1216_s1 + $0x68] sm:$0xff]   ;;  %v1101_v38 = vsub.s32 %v159_v32, %v161_v33 }
   0x6   :  { %852 = vmatprep.subr.bf16.mxu1 %v922_v5  ;;  %v930_v13 = vld [vmem:[%s1216_s1 + $0xd8] sm:$0xff]   ;;  %v934_v17 = vld [vmem:[%s1216_s1 + $0xe0] sm:$0xff]   ;;  %v938_v21 = vld [vmem:[%s1216_s1 + $0xe8] sm:$0xff]  }
   0x7   :  { %v931_v14 = vld [vmem:[%s1216_s1 + $0x18] sm:$0xff]   ;;  %v935_v18 = vld [vmem:[%s1216_s1 + $0x20] sm:$0xff]   ;;  %v939_v22 = vld [vmem:[%s1216_s1 + $0x28] sm:$0xff]  }
   0x8   :  { %831 = vmatpush3.bf16.msra.mxu0 %v923_v6  ;;  %v932_v15 = vld [vmem:[%s1216_s1 + $0x98] sm:$0xff]   ;;  %v936_v19 = vld [vmem:[%s1216_s1 + $0xa0] sm:$0xff]   ;;  %v940_v23 = vld [vmem:[%s1216_s1 + $0xa8] sm:$0xff]  }
   0x9   :  { %853 = vmatpush3.bf16.msra.mxu1 %v924_v7  ;;  %832 = vmatprep.subr.bf16.mxu0 %v925_v8  ;;  %v941_v24 = vld [vmem:[%s1216_s1 + $0x70] sm:$0xff]   ;;  %v945_v31 = vld [vmem:[%s1216_s1 + $0x78] sm:$0xff]   ;;  %v16_v37 = vld [vmem:[%s1217_s0] sm:$0xff] }
   0xa   :  { %854 = vmatprep.subr.bf16.mxu1 %v926_v9  ;;  %v942_v28 = vld [vmem:[%s1216_s1 + $0xf0] sm:$0xff]   ;;  %v946_v34 = vld [vmem:[%s1216_s1 + $0xf8] sm:$0xff]   ;;  %vm17_vm0 = vcmp.ge.bf16.partialorder %v16_v37, 0  ;;  %v18_v39 = vmul.bf16 1045249613, %v16_v37  ;;  %v949_v40 = vld [vmem:[%s1216_s1 + $0x140] sm:$0xff]  }
   0xb   :  { %v943_v29 = vld [vmem:[%s1216_s1 + $0x30] sm:$0xff]   ;;  %v947_v35 = vld [vmem:[%s1216_s1 + $0x38] sm:$0xff]   ;;  %v950_v41 = vld [vmem:[%s1216_s1 + $0x1c0] sm:$0xff]  }
   0xc   :  { %833 = vmatpush3.bf16.msra.mxu0 %v927_v10  ;;  %v944_v30 = vld [vmem:[%s1216_s1 + $0xb0] sm:$0xff]   ;;  %v948_v36 = vld [vmem:[%s1216_s1 + $0xb8] sm:$0xff]   ;;  %v19_v42 = vsel %vm17_vm0, %v16_v37, %v18_v39  ;;  %v951_v49 = vld [vmem:[%s1216_s1 + $0x100] sm:$0xff]  }
   0xd   :  { %855 = vmatpush3.bf16.msra.mxu1 %v928_v11  ;;  %834 = vmatprep.subr.bf16.mxu0 %v929_v12  ;;  %v156_v43 = vcombine.high %v19_v42, %v19_v42  ;;  %v163_v44 = vrot.slane %v19_v42, %v1101_v38  ;;  %v953_v52 = vld [vmem:[%s1216_s1 + $0x148] sm:$0xff]   ;;  %v952_v54 = vld [vmem:[%s1216_s1 + $0x180] sm:$0xff]   ;;  %v957_v59 = vld [vmem:[%s1216_s1 + $0x150] sm:$0xff]  }
   0xe   :  { %856 = vmatprep.subr.bf16.mxu1 %v930_v13  ;;  %v954_v56 = vld [vmem:[%s1216_s1 + $0x1c8] sm:$0xff]   ;;  %v958_v61 = vld [vmem:[%s1216_s1 + $0x1d0] sm:$0xff]   ;;  %v961_v63 = vld [vmem:[%s1216_s1 + $0x158] sm:$0xff]  }
   0xf   :  { %v171_v45 = vcombine.high %v163_v44, %v163_v44  ;;  %v179_v46 = vrot.slane %v163_v44, %v1101_v38  ;;  %v1112_v47 = vrot.slane %v156_v43, %v1101_v38  ;;  %v955_v57 = vld [vmem:[%s1216_s1 + $0x108] sm:$0xff]   ;;  %v959_v62 = vld [vmem:[%s1216_s1 + $0x110] sm:$0xff]   ;;  %v962_v1 = vld [vmem:[%s1216_s1 + $0x1d8] sm:$0xff]  }
  0x10   :  { %835 = vmatpush3.bf16.msra.mxu0 %v931_v14  ;;  %v956_v60 = vld [vmem:[%s1216_s1 + $0x188] sm:$0xff]   ;;  %v960_v0 = vld [vmem:[%s1216_s1 + $0x190] sm:$0xff]   ;;  %v963_v2 = vld [vmem:[%s1216_s1 + $0x118] sm:$0xff]  }
  0x11   :  { %857 = vmatpush3.bf16.msra.mxu1 %v932_v15  ;;  %836 = vmatprep.subr.bf16.mxu0 %v933_v16  ;;  %v193_v48 = vrot.slane %v171_v45, %v1101_v38  ;;  %v172_v50 = vcombine.high %v1112_v47, %v1112_v47  ;;  %v201_v51 = vcombine.high %v179_v46, %v179_v46  ;;  %v965_v3 = vld [vmem:[%s1216_s1 + $0x160] sm:$0xff]   ;;  %v964_v4 = vld [vmem:[%s1216_s1 + $0x198] sm:$0xff]   ;;  %v969_v7 = vld [vmem:[%s1216_s1 + $0x168] sm:$0xff]  }
  0x12   :  { %858 = vmatprep.subr.bf16.mxu1 %v934_v17  ;;  %v966_v5 = vld [vmem:[%s1216_s1 + $0x1e0] sm:$0xff]   ;;  %v970_v9 = vld [vmem:[%s1216_s1 + $0x1e8] sm:$0xff]   ;;  %v973_v11 = vld [vmem:[%s1216_s1 + $0x170] sm:$0xff]  }
  0x13   :  { %629 = vmatprep.mubr.bf16.mxu0 %v193_v48  ;;  %v203_v53 = vcombine.high %v193_v48, %v193_v48  ;;  %v200_v55 = vrot.slane %v172_v50, %v1101_v38  ;;  %v967_v6 = vld [vmem:[%s1216_s1 + $0x120] sm:$0xff]   ;;  %v971_v10 = vld [vmem:[%s1216_s1 + $0x128] sm:$0xff]   ;;  %v974_v13 = vld [vmem:[%s1216_s1 + $0x1f0] sm:$0xff]  }
  0x14   :  { %837 = vmatpush3.bf16.msra.mxu0 %v935_v18  ;;  %v968_v8 = vld [vmem:[%s1216_s1 + $0x1a0] sm:$0xff]   ;;  %v972_v12 = vld [vmem:[%s1216_s1 + $0x1a8] sm:$0xff]   ;;  %v975_v14 = vld [vmem:[%s1216_s1 + $0x130] sm:$0xff]  }
  0x15   :  { %859 = vmatpush3.bf16.msra.mxu1 %v936_v19  ;;  %838 = vmatprep.subr.bf16.mxu0 %v937_v20  ;;  %v204_v58 = vcombine.high %v200_v55, %v200_v55  ;;  %v977_v15 = vld [vmem:[%s1216_s1 + $0x178] sm:$0xff]   ;;  %v976_v16 = vld [vmem:[%s1216_s1 + $0x1b0] sm:$0xff]   ;;  %v186_v19 = vrot.slane %v1112_v47, %v1101_v38 }
  0x16   :  { %860 = vmatprep.subr.bf16.mxu1 %v938_v21  ;;  %669 = vmatprep.mubr.bf16.mxu1 %v203_v53  ;;  %v978_v17 = vld [vmem:[%s1216_s1 + $0x1f8] sm:$0xff]  }
  0x17   :  { %v979_v18 = vld [vmem:[%s1216_s1 + $0x138] sm:$0xff]   ;;  %v202_v21 = vcombine.high %v186_v19, %v186_v19 }
  0x18   :  { %839 = vmatpush3.bf16.msra.mxu0 %v939_v22  ;;  %v980_v20 = vld [vmem:[%s1216_s1 + $0x1b8] sm:$0xff]  }
  0x19   :  { %861 = vmatpush3.bf16.msra.mxu1 %v940_v23  ;;  %840 = vmatprep.subr.bf16.mxu0 %v941_v24  ;;  %v763_v23 = vld [vmem:[%s1218_s2] ss:$0 sm:$0xff] }
  0x1a   :  { %862 = vmatprep.subr.bf16.mxu1 %v942_v28 }
  0x1c   :  { %841 = vmatpush3.bf16.msra.mxu0 %v943_v29 }
  0x1d   :  { %863 = vmatpush3.bf16.msra.mxu1 %v944_v30  ;;  %842 = vmatprep.subr.bf16.mxu0 %v945_v31 }
  0x1e   :  { %864 = vmatprep.subr.bf16.mxu1 %v946_v34 }
  0x20   :  { %843 = vmatpush3.bf16.msra.mxu0 %v947_v35 }
  0x21   :  { %865 = vmatpush3.bf16.msra.mxu1 %v948_v36  ;;  %872 = vmatprep.subr.bf16.mxu0 %v949_v40 }
  0x22   :  { %894 = vmatprep.subr.bf16.mxu1 %v950_v41 }
  0x23   :  { %630 = vmatmul.mubr.bf16.vlgmr.msra.gmra.mrb[0].mxu0 %v179_v46 }
  0x24   :  { %873 = vmatpush3.bf16.msra.mxu0 %v951_v49  ;;  %670 = vmatmul.mubr.bf16.vlgmr.msra.gmra.mrb[0].mxu1 %v201_v51 }
  0x25   :  { %874 = vmatprep.subr.bf16.mxu0 %v953_v52  ;;  %895 = vmatpush3.bf16.msra.mxu1 %v952_v54 }
  0x26   :  { %709 = vmatprep.mubr.bf16.mxu0 %v200_v55  ;;  %896 = vmatprep.subr.bf16.mxu1 %v954_v56 }
  0x27   :  { %749 = vmatprep.mubr.bf16.mxu1 %v204_v58 }
  0x28   :  { %875 = vmatpush3.bf16.msra.mxu0 %v955_v57 }
  0x29   :  { %876 = vmatprep.subr.bf16.mxu0 %v957_v59  ;;  %897 = vmatpush3.bf16.msra.mxu1 %v956_v60 }
  0x2a   :  { %898 = vmatprep.subr.bf16.mxu1 %v958_v61 }
  0x2c   :  { %877 = vmatpush3.bf16.msra.mxu0 %v959_v62 }
  0x2d   :  { %878 = vmatprep.subr.bf16.mxu0 %v961_v63  ;;  %899 = vmatpush3.bf16.msra.mxu1 %v960_v0 }
  0x2e   :  { %900 = vmatprep.subr.bf16.mxu1 %v962_v1 }
  0x30   :  { %879 = vmatpush3.bf16.msra.mxu0 %v963_v2 }
  0x31   :  { %880 = vmatprep.subr.bf16.mxu0 %v965_v3  ;;  %901 = vmatpush3.bf16.msra.mxu1 %v964_v4 }
  0x32   :  { %902 = vmatprep.subr.bf16.mxu1 %v966_v5 }
  0x34   :  { %881 = vmatpush3.bf16.msra.mxu0 %v967_v6 }
  0x35   :  { %882 = vmatprep.subr.bf16.mxu0 %v969_v7  ;;  %903 = vmatpush3.bf16.msra.mxu1 %v968_v8 }
  0x36   :  { %904 = vmatprep.subr.bf16.mxu1 %v970_v9 }
  0x38   :  { %883 = vmatpush3.bf16.msra.mxu0 %v971_v10 }
  0x39   :  { %884 = vmatprep.subr.bf16.mxu0 %v973_v11  ;;  %905 = vmatpush3.bf16.msra.mxu1 %v972_v12 }
  0x3a   :  { %906 = vmatprep.subr.bf16.mxu1 %v974_v13 }
  0x3c   :  { %885 = vmatpush3.bf16.msra.mxu0 %v975_v14 }
  0x3d   :  { %886 = vmatprep.subr.bf16.mxu0 %v977_v15  ;;  %907 = vmatpush3.bf16.msra.mxu1 %v976_v16 }
  0x3e   :  { %908 = vmatprep.subr.bf16.mxu1 %v978_v17 }
  0x40   :  { %887 = vmatpush3.bf16.msra.mxu0 %v979_v18 }
  0x41   :  { %909 = vmatpush3.bf16.msra.mxu1 %v980_v20 }
  0x43   :  { %710 = vmatmul.mubr.bf16.vlgmr.msra.gmra.mrb[4].mxu0 %v186_v19 }
  0x44   :  { %750 = vmatmul.mubr.bf16.vlgmr.msra.gmra.mrb[4].mxu1 %v202_v21 }
  0xf6   :  { %v844_v22 = vpop.f32.mrb[0].mxu0 }
  0xf7   :  { %v845_v24 = vpop.f32.mrb[1].mxu0  ;;  %v866_v25 = vpop.f32.mrb[0].mxu1 }
  0xf8   :  { %v846_v26 = vadd.f32 %v845_v24, %v844_v22  ;;  %v847_v27 = vpop.f32.mrb[2].mxu0  ;;  %v867_v28 = vpop.f32.mrb[1].mxu1 }
  0xf9   :  { %v848_v29 = vpop.f32.mrb[3].mxu0  ;;  %v868_v31 = vadd.f32 %v867_v28, %v866_v25  ;;  %v869_v32 = vpop.f32.mrb[2].mxu1 }
  0xfa   :  { %v632_v30 = vadd.f32 %v846_v26, %v763_v23  ;;  %v870_v33 = vpop.f32.mrb[3].mxu1 }
  0xfc   :  { %v672_v34 = vadd.f32 %v868_v31, %v632_v30 }
 0x116   :  { %v888_v35 = vpop.f32.mrb[4].mxu0 }
 0x117   :  { %v889_v36 = vpop.f32.mrb[5].mxu0  ;;  %v910_v37 = vpop.f32.mrb[4].mxu1 }
 0x118   :  { %v890_v38 = vadd.f32 %v889_v36, %v888_v35  ;;  %v891_v39 = vpop.f32.mrb[6].mxu0  ;;  %v911_v40 = vpop.f32.mrb[5].mxu1 }
 0x119   :  { %v892_v41 = vpop.f32.mrb[7].mxu0  ;;  %v912_v43 = vadd.f32 %v911_v40, %v910_v37  ;;  %v913_v44 = vpop.f32.mrb[6].mxu1 }
 0x11a   :  { %v712_v42 = vadd.f32 %v890_v38, %v672_v34  ;;  %v914_v45 = vpop.f32.mrb[7].mxu1 }
 0x11c   :  { %v752_v46 = vadd.f32 %v912_v43, %v712_v42 }
 0x11e   :  { %v757_v47 = vpack.c.bf16 %v752_v46, %v752_v46 }
 0x120   :  { %758 = vst [vmem:[%s1219_s3] sm:$0x1] %v757_v47 }

// kernel: unet_generator.16
= control target key start
LH: loop header
LB: loop body
LE: loop exit
PB: predicated region body
PF: predicated region fallthrough
CT: control target
= control target key end

     0   :  { %v1142_v32 = vmov 0   ;;  %vm1144_vm0 = vmmov 0   ;;  %vm855_vm1 = vcmask 1040384   ;;  %s1415_s1 = inlined_call_operand.vmem [shape: bf16[1152,128], index: 1, kind: input, shape index: {}]   ;;  %s1416_s0 = inlined_call_operand.vmem [shape: bf16[8,1152], index: 0, kind: input, shape index: {}]   ;;  %s1417_s2 = inlined_call_operand.vmem [shape: f32[1,128], index: 2, kind: input, shape index: {}]   ;;  %s1418_s3 = inlined_call_operand.vmem [shape: bf16[8,128], index: 3, kind: output, shape index: {0}]   ;;  %s1419_s4 = inlined_call_operand.vmem [shape: f32[1,2,128], index: 4, kind: output, shape index: {1}]  }
   0x1   :  { %v1070_v0 = vld [vmem:[%s1415_s1 + $0x40] sm:$0xff]   ;;  %v1074_v4 = vld [vmem:[%s1415_s1 + $0x48] sm:$0xff]   ;;  %v1078_v8 = vld [vmem:[%s1415_s1 + $0x50] sm:$0xff]  }
   0x2   :  { %v1071_v1 = vld [vmem:[%s1415_s1] sm:$0xff]   ;;  %950 = vmatprep.subr.bf16.mxu0 %v1070_v0  ;;  %v1075_v5 = vld [vmem:[%s1415_s1 + $0x8] sm:$0xff]   ;;  %v1079_v9 = vld [vmem:[%s1415_s1 + $0x10] sm:$0xff]  }
   0x3   :  { %v1072_v2 = vld [vmem:[%s1415_s1 + $0xc0] sm:$0xff]   ;;  %951 = vmatpush3.bf16.msra.mxu0 %v1071_v1  ;;  %v1076_v6 = vld [vmem:[%s1415_s1 + $0xc8] sm:$0xff]   ;;  %v1080_v10 = vld [vmem:[%s1415_s1 + $0xd0] sm:$0xff]  }
   0x4   :  { %v1073_v3 = vld [vmem:[%s1415_s1 + $0x80] sm:$0xff]   ;;  %972 = vmatprep.subr.bf16.mxu1 %v1072_v2  ;;  %952 = vmatprep.subr.bf16.mxu0 %v1074_v4  ;;  %v1077_v7 = vld [vmem:[%s1415_s1 + $0x88] sm:$0xff]   ;;  %v1081_v11 = vld [vmem:[%s1415_s1 + $0x90] sm:$0xff]  }
   0x5   :  { %973 = vmatpush3.bf16.msra.mxu1 %v1073_v3  ;;  %v1082_v12 = vld [vmem:[%s1415_s1 + $0x58] sm:$0xff]   ;;  %v1086_v16 = vld [vmem:[%s1415_s1 + $0x60] sm:$0xff]   ;;  %v1090_v20 = vld [vmem:[%s1415_s1 + $0x68] sm:$0xff]  }
   0x6   :  { %974 = vmatprep.subr.bf16.mxu1 %v1076_v6  ;;  %v1083_v13 = vld [vmem:[%s1415_s1 + $0x18] sm:$0xff]   ;;  %v1087_v17 = vld [vmem:[%s1415_s1 + $0x20] sm:$0xff]   ;;  %v1091_v21 = vld [vmem:[%s1415_s1 + $0x28] sm:$0xff]  }
   0x7   :  { %953 = vmatpush3.bf16.msra.mxu0 %v1075_v5  ;;  %v1084_v14 = vld [vmem:[%s1415_s1 + $0xd8] sm:$0xff]   ;;  %v1088_v18 = vld [vmem:[%s1415_s1 + $0xe0] sm:$0xff]   ;;  %v1092_v22 = vld [vmem:[%s1415_s1 + $0xe8] sm:$0xff]  }
   0x8   :  { %954 = vmatprep.subr.bf16.mxu0 %v1078_v8  ;;  %v1085_v15 = vld [vmem:[%s1415_s1 + $0x98] sm:$0xff]   ;;  %v1089_v19 = vld [vmem:[%s1415_s1 + $0xa0] sm:$0xff]   ;;  %v1093_v23 = vld [vmem:[%s1415_s1 + $0xa8] sm:$0xff]  }
   0x9   :  { %975 = vmatpush3.bf16.msra.mxu1 %v1077_v7  ;;  %v1094_v24 = vld [vmem:[%s1415_s1 + $0x70] sm:$0xff]   ;;  %v1098_v28 = vld [vmem:[%s1415_s1 + $0x78] sm:$0xff]   ;;  %v17_v31 = vld [vmem:[%s1416_s0] sm:$0xff] }
   0xa   :  { %976 = vmatprep.subr.bf16.mxu1 %v1080_v10  ;;  %v1095_v25 = vld [vmem:[%s1415_s1 + $0x30] sm:$0xff]   ;;  %v1099_v29 = vld [vmem:[%s1415_s1 + $0x38] sm:$0xff]   ;;  %v22_v33 = vmax.bf16 %v1142_v32, %v17_v31  ;;  %v1102_v35 = vld [vmem:[%s1415_s1 + $0x140] sm:$0xff]  }
   0xb   :  { %955 = vmatpush3.bf16.msra.mxu0 %v1079_v9  ;;  %v1096_v26 = vld [vmem:[%s1415_s1 + $0xf0] sm:$0xff]   ;;  %v1100_v30 = vld [vmem:[%s1415_s1 + $0xf8] sm:$0xff]   ;;  %v18_v36 = vld [vmem:[%s1416_s0 + $0x8] sm:$0xff] }
   0xc   :  { %956 = vmatprep.subr.bf16.mxu0 %v1082_v12  ;;  %v1097_v27 = vld [vmem:[%s1415_s1 + $0xb0] sm:$0xff]   ;;  %v1101_v34 = vld [vmem:[%s1415_s1 + $0xb8] sm:$0xff]   ;;  %v870_v37 = vcombine.high %v22_v33, %v22_v33  ;;  %v869_v38 = vcombine.low %v22_v33, %v22_v33  ;;  %v23_v39 = vmax.bf16 %v1142_v32, %v18_v36  ;;  %v1103_v40 = vld [vmem:[%s1415_s1 + $0x100] sm:$0xff]  }
   0xd   :  { %977 = vmatpush3.bf16.msra.mxu1 %v1081_v11  ;;  %v1104_v41 = vld [vmem:[%s1415_s1 + $0x1c0] sm:$0xff]   ;;  %v1106_v45 = vld [vmem:[%s1415_s1 + $0x148] sm:$0xff]   ;;  %v1110_v49 = vld [vmem:[%s1415_s1 + $0x150] sm:$0xff]  }
   0xe   :  { %978 = vmatprep.subr.bf16.mxu1 %v1084_v14  ;;  %674 = vmatprep.mubr.bf16.mxu0 %v870_v37  ;;  %v872_v42 = vcombine.high %v23_v39, %v23_v39  ;;  %v871_v43 = vcombine.low %v23_v39, %v23_v39  ;;  %v1105_v44 = vld [vmem:[%s1415_s1 + $0x180] sm:$0xff]   ;;  %v1107_v46 = vld [vmem:[%s1415_s1 + $0x108] sm:$0xff]   ;;  %v1111_v50 = vld [vmem:[%s1415_s1 + $0x110] sm:$0xff]  }
   0xf   :  { %957 = vmatpush3.bf16.msra.mxu0 %v1083_v13  ;;  %v1108_v47 = vld [vmem:[%s1415_s1 + $0x1c8] sm:$0xff]   ;;  %v1112_v51 = vld [vmem:[%s1415_s1 + $0x1d0] sm:$0xff]   ;;  %v1114_v53 = vld [vmem:[%s1415_s1 + $0x158] sm:$0xff]  }
  0x10   :  { %958 = vmatprep.subr.bf16.mxu0 %v1086_v16  ;;  %714 = vmatprep.mubr.bf16.mxu1 %v872_v42  ;;  %v1109_v48 = vld [vmem:[%s1415_s1 + $0x188] sm:$0xff]   ;;  %v1113_v52 = vld [vmem:[%s1415_s1 + $0x190] sm:$0xff]   ;;  %v1115_v54 = vld [vmem:[%s1415_s1 + $0x118] sm:$0xff]   ;;  %v1143_v16 = vmov 0.0  }
  0x11   :  { %979 = vmatpush3.bf16.msra.mxu1 %v1085_v15  ;;  %v1116_v55 = vld [vmem:[%s1415_s1 + $0x1d8] sm:$0xff]   ;;  %v1118_v57 = vld [vmem:[%s1415_s1 + $0x160] sm:$0xff]   ;;  %v1122_v61 = vld [vmem:[%s1415_s1 + $0x168] sm:$0xff]  }
  0x12   :  { %980 = vmatprep.subr.bf16.mxu1 %v1088_v18  ;;  %v1117_v56 = vld [vmem:[%s1415_s1 + $0x198] sm:$0xff]   ;;  %v1119_v58 = vld [vmem:[%s1415_s1 + $0x120] sm:$0xff]   ;;  %v1123_v62 = vld [vmem:[%s1415_s1 + $0x128] sm:$0xff]  }
  0x13   :  { %959 = vmatpush3.bf16.msra.mxu0 %v1087_v17  ;;  %v1120_v59 = vld [vmem:[%s1415_s1 + $0x1e0] sm:$0xff]   ;;  %v1124_v63 = vld [vmem:[%s1415_s1 + $0x1e8] sm:$0xff]   ;;  %v1126_v1 = vld [vmem:[%s1415_s1 + $0x170] sm:$0xff]  }
  0x14   :  { %960 = vmatprep.subr.bf16.mxu0 %v1090_v20  ;;  %v1121_v60 = vld [vmem:[%s1415_s1 + $0x1a0] sm:$0xff]   ;;  %v1125_v0 = vld [vmem:[%s1415_s1 + $0x1a8] sm:$0xff]   ;;  %v1127_v2 = vld [vmem:[%s1415_s1 + $0x130] sm:$0xff]  }
  0x15   :  { %981 = vmatpush3.bf16.msra.mxu1 %v1089_v19  ;;  %v1128_v3 = vld [vmem:[%s1415_s1 + $0x1f0] sm:$0xff]   ;;  %v1130_v5 = vld [vmem:[%s1415_s1 + $0x178] sm:$0xff]   ;;  %v1134_v15 = vld [vmem:[%s1415_s1 + $0x200] sm:$0xff]  }
  0x16   :  { %982 = vmatprep.subr.bf16.mxu1 %v1092_v22  ;;  %v1129_v4 = vld [vmem:[%s1415_s1 + $0x1b0] sm:$0xff]   ;;  %v1131_v6 = vld [vmem:[%s1415_s1 + $0x138] sm:$0xff]   ;;  %v1135_v19 = vld [vmem:[%s1415_s1 + $0x208] sm:$0xff]  }
  0x17   :  { %961 = vmatpush3.bf16.msra.mxu0 %v1091_v21  ;;  %v1132_v7 = vld [vmem:[%s1415_s1 + $0x1f8] sm:$0xff]   ;;  %v19_v8 = vld [vmem:[%s1416_s0 + $0x10] sm:$0xff]  ;;  %v21_v20 = vld [vmem:[%s1416_s0 + $0x20] sm:$0xf] }
  0x18   :  { %962 = vmatprep.subr.bf16.mxu0 %v1094_v24  ;;  %v24_v9 = vmax.bf16 %v1142_v32, %v19_v8  ;;  %v1133_v10 = vld [vmem:[%s1415_s1 + $0x1b8] sm:$0xff]   ;;  %v1136_v21 = vld [vmem:[%s1415_s1 + $0x210] sm:$0xff]   ;;  %v26_v22 = vmax.bf16 %v1142_v32, %v21_v20  ;;  %v1138_v24 = vld [vmem:[%s1415_s1 + $0x220] sm:$0xff]  }
  0x19   :  { %983 = vmatpush3.bf16.msra.mxu1 %v1093_v23  ;;  %v20_v11 = vld [vmem:[%s1416_s0 + $0x18] sm:$0xff] }
  0x1a   :  { %984 = vmatprep.subr.bf16.mxu1 %v1096_v26  ;;  %v874_v12 = vcombine.high %v24_v9, %v24_v9  ;;  %v873_v13 = vcombine.low %v24_v9, %v24_v9  ;;  %v25_v14 = vmax.bf16 %v1142_v32, %v20_v11  ;;  %v1137_v23 = vld [vmem:[%s1415_s1 + $0x218] sm:$0xff]   ;;  %v1140_v26 = vld [vmem:[%s1415_s1 + $0x230] sm:$0xff]  }
  0x1b   :  { %963 = vmatpush3.bf16.msra.mxu0 %v1095_v25  ;;  %v1139_v25 = vld [vmem:[%s1415_s1 + $0x228] sm:$0xff]  }
  0x1c   :  { %964 = vmatprep.subr.bf16.mxu0 %v1098_v28  ;;  %v876_v17 = vcombine.high %v25_v14, %v25_v14  ;;  %v875_v18 = vcombine.low %v25_v14, %v25_v14  ;;  %v877_v28 = vcombine.low %v26_v22, %v26_v22 }
  0x1d   :  { %985 = vmatpush3.bf16.msra.mxu1 %v1097_v27  ;;  %v1141_v27 = vld [vmem:[%s1415_s1 + $0x238] sm:$0xff]  }
  0x1e   :  { %986 = vmatprep.subr.bf16.mxu1 %v1100_v30  ;;  %v868_v30 = vld [vmem:[%s1417_s2] ss:$0 sm:$0xff] }
  0x1f   :  { %965 = vmatpush3.bf16.msra.mxu0 %v1099_v29 }
  0x20   :  { %994 = vmatprep.subr.bf16.mxu0 %v1102_v35 }
  0x21   :  { %987 = vmatpush3.bf16.msra.mxu1 %v1101_v34 }
  0x22   :  { %675 = vmatmul.mubr.bf16.vlgmr.msra.gmra.mrb[0].mxu0 %v869_v38  ;;  %1016 = vmatprep.subr.bf16.mxu1 %v1104_v41 }
  0x23   :  { %995 = vmatpush3.bf16.msra.mxu0 %v1103_v40  ;;  %754 = vmatprep.mubr.bf16.mxu0 %v874_v12 }
  0x24   :  { %715 = vmatmul.mubr.bf16.vlgmr.msra.gmra.mrb[0].mxu1 %v871_v43  ;;  %996 = vmatprep.subr.bf16.mxu0 %v1106_v45 }
  0x25   :  { %1017 = vmatpush3.bf16.msra.mxu1 %v1105_v44  ;;  %794 = vmatprep.mubr.bf16.mxu1 %v876_v17 }
  0x26   :  { %1018 = vmatprep.subr.bf16.mxu1 %v1108_v47 }
  0x27   :  { %997 = vmatpush3.bf16.msra.mxu0 %v1107_v46 }
  0x28   :  { %998 = vmatprep.subr.bf16.mxu0 %v1110_v49 }
  0x29   :  { %1019 = vmatpush3.bf16.msra.mxu1 %v1109_v48 }
  0x2a   :  { %1020 = vmatprep.subr.bf16.mxu1 %v1112_v51 }
  0x2b   :  { %999 = vmatpush3.bf16.msra.mxu0 %v1111_v50 }
  0x2c   :  { %1000 = vmatprep.subr.bf16.mxu0 %v1114_v53 }
  0x2d   :  { %1021 = vmatpush3.bf16.msra.mxu1 %v1113_v52 }
  0x2e   :  { %1022 = vmatprep.subr.bf16.mxu1 %v1116_v55 }
  0x2f   :  { %1001 = vmatpush3.bf16.msra.mxu0 %v1115_v54 }
  0x30   :  { %1002 = vmatprep.subr.bf16.mxu0 %v1118_v57 }
  0x31   :  { %1023 = vmatpush3.bf16.msra.mxu1 %v1117_v56 }
  0x32   :  { %1024 = vmatprep.subr.bf16.mxu1 %v1120_v59 }
  0x33   :  { %1003 = vmatpush3.bf16.msra.mxu0 %v1119_v58 }
  0x34   :  { %1004 = vmatprep.subr.bf16.mxu0 %v1122_v61 }
  0x35   :  { %1025 = vmatpush3.bf16.msra.mxu1 %v1121_v60 }
  0x36   :  { %1026 = vmatprep.subr.bf16.mxu1 %v1124_v63 }
  0x37   :  { %1005 = vmatpush3.bf16.msra.mxu0 %v1123_v62 }
  0x38   :  { %1006 = vmatprep.subr.bf16.mxu0 %v1126_v1 }
  0x39   :  { %1027 = vmatpush3.bf16.msra.mxu1 %v1125_v0 }
  0x3a   :  { %1028 = vmatprep.subr.bf16.mxu1 %v1128_v3 }
  0x3b   :  { %1007 = vmatpush3.bf16.msra.mxu0 %v1127_v2 }
  0x3c   :  { %1008 = vmatprep.subr.bf16.mxu0 %v1130_v5 }
  0x3d   :  { %1029 = vmatpush3.bf16.msra.mxu1 %v1129_v4 }
  0x3e   :  { %1030 = vmatprep.subr.bf16.mxu1 %v1132_v7 }
  0x3f   :  { %1009 = vmatpush3.bf16.msra.mxu0 %v1131_v6 }
  0x40   :  { %1047 = vmatprep.subr.bf16.mxu0 %v1143_v16 }
  0x41   :  { %1031 = vmatpush3.bf16.msra.mxu1 %v1133_v10 }
  0x42   :  { %755 = vmatmul.mubr.bf16.vlgmr.msra.gmra.mrb[4].mxu0 %v873_v13 }
  0x43   :  { %1048 = vmatpush3.bf16.msra.mxu0 %v1134_v15  ;;  %1063 = vmatprep.mubr.msk.bf16.mxu0 %vm1144_vm0, %v1143_v16 }
  0x44   :  { %795 = vmatmul.mubr.bf16.vlgmr.msra.gmra.mrb[4].mxu1 %v875_v18  ;;  %1049 = vmatprep.subr.bf16.mxu0 %v1143_v16 }
  0x47   :  { %1050 = vmatpush3.bf16.msra.mxu0 %v1135_v19 }
  0x48   :  { %1051 = vmatprep.subr.bf16.mxu0 %v1143_v16 }
  0x4b   :  { %1052 = vmatpush3.bf16.msra.mxu0 %v1136_v21 }
  0x4c   :  { %1053 = vmatprep.subr.bf16.mxu0 %v1143_v16 }
  0x4f   :  { %1054 = vmatpush3.bf16.msra.mxu0 %v1137_v23 }
  0x50   :  { %1055 = vmatprep.subr.bf16.mxu0 %v1143_v16 }
  0x53   :  { %1056 = vmatpush3.bf16.msra.mxu0 %v1138_v24 }
  0x54   :  { %1057 = vmatprep.subr.bf16.mxu0 %v1143_v16 }
  0x57   :  { %1058 = vmatpush3.bf16.msra.mxu0 %v1139_v25 }
  0x58   :  { %1059 = vmatprep.subr.bf16.mxu0 %v1143_v16 }
  0x5b   :  { %1060 = vmatpush3.bf16.msra.mxu0 %v1140_v26 }
  0x5c   :  { %1061 = vmatprep.subr.bf16.mxu0 %v1143_v16 }
  0x5f   :  { %1062 = vmatpush3.bf16.msra.mxu0 %v1141_v27 }
  0x62   :  { %1064 = vmatmul.mubr.bf16.vlgmr.msra.gmra.mrb[8].mxu0 %v877_v28 }
  0xf5   :  { %v966_v29 = vpop.f32.mrb[0].mxu0 }
  0xf6   :  { %v967_v31 = vpop.f32.mrb[1].mxu0 }
  0xf7   :  { %v968_v32 = vadd.f32 %v967_v31, %v966_v29  ;;  %v969_v33 = vpop.f32.mrb[2].mxu0  ;;  %v988_v34 = vpop.f32.mrb[0].mxu1 }
  0xf8   :  { %v970_v35 = vpop.f32.mrb[3].mxu0  ;;  %v989_v36 = vpop.f32.mrb[1].mxu1 }
  0xf9   :  { %v677_v37 = vadd.f32 %v968_v32, %v868_v30  ;;  %v990_v38 = vadd.f32 %v989_v36, %v988_v34  ;;  %v991_v39 = vpop.f32.mrb[2].mxu1 }
  0xfa   :  { %v992_v40 = vpop.f32.mrb[3].mxu1 }
  0xfb   :  { %v717_v41 = vadd.f32 %v990_v38, %v677_v37 }
 0x115   :  { %v1010_v42 = vpop.f32.mrb[4].mxu0 }
 0x116   :  { %v1011_v43 = vpop.f32.mrb[5].mxu0 }
 0x117   :  { %v1012_v44 = vadd.f32 %v1011_v43, %v1010_v42  ;;  %v1013_v45 = vpop.f32.mrb[6].mxu0  ;;  %v1032_v46 = vpop.f32.mrb[4].mxu1 }
 0x118   :  { %v1014_v47 = vpop.f32.mrb[7].mxu0  ;;  %v1033_v48 = vpop.f32.mrb[5].mxu1 }
 0x119   :  { %v757_v49 = vadd.f32 %v1012_v44, %v717_v41  ;;  %v1034_v50 = vadd.f32 %v1033_v48, %v1032_v46  ;;  %v1035_v51 = vpop.f32.mrb[6].mxu1 }
 0x11a   :  { %v1036_v52 = vpop.f32.mrb[7].mxu1 }
 0x11b   :  { %v797_v53 = vadd.f32 %v1034_v50, %v757_v49 }
 0x135   :  { %v836_v54 = vpop.f32.mrb[8].mxu0 }
 0x136   :  { %v837_v55 = vadd.f32 %v836_v54, %v797_v53  ;;  %v1065_v56 = vpop.f32.mrb[9].mxu0 }
 0x137   :  { %v839_v57 = vpop.f32.mrb[10].mxu0 }
 0x138   :  { %v842_v58 = vrot.slane %v837_v55, 4  ;;  %v848_v59 = vmul.f32 %v837_v55, %v837_v55  ;;  %v858_v60 = vpack.c.bf16 %v837_v55, %v837_v55  ;;  %v1066_v61 = vpop.f32.mrb[11].mxu0 }
 0x13a   :  { %v843_v62 = vadd.f32 %v842_v58, %v837_v55  ;;  %v849_v63 = vrot.slane %v848_v59, 4  ;;  %859 = vst [vmem:[%s1418_s3] sm:$0xf] %v858_v60 }
 0x13c   :  { %v844_v0 = vrot.slane %v843_v62, 2  ;;  %v850_v1 = vadd.f32 %v849_v63, %v848_v59 }
 0x13e   :  { %v845_v2 = vadd.f32 %v844_v0, %v843_v62  ;;  %v851_v3 = vrot.slane %v850_v1, 2 }
 0x140   :  { %v846_v4 = vrot.slane %v845_v2, 1  ;;  %v852_v5 = vadd.f32 %v851_v3, %v850_v1 }
 0x142   :  { %v853_v6 = vrot.slane %v852_v5, 1  ;;  %v847_v7 = vadd.f32 %v846_v4, %v845_v2 }
 0x144   :  { %v854_v8 = vadd.f32 %v853_v6, %v852_v5 }
 0x146   :  { %v856_v9 = vsel %vm855_vm1, %v847_v7, %v854_v8 }
 0x147   :  { %857 = vst [vmem:[%s1419_s4] sm:$0x3] %v856_v9 }

// kernel: unet_generator.17
= control target key start
LH: loop header
LB: loop body
LE: loop exit
PB: predicated region body
PF: predicated region fallthrough
CT: control target
= control target key end

     0   :  { %v772_v33 = vmov 0   ;;  %vm386_vm0 = vcmask 523264   ;;  %vm562_vm1 = vcmask 1040384   ;;  %s954_s1 = inlined_call_operand.vmem [shape: bf16[576,128], index: 1, kind: input, shape index: {}]   ;;  %s955_s0 = inlined_call_operand.vmem [shape: bf16[32,576], index: 0, kind: input, shape index: {}]   ;;  %s956_s2 = inlined_call_operand.vmem [shape: f32[1,128], index: 2, kind: input, shape index: {}]   ;;  %s957_s3 = inlined_call_operand.vmem [shape: bf16[32,128], index: 3, kind: output, shape index: {0}]   ;;  %s958_s4 = inlined_call_operand.vmem [shape: f32[1,2,128], index: 4, kind: output, shape index: {1}]  }
   0x1   :  { %v736_v0 = vld [vmem:[%s954_s1 + $0x40] sm:$0xff]   ;;  %v740_v4 = vld [vmem:[%s954_s1 + $0x48] sm:$0xff]   ;;  %v744_v8 = vld [vmem:[%s954_s1 + $0x50] sm:$0xff]  }
   0x2   :  { %v737_v1 = vld [vmem:[%s954_s1] sm:$0xff]   ;;  %661 = vmatprep.subr.bf16.mxu0 %v736_v0  ;;  %v741_v5 = vld [vmem:[%s954_s1 + $0x8] sm:$0xff]   ;;  %v745_v9 = vld [vmem:[%s954_s1 + $0x10] sm:$0xff]  }
   0x3   :  { %v738_v2 = vld [vmem:[%s954_s1 + $0xc0] sm:$0xff]   ;;  %662 = vmatpush3.bf16.msra.mxu0 %v737_v1  ;;  %v742_v6 = vld [vmem:[%s954_s1 + $0xc8] sm:$0xff]   ;;  %v746_v10 = vld [vmem:[%s954_s1 + $0xd0] sm:$0xff]  }
   0x4   :  { %v739_v3 = vld [vmem:[%s954_s1 + $0x80] sm:$0xff]   ;;  %689 = vmatprep.subr.bf16.mxu1 %v738_v2  ;;  %663 = vmatprep.subr.bf16.mxu0 %v740_v4  ;;  %v743_v7 = vld [vmem:[%s954_s1 + $0x88] sm:$0xff]   ;;  %v747_v11 = vld [vmem:[%s954_s1 + $0x90] sm:$0xff]  }
   0x5   :  { %690 = vmatpush3.bf16.msra.mxu1 %v739_v3  ;;  %v748_v12 = vld [vmem:[%s954_s1 + $0x58] sm:$0xff]   ;;  %v752_v16 = vld [vmem:[%s954_s1 + $0x60] sm:$0xff]   ;;  %v756_v20 = vld [vmem:[%s954_s1 + $0x68] sm:$0xff]  }
   0x6   :  { %691 = vmatprep.subr.bf16.mxu1 %v742_v6  ;;  %v749_v13 = vld [vmem:[%s954_s1 + $0x18] sm:$0xff]   ;;  %v753_v17 = vld [vmem:[%s954_s1 + $0x20] sm:$0xff]   ;;  %v757_v21 = vld [vmem:[%s954_s1 + $0x28] sm:$0xff]  }
   0x7   :  { %664 = vmatpush3.bf16.msra.mxu0 %v741_v5  ;;  %v750_v14 = vld [vmem:[%s954_s1 + $0xd8] sm:$0xff]   ;;  %v754_v18 = vld [vmem:[%s954_s1 + $0xe0] sm:$0xff]   ;;  %v758_v22 = vld [vmem:[%s954_s1 + $0xe8] sm:$0xff]  }
   0x8   :  { %665 = vmatprep.subr.bf16.mxu0 %v744_v8  ;;  %v751_v15 = vld [vmem:[%s954_s1 + $0x98] sm:$0xff]   ;;  %v755_v19 = vld [vmem:[%s954_s1 + $0xa0] sm:$0xff]   ;;  %v759_v23 = vld [vmem:[%s954_s1 + $0xa8] sm:$0xff]  }
   0x9   :  { %692 = vmatpush3.bf16.msra.mxu1 %v743_v7  ;;  %v760_v24 = vld [vmem:[%s954_s1 + $0x70] sm:$0xff]   ;;  %v764_v28 = vld [vmem:[%s954_s1 + $0x78] sm:$0xff]   ;;  %v17_v31 = vld [vmem:[%s955_s0] sm:$0xff] }
   0xa   :  { %693 = vmatprep.subr.bf16.mxu1 %v746_v10  ;;  %v761_v25 = vld [vmem:[%s954_s1 + $0x30] sm:$0xff]   ;;  %v765_v29 = vld [vmem:[%s954_s1 + $0x38] sm:$0xff]   ;;  %v29_v34 = vmax.bf16 %v772_v33, %v17_v31  ;;  %v768_v37 = vld [vmem:[%s954_s1 + $0x100] sm:$0xff]  }
   0xb   :  { %666 = vmatpush3.bf16.msra.mxu0 %v745_v9  ;;  %v762_v26 = vld [vmem:[%s954_s1 + $0xf0] sm:$0xff]   ;;  %v766_v30 = vld [vmem:[%s954_s1 + $0xf8] sm:$0xff]   ;;  %v18_v38 = vld [vmem:[%s955_s0 + $0x8] sm:$0xff] }
   0xc   :  { %667 = vmatprep.subr.bf16.mxu0 %v748_v12  ;;  %v763_v27 = vld [vmem:[%s954_s1 + $0xb0] sm:$0xff]   ;;  %v767_v36 = vld [vmem:[%s954_s1 + $0xb8] sm:$0xff]   ;;  %v30_v42 = vmax.bf16 %v772_v33, %v18_v38  ;;  %v769_v44 = vld [vmem:[%s954_s1 + $0x108] sm:$0xff]  }
   0xd   :  { %694 = vmatpush3.bf16.msra.mxu1 %v747_v11  ;;  %v20_v32 = vld [vmem:[%s955_s0 + $0x14] sm:$0xff]  ;;  %v21_v41 = vld [vmem:[%s955_s0 + $0x1c] sm:$0xff]  ;;  %v23_v45 = vld [vmem:[%s955_s0 + $0x28] sm:$0xff] }
   0xe   :  { %695 = vmatprep.subr.bf16.mxu1 %v750_v14  ;;  %v32_v35 = vmax.bf16 %v772_v33, %v20_v32  ;;  %v33_v43 = vmax.bf16 %v772_v33, %v21_v41  ;;  %v26_v46 = vld [vmem:[%s955_s0 + $0x3c] sm:$0xff]  ;;  %v35_v47 = vmax.bf16 %v772_v33, %v23_v45  ;;  %v24_v51 = vld [vmem:[%s955_s0 + $0x30] sm:$0xff]  ;;  %v27_v52 = vld [vmem:[%s955_s0 + $0x44] sm:$0xff] }
   0xf   :  { %668 = vmatpush3.bf16.msra.mxu0 %v749_v13  ;;  %v38_v48 = vmax.bf16 %v772_v33, %v26_v46  ;;  %v36_v54 = vmax.bf16 %v772_v33, %v24_v51  ;;  %v39_v55 = vmax.bf16 %v772_v33, %v27_v52  ;;  %v19_v56 = vld [vmem:[%s955_s0 + $0x10] sm:$0xf]  ;;  %v22_v58 = vld [vmem:[%s955_s0 + $0x24] sm:$0xf]  ;;  %v25_v0 = vld [vmem:[%s955_s0 + $0x38] sm:$0xf] }
  0x10   :  { %669 = vmatprep.subr.bf16.mxu0 %v752_v16  ;;  %v595_v39 = vcombine.high %v29_v34, %v32_v35  ;;  %v594_v40 = vcombine.low %v29_v34, %v32_v35  ;;  %v597_v49 = vcombine.high %v30_v42, %v33_v43  ;;  %v596_v50 = vcombine.low %v30_v42, %v33_v43  ;;  %v770_v57 = vld [vmem:[%s954_s1 + $0x110] sm:$0xff]   ;;  %v28_v1 = vld [vmem:[%s955_s0 + $0x4c] sm:$0xf]  ;;  %v771_v2 = vld [vmem:[%s954_s1 + $0x118] sm:$0xff]  }
  0x11   :  { %696 = vmatpush3.bf16.msra.mxu1 %v751_v15  ;;  %v600_v53 = vcombine.high %v35_v47, %v38_v48  ;;  %v31_v59 = vmax.bf16 %v772_v33, %v19_v56  ;;  %v602_v60 = vcombine.high %v36_v54, %v39_v55  ;;  %v34_v61 = vmax.bf16 %v772_v33, %v22_v58  ;;  %v593_v8 = vld [vmem:[%s956_s2] ss:$0 sm:$0xff] }
  0x12   :  { %697 = vmatprep.subr.bf16.mxu1 %v754_v18  ;;  %425 = vmatprep.mubr.bf16.mxu0 %v595_v39  ;;  %v599_v62 = vcombine.low %v35_v47, %v38_v48  ;;  %v601_v3 = vcombine.low %v36_v54, %v39_v55  ;;  %v37_v4 = vmax.bf16 %v772_v33, %v25_v0 }
  0x13   :  { %670 = vmatpush3.bf16.msra.mxu0 %v753_v17  ;;  %474 = vmatprep.mubr.bf16.mxu1 %v597_v49  ;;  %v598_v63 = vcombine.low %v31_v59, %v34_v61  ;;  %v40_v5 = vmax.bf16 %v772_v33, %v28_v1 }
  0x14   :  { %671 = vmatprep.subr.bf16.mxu0 %v756_v20 }
  0x15   :  { %698 = vmatpush3.bf16.msra.mxu1 %v755_v19  ;;  %v603_v6 = vcombine.low %v37_v4, %v40_v5 }
  0x16   :  { %699 = vmatprep.subr.bf16.mxu1 %v758_v22 }
  0x17   :  { %672 = vmatpush3.bf16.msra.mxu0 %v757_v21 }
  0x18   :  { %673 = vmatprep.subr.bf16.mxu0 %v760_v24 }
  0x19   :  { %700 = vmatpush3.bf16.msra.mxu1 %v759_v23 }
  0x1a   :  { %701 = vmatprep.subr.bf16.mxu1 %v762_v26 }
  0x1b   :  { %674 = vmatpush3.bf16.msra.mxu0 %v761_v25 }
  0x1c   :  { %675 = vmatprep.subr.bf16.mxu0 %v764_v28 }
  0x1d   :  { %702 = vmatpush3.bf16.msra.mxu1 %v763_v27 }
  0x1e   :  { %703 = vmatprep.subr.bf16.mxu1 %v766_v30 }
  0x1f   :  { %676 = vmatpush3.bf16.msra.mxu0 %v765_v29 }
  0x20   :  { %723 = vmatprep.subr.bf16.mxu0 %v768_v37 }
  0x21   :  { %704 = vmatpush3.bf16.msra.mxu1 %v767_v36 }
  0x22   :  { %426 = vmatmul.mubr.bf16.vlgmr.msra.gmra.mrb[0].mxu0 %v594_v40 }
  0x23   :  { %724 = vmatpush3.bf16.msra.mxu0 %v768_v37  ;;  %433 = vmatprep.mubr.bf16.mxu0 %v600_v53 }
  0x24   :  { %725 = vmatprep.subr.bf16.mxu0 %v769_v44  ;;  %475 = vmatmul.mubr.bf16.vlgmr.msra.gmra.mrb[0].mxu1 %v596_v50 }
  0x25   :  { %482 = vmatprep.mubr.bf16.mxu1 %v602_v60 }
  0x27   :  { %726 = vmatpush3.bf16.msra.mxu0 %v769_v44 }
  0x28   :  { %727 = vmatprep.subr.bf16.mxu0 %v770_v57 }
  0x2a   :  { %434 = vmatmul.mubr.bf16.gmra.mrb[4].mxu0 %v599_v62 }
  0x2b   :  { %728 = vmatpush3.bf16.msra.mxu0 %v770_v57  ;;  %731 = vmatprep.mubr.msk.bf16.mxu0 %vm386_vm0, %v598_v63 }
  0x2c   :  { %729 = vmatprep.subr.bf16.mxu0 %v771_v2  ;;  %483 = vmatmul.mubr.bf16.gmra.mrb[4].mxu1 %v601_v3 }
  0x2f   :  { %730 = vmatpush3.bf16.msra.mxu0 %v771_v2 }
  0x32   :  { %732 = vmatmul.mubr.msk.bf16.vlgmr.msra.gmra.mrb[8].mxu0 %vm386_vm0, %v603_v6 }
  0xf5   :  { %v677_v7 = vpop.f32.mrb[0].mxu0 }
  0xf6   :  { %v678_v9 = vpop.f32.mrb[1].mxu0 }
  0xf7   :  { %v679_v10 = vadd.f32 %v678_v9, %v677_v7  ;;  %v680_v11 = vpop.f32.mrb[2].mxu0  ;;  %v705_v12 = vpop.f32.mrb[0].mxu1 }
  0xf8   :  { %v681_v13 = vpop.f32.mrb[3].mxu0  ;;  %v706_v16 = vpop.f32.mrb[1].mxu1 }
  0xf9   :  { %v428_v14 = vadd.f32 %v679_v10, %v593_v8  ;;  %v682_v15 = vadd.f32 %v681_v13, %v680_v11  ;;  %v707_v17 = vadd.f32 %v706_v16, %v705_v12  ;;  %v708_v18 = vpop.f32.mrb[2].mxu1 }
  0xfa   :  { %v709_v20 = vpop.f32.mrb[3].mxu1 }
  0xfb   :  { %v431_v19 = vadd.f32 %v682_v15, %v593_v8  ;;  %v710_v21 = vadd.f32 %v709_v20, %v708_v18  ;;  %v477_v22 = vadd.f32 %v707_v17, %v428_v14 }
  0xfd   :  { %v683_v23 = vpop.f32.mrb[4].mxu0  ;;  %v480_v25 = vadd.f32 %v710_v21, %v431_v19 }
  0xfe   :  { %v684_v24 = vpop.f32.mrb[5].mxu0 }
  0xff   :  { %v685_v26 = vadd.f32 %v684_v24, %v683_v23  ;;  %v686_v27 = vpop.f32.mrb[6].mxu0  ;;  %v711_v28 = vpop.f32.mrb[4].mxu1 }
 0x100   :  { %v687_v29 = vpop.f32.mrb[7].mxu0  ;;  %v712_v32 = vpop.f32.mrb[5].mxu1 }
 0x101   :  { %v436_v30 = vadd.f32 %v685_v26, %v593_v8  ;;  %v688_v31 = vadd.f32 %v687_v29, %v686_v27  ;;  %v713_v33 = vadd.f32 %v712_v32, %v711_v28  ;;  %v714_v34 = vpop.f32.mrb[6].mxu1 }
 0x102   :  { %v715_v36 = vpop.f32.mrb[7].mxu1 }
 0x103   :  { %v439_v35 = vadd.f32 %v688_v31, %v593_v8  ;;  %v716_v37 = vadd.f32 %v715_v36, %v714_v34  ;;  %v485_v38 = vadd.f32 %v713_v33, %v436_v30 }
 0x105   :  { %v733_v39 = vpop.f32.mrb[8].mxu0  ;;  %v488_v42 = vadd.f32 %v716_v37, %v439_v35 }
 0x106   :  { %v534_v40 = vadd.f32 %v733_v39, %v485_v38  ;;  %v525_v41 = vpop.f32.mrb[9].mxu0 }
 0x107   :  { %v526_v43 = vadd.f32 %v525_v41, %v477_v22  ;;  %v734_v44 = vpop.f32.mrb[10].mxu0 }
 0x108   :  { %v537_v45 = vadd.f32 %v734_v44, %v488_v42  ;;  %v528_v46 = vpop.f32.mrb[11].mxu0  ;;  %v551_v53 = vmul.f32 %v534_v40, %v534_v40 }
 0x109   :  { %v529_v47 = vadd.f32 %v528_v46, %v480_v25  ;;  %v549_v49 = vmul.f32 %v526_v43, %v526_v43 }
 0x10a   :  { %v658_v48 = vpack.c.bf16 %v537_v45, %v534_v40  ;;  %v552_v56 = vmul.f32 %v537_v45, %v537_v45 }
 0x10b   :  { %v540_v50 = vadd.f32 %v529_v47, %v526_v43  ;;  %v550_v51 = vmul.f32 %v529_v47, %v529_v47  ;;  %v653_v52 = vpack.c.bf16 %v529_v47, %v526_v43 }
 0x10c   :  { %660 = vst [vmem:[%s957_s3 + $0x8] sm:$0xff] %v658_v48  }
 0x10d   :  { %v541_v54 = vadd.f32 %v540_v50, %v534_v40  ;;  %v553_v55 = vadd.f32 %v550_v51, %v549_v49  ;;  %654 = vst [vmem:[%s957_s3] sm:$0xff] %v653_v52  }
 0x10f   :  { %v542_v57 = vadd.f32 %v541_v54, %v537_v45  ;;  %v554_v58 = vadd.f32 %v553_v55, %v551_v53 }
 0x111   :  { %v543_v59 = vrot.slane %v542_v57, 4  ;;  %v555_v60 = vadd.f32 %v554_v58, %v552_v56 }
 0x113   :  { %v544_v61 = vadd.f32 %v543_v59, %v542_v57  ;;  %v556_v62 = vrot.slane %v555_v60, 4 }
 0x115   :  { %v545_v63 = vrot.slane %v544_v61, 2  ;;  %v557_v0 = vadd.f32 %v556_v62, %v555_v60 }
 0x117   :  { %v546_v1 = vadd.f32 %v545_v63, %v544_v61  ;;  %v558_v2 = vrot.slane %v557_v0, 2 }
 0x119   :  { %v547_v3 = vrot.slane %v546_v1, 1  ;;  %v559_v4 = vadd.f32 %v558_v2, %v557_v0 }
 0x11b   :  { %v560_v5 = vrot.slane %v559_v4, 1  ;;  %v548_v6 = vadd.f32 %v547_v3, %v546_v1 }
 0x11d   :  { %v561_v7 = vadd.f32 %v560_v5, %v559_v4 }
 0x11f   :  { %v563_v8 = vsel %vm562_vm1, %v548_v6, %v561_v7 }
 0x120   :  { %564 = vst [vmem:[%s958_s4] sm:$0x3] %v563_v8 }

// kernel: unet_generator.18
= control target key start
LH: loop header
LB: loop body
LE: loop exit
PB: predicated region body
PF: predicated region fallthrough
CT: control target
= control target key end

     0   :  { %v979_v14 = vmov 0   ;;  %vm352_vm0 = vcmask 261120   ;;  %vm629_vm1 = vcmask 1040384   ;;  %s1255_s1 = inlined_call_operand.vmem [shape: bf16[288,128], index: 1, kind: input, shape index: {}]   ;;  %s1256_s0 = inlined_call_operand.vmem [shape: bf16[128,288], index: 0, kind: input, shape index: {}]   ;;  %s1257_s2 = inlined_call_operand.vmem [shape: f32[1,128], index: 2, kind: input, shape index: {}]   ;;  %s1258_s3 = inlined_call_operand.vmem [shape: bf16[128,128], index: 3, kind: output, shape index: {0}]   ;;  %s1259_s4 = inlined_call_operand.vmem [shape: f32[1,2,128], index: 4, kind: output, shape index: {1}]  }
   0x1   :  { %v961_v0 = vld [vmem:[%s1255_s1 + $0x40] sm:$0xff]   ;;  %v963_v2 = vld [vmem:[%s1255_s1 + $0x48] sm:$0xff]   ;;  %v965_v4 = vld [vmem:[%s1255_s1 + $0x50] sm:$0xff]  }
   0x2   :  { %v962_v1 = vld [vmem:[%s1255_s1] sm:$0xff]   ;;  %850 = vmatprep.subr.bf16.mxu0 %v961_v0  ;;  %944 = vmatprep.subr.bf16.mxu1 %v961_v0  ;;  %v964_v3 = vld [vmem:[%s1255_s1 + $0x8] sm:$0xff]   ;;  %v966_v5 = vld [vmem:[%s1255_s1 + $0x10] sm:$0xff]  }
   0x3   :  { %851 = vmatpush3.bf16.msra.mxu0 %v962_v1  ;;  %952 = vmatpush3.bf16.msra.mxu1 %v962_v1  ;;  %v967_v6 = vld [vmem:[%s1255_s1 + $0x58] sm:$0xff]   ;;  %v969_v8 = vld [vmem:[%s1255_s1 + $0x60] sm:$0xff]   ;;  %v971_v10 = vld [vmem:[%s1255_s1 + $0x68] sm:$0xff]  }
   0x4   :  { %852 = vmatprep.subr.bf16.mxu0 %v963_v2  ;;  %945 = vmatprep.subr.bf16.mxu1 %v963_v2  ;;  %v968_v7 = vld [vmem:[%s1255_s1 + $0x18] sm:$0xff]   ;;  %v970_v9 = vld [vmem:[%s1255_s1 + $0x20] sm:$0xff]   ;;  %v19_v12 = vld [vmem:[%s1256_s0 + $0xc] sm:$0xff] }
   0x5   :  { %v17_v11 = vld [vmem:[%s1256_s0] sm:$0xff]  ;;  %v41_v13 = vld [vmem:[%s1256_s0 + $0x90] sm:$0xff]  ;;  %v51_v16 = vmax.bf16 %v979_v14, %v19_v12  ;;  %v972_v20 = vld [vmem:[%s1255_s1 + $0x28] sm:$0xff]  }
   0x6   :  { %v49_v15 = vmax.bf16 %v979_v14, %v17_v11  ;;  %v43_v17 = vld [vmem:[%s1256_s0 + $0x9c] sm:$0xff]  ;;  %v73_v18 = vmax.bf16 %v979_v14, %v41_v13  ;;  %v973_v22 = vld [vmem:[%s1255_s1 + $0x70] sm:$0xff]   ;;  %v23_v27 = vld [vmem:[%s1256_s0 + $0x24] sm:$0xff] }
   0x7   :  { %853 = vmatpush3.bf16.msra.mxu0 %v964_v3  ;;  %953 = vmatpush3.bf16.msra.mxu1 %v964_v3  ;;  %v75_v19 = vmax.bf16 %v979_v14, %v43_v17  ;;  %v974_v24 = vld [vmem:[%s1255_s1 + $0x30] sm:$0xff]   ;;  %v975_v25 = vld [vmem:[%s1255_s1 + $0x78] sm:$0xff]   ;;  %v45_v28 = vld [vmem:[%s1256_s0 + $0xa8] sm:$0xff]  ;;  %v55_v32 = vmax.bf16 %v979_v14, %v23_v27 }
   0x8   :  { %854 = vmatprep.subr.bf16.mxu0 %v965_v4  ;;  %946 = vmatprep.subr.bf16.mxu1 %v965_v4  ;;  %v722_v21 = vcombine.high %v49_v15, %v51_v16  ;;  %v21_v26 = vld [vmem:[%s1256_s0 + $0x18] sm:$0xff]  ;;  %v77_v33 = vmax.bf16 %v979_v14, %v45_v28  ;;  %v977_v35 = vld [vmem:[%s1255_s1 + $0x80] sm:$0xff]   ;;  %v721_v36 = vcombine.low %v49_v15, %v51_v16  ;;  %v25_v40 = vld [vmem:[%s1256_s0 + $0x30] sm:$0xff] }
   0x9   :  { %v740_v23 = vcombine.high %v73_v18, %v75_v19  ;;  %v47_v29 = vld [vmem:[%s1256_s0 + $0xb4] sm:$0xff]  ;;  %v53_v30 = vmax.bf16 %v979_v14, %v21_v26  ;;  %v739_v37 = vcombine.low %v73_v18, %v75_v19  ;;  %v27_v41 = vld [vmem:[%s1256_s0 + $0x3c] sm:$0xff]  ;;  %v18_v42 = vld [vmem:[%s1256_s0 + $0x8] sm:$0xf]  ;;  %v57_v45 = vmax.bf16 %v979_v14, %v25_v40 }
   0xa   :  { %409 = vmatprep.mubr.bf16.mxu0 %v722_v21  ;;  %v976_v31 = vld [vmem:[%s1255_s1 + $0x38] sm:$0xff]   ;;  %v79_v34 = vmax.bf16 %v979_v14, %v47_v29  ;;  %v20_v43 = vld [vmem:[%s1256_s0 + $0x14] sm:$0xf]  ;;  %v978_v44 = vld [vmem:[%s1255_s1 + $0x88] sm:$0xff]   ;;  %v59_v46 = vmax.bf16 %v979_v14, %v27_v41  ;;  %v50_v47 = vmax.bf16 %v979_v14, %v18_v42 }
   0xb   :  { %855 = vmatpush3.bf16.msra.mxu0 %v966_v5  ;;  %954 = vmatpush3.bf16.msra.mxu1 %v966_v5  ;;  %v725_v38 = vcombine.high %v53_v30, %v55_v32  ;;  %v52_v48 = vmax.bf16 %v979_v14, %v20_v43  ;;  %v724_v49 = vcombine.low %v53_v30, %v55_v32  ;;  %v22_v53 = vld [vmem:[%s1256_s0 + $0x20] sm:$0xf]  ;;  %v24_v54 = vld [vmem:[%s1256_s0 + $0x2c] sm:$0xf]  ;;  %v31_v56 = vld [vmem:[%s1256_s0 + $0x54] sm:$0xff] }
   0xc   :  { %856 = vmatprep.subr.bf16.mxu0 %v967_v6  ;;  %947 = vmatprep.subr.bf16.mxu1 %v967_v6  ;;  %v743_v39 = vcombine.high %v77_v33, %v79_v34  ;;  %v742_v50 = vcombine.low %v77_v33, %v79_v34  ;;  %v728_v51 = vcombine.high %v57_v45, %v59_v46  ;;  %v29_v55 = vld [vmem:[%s1256_s0 + $0x48] sm:$0xff]  ;;  %v26_v57 = vld [vmem:[%s1256_s0 + $0x38] sm:$0xf]  ;;  %v28_v58 = vld [vmem:[%s1256_s0 + $0x44] sm:$0xf] }
   0xd   :  { %457 = vmatprep.mubr.bf16.mxu1 %v740_v23  ;;  %v723_v52 = vcombine.low %v50_v47, %v52_v48  ;;  %v54_v59 = vmax.bf16 %v979_v14, %v22_v53  ;;  %v56_v60 = vmax.bf16 %v979_v14, %v24_v54  ;;  %v61_v61 = vmax.bf16 %v979_v14, %v29_v55  ;;  %v30_v5 = vld [vmem:[%s1256_s0 + $0x50] sm:$0xf]  ;;  %v32_v6 = vld [vmem:[%s1256_s0 + $0x5c] sm:$0xf]  ;;  %v40_v23 = vld [vmem:[%s1256_s0 + $0x8c] sm:$0xf] }
   0xe   :  { %v63_v62 = vmax.bf16 %v979_v14, %v31_v56  ;;  %v58_v63 = vmax.bf16 %v979_v14, %v26_v57  ;;  %v60_v0 = vmax.bf16 %v979_v14, %v28_v58  ;;  %v727_v1 = vcombine.low %v57_v45, %v59_v46  ;;  %v42_v26 = vld [vmem:[%s1256_s0 + $0x98] sm:$0xf]  ;;  %v44_v27 = vld [vmem:[%s1256_s0 + $0xa4] sm:$0xf] }
   0xf   :  { %857 = vmatpush3.bf16.msra.mxu0 %v968_v7  ;;  %955 = vmatpush3.bf16.msra.mxu1 %v968_v7  ;;  %v726_v2 = vcombine.low %v54_v59, %v56_v60  ;;  %v33_v7 = vld [vmem:[%s1256_s0 + $0x60] sm:$0xff]  ;;  %v62_v11 = vmax.bf16 %v979_v14, %v30_v5  ;;  %v64_v12 = vmax.bf16 %v979_v14, %v32_v6 }
  0x10   :  { %858 = vmatprep.subr.bf16.mxu0 %v969_v8  ;;  %948 = vmatprep.subr.bf16.mxu1 %v969_v8  ;;  %v731_v3 = vcombine.high %v61_v61, %v63_v62  ;;  %v729_v4 = vcombine.low %v58_v63, %v60_v0  ;;  %v35_v8 = vld [vmem:[%s1256_s0 + $0x6c] sm:$0xff]  ;;  %v65_v13 = vmax.bf16 %v979_v14, %v33_v7 }
  0x11   :  { %v67_v15 = vmax.bf16 %v979_v14, %v35_v8  ;;  %v730_v18 = vcombine.low %v61_v61, %v63_v62  ;;  %v732_v19 = vcombine.low %v62_v11, %v64_v12  ;;  %v72_v29 = vmax.bf16 %v979_v14, %v40_v23 }
  0x12   :  { %v74_v32 = vmax.bf16 %v979_v14, %v42_v26  ;;  %v76_v33 = vmax.bf16 %v979_v14, %v44_v27 }
  0x13   :  { %859 = vmatpush3.bf16.msra.mxu0 %v970_v9  ;;  %956 = vmatpush3.bf16.msra.mxu1 %v970_v9  ;;  %v34_v9 = vld [vmem:[%s1256_s0 + $0x68] sm:$0xf]  ;;  %v733_v34 = vcombine.low %v65_v13, %v67_v15 }
  0x14   :  { %860 = vmatprep.subr.bf16.mxu0 %v971_v10  ;;  %949 = vmatprep.subr.bf16.mxu1 %v971_v10  ;;  %v36_v10 = vld [vmem:[%s1256_s0 + $0x74] sm:$0xf]  ;;  %v66_v16 = vmax.bf16 %v979_v14, %v34_v9 }
  0x15   :  { %v68_v17 = vmax.bf16 %v979_v14, %v36_v10 }
  0x17   :  { %861 = vmatpush3.bf16.msra.mxu0 %v972_v20  ;;  %957 = vmatpush3.bf16.msra.mxu1 %v972_v20  ;;  %v734_v20 = vcombine.high %v65_v13, %v67_v15  ;;  %v735_v21 = vcombine.low %v66_v16, %v68_v17 }
  0x18   :  { %862 = vmatprep.subr.bf16.mxu0 %v973_v22  ;;  %950 = vmatprep.subr.bf16.mxu1 %v973_v22  ;;  %v38_v22 = vld [vmem:[%s1256_s0 + $0x80] sm:$0xf] }
  0x19   :  { %v70_v28 = vmax.bf16 %v979_v14, %v38_v22 }
  0x1b   :  { %863 = vmatpush3.bf16.msra.mxu0 %v974_v24  ;;  %958 = vmatpush3.bf16.msra.mxu1 %v974_v24  ;;  %v37_v24 = vld [vmem:[%s1256_s0 + $0x78] sm:$0xff] }
  0x1c   :  { %864 = vmatprep.subr.bf16.mxu0 %v975_v25  ;;  %951 = vmatprep.subr.bf16.mxu1 %v975_v25  ;;  %v39_v25 = vld [vmem:[%s1256_s0 + $0x84] sm:$0xff]  ;;  %v69_v30 = vmax.bf16 %v979_v14, %v37_v24 }
  0x1f   :  { %865 = vmatpush3.bf16.msra.mxu0 %v976_v31  ;;  %959 = vmatpush3.bf16.msra.mxu1 %v976_v31  ;;  %v71_v31 = vmax.bf16 %v979_v14, %v39_v25 }
  0x20   :  { %924 = vmatprep.subr.bf16.mxu1 %v977_v35 }
  0x21   :  { %v736_v42 = vcombine.low %v69_v30, %v71_v31 }
  0x22   :  { %410 = vmatmul.mubr.bf16.vlgmr.msra.gmra.mrb[0].mxu0 %v721_v36  ;;  %458 = vmatmul.mubr.bf16.vlgmr.msra.gmra.mrb[0].mxu1 %v739_v37  ;;  %v737_v36 = vcombine.high %v69_v30, %v71_v31  ;;  %v741_v37 = vcombine.low %v74_v32, %v76_v33 }
  0x23   :  { %417 = vmatprep.mubr.bf16.mxu0 %v725_v38  ;;  %465 = vmatprep.mubr.bf16.mxu1 %v743_v39  ;;  %v46_v38 = vld [vmem:[%s1256_s0 + $0xb0] sm:$0xf]  ;;  %v48_v39 = vld [vmem:[%s1256_s0 + $0xbc] sm:$0xf] }
  0x24   :  { %925 = vmatpush3.bf16.msra.mxu1 %v977_v35  ;;  %v738_v35 = vcombine.low %v70_v28, %v72_v29  ;;  %v78_v40 = vmax.bf16 %v979_v14, %v46_v38  ;;  %v80_v41 = vmax.bf16 %v979_v14, %v48_v39 }
  0x25   :  { %926 = vmatprep.subr.bf16.mxu1 %v978_v44 }
  0x26   :  { %v744_v43 = vcombine.low %v78_v40, %v80_v41 }
  0x28   :  { %927 = vmatpush3.bf16.msra.mxu1 %v978_v44 }
  0x2a   :  { %418 = vmatmul.mubr.bf16.gmra.mrb[4].mxu0 %v724_v49  ;;  %466 = vmatmul.mubr.bf16.gmra.mrb[4].mxu1 %v742_v50 }
  0x2b   :  { %425 = vmatprep.mubr.bf16.mxu0 %v728_v51  ;;  %928 = vmatprep.mubr.msk.bf16.mxu1 %vm352_vm0, %v723_v52 }
  0x32   :  { %426 = vmatmul.mubr.bf16.gmra.mrb[8].mxu0 %v727_v1  ;;  %929 = vmatmul.mubr.msk.bf16.vlgmr.msra.gmra.mrb[8].mxu1 %vm352_vm0, %v726_v2 }
  0x33   :  { %433 = vmatprep.mubr.bf16.mxu0 %v731_v3  ;;  %932 = vmatprep.mubr.msk.bf16.mxu1 %vm352_vm0, %v729_v4  ;;  %v1206_v3 = vld [vmem:[%s1257_s2] ss:$0 sm:$0xff] }
  0x3a   :  { %434 = vmatmul.mubr.bf16.gmra.mrb[12].mxu0 %v730_v18  ;;  %933 = vmatmul.mubr.msk.bf16.gmra.mrb[12].mxu1 %vm352_vm0, %v732_v19 }
  0x3b   :  { %441 = vmatprep.mubr.bf16.mxu0 %v734_v20  ;;  %936 = vmatprep.mubr.msk.bf16.mxu1 %vm352_vm0, %v735_v21 }
  0x42   :  { %442 = vmatmul.mubr.bf16.gmra.mrb[16].mxu0 %v733_v34  ;;  %937 = vmatmul.mubr.msk.bf16.gmra.mrb[16].mxu1 %vm352_vm0, %v738_v35 }
  0x43   :  { %449 = vmatprep.mubr.bf16.mxu0 %v737_v36  ;;  %940 = vmatprep.mubr.msk.bf16.mxu1 %vm352_vm0, %v741_v37 }
  0x4a   :  { %450 = vmatmul.mubr.bf16.gmra.mrb[20].mxu0 %v736_v42  ;;  %941 = vmatmul.mubr.msk.bf16.gmra.mrb[20].mxu1 %vm352_vm0, %v744_v43 }
  0xf5   :  { %v866_v44 = vpop.f32.mrb[0].mxu0  ;;  %v902_v45 = vpop.f32.mrb[0].mxu1 }
  0xf6   :  { %v867_v46 = vpop.f32.mrb[1].mxu0  ;;  %v903_v47 = vpop.f32.mrb[1].mxu1 }
  0xf7   :  { %v868_v48 = vadd.f32 %v867_v46, %v866_v44  ;;  %v869_v49 = vpop.f32.mrb[2].mxu0  ;;  %v1195_v50 = vadd.f32 %v903_v47, %v902_v45  ;;  %v905_v51 = vpop.f32.mrb[2].mxu1 }
  0xf8   :  { %v870_v52 = vpop.f32.mrb[3].mxu0  ;;  %v906_v53 = vpop.f32.mrb[3].mxu1 }
  0xf9   :  { %v871_v14 = vadd.f32 %v870_v52, %v869_v49  ;;  %v1197_v54 = vadd.f32 %v906_v53, %v905_v51  ;;  %v412_v7 = vadd.f32 %v868_v48, %v1206_v3 }
  0xfb   :  { %v415_v17 = vadd.f32 %v871_v14, %v1206_v3 }
  0xfd   :  { %v872_v55 = vpop.f32.mrb[4].mxu0  ;;  %v908_v56 = vpop.f32.mrb[4].mxu1 }
  0xfe   :  { %v873_v57 = vpop.f32.mrb[5].mxu0  ;;  %v909_v58 = vpop.f32.mrb[5].mxu1 }
  0xff   :  { %v874_v59 = vadd.f32 %v873_v57, %v872_v55  ;;  %v875_v60 = vpop.f32.mrb[6].mxu0  ;;  %v1199_v61 = vadd.f32 %v909_v58, %v908_v56  ;;  %v911_v62 = vpop.f32.mrb[6].mxu1 }
 0x100   :  { %v876_v63 = vpop.f32.mrb[7].mxu0  ;;  %v912_v0 = vpop.f32.mrb[7].mxu1 }
 0x101   :  { %v877_v1 = vadd.f32 %v876_v63, %v875_v60  ;;  %v1201_v2 = vadd.f32 %v912_v0, %v911_v62  ;;  %v420_v4 = vadd.f32 %v874_v59, %v1206_v3 }
 0x103   :  { %v423_v11 = vadd.f32 %v877_v1, %v1206_v3 }
 0x105   :  { %v878_v5 = vpop.f32.mrb[8].mxu0  ;;  %v930_v6 = vpop.f32.mrb[8].mxu1 }
 0x106   :  { %v517_v8 = vadd.f32 %v930_v6, %v420_v4  ;;  %v879_v9 = vpop.f32.mrb[9].mxu0  ;;  %v508_v10 = vpop.f32.mrb[9].mxu1 }
 0x107   :  { %v880_v12 = vadd.f32 %v879_v9, %v878_v5  ;;  %v509_v13 = vadd.f32 %v508_v10, %v412_v7  ;;  %v881_v15 = vpop.f32.mrb[10].mxu0  ;;  %v931_v16 = vpop.f32.mrb[10].mxu1 }
 0x108   :  { %v520_v18 = vadd.f32 %v931_v16, %v423_v11  ;;  %v882_v19 = vpop.f32.mrb[11].mxu0  ;;  %v511_v20 = vpop.f32.mrb[11].mxu1  ;;  %v594_v28 = vmul.f32 %v517_v8, %v517_v8 }
 0x109   :  { %v883_v21 = vadd.f32 %v882_v19, %v881_v15  ;;  %v512_v22 = vadd.f32 %v511_v20, %v415_v17  ;;  %v592_v24 = vmul.f32 %v509_v13, %v509_v13  ;;  %v428_v33 = vadd.f32 %v880_v12, %v1206_v3 }
 0x10a   :  { %v811_v23 = vpack.c.bf16 %v520_v18, %v517_v8  ;;  %v595_v34 = vmul.f32 %v520_v18, %v520_v18 }
 0x10b   :  { %v571_v25 = vadd.f32 %v512_v22, %v509_v13  ;;  %v593_v26 = vmul.f32 %v512_v22, %v512_v22  ;;  %v806_v27 = vpack.c.bf16 %v512_v22, %v509_v13  ;;  %v431_v44 = vadd.f32 %v883_v21, %v1206_v3 }
 0x10c   :  { %843 = vst [vmem:[%s1258_s3 + $0x8] sm:$0xff] %v811_v23   ;;  %v468_v21 = vadd.f32 %v1199_v61, %v1206_v3 }
 0x10d   :  { %v572_v29 = vadd.f32 %v571_v25, %v517_v8  ;;  %v608_v30 = vadd.f32 %v593_v26, %v592_v24  ;;  %807 = vst [vmem:[%s1258_s3] sm:$0xff] %v806_v27   ;;  %v884_v31 = vpop.f32.mrb[12].mxu0  ;;  %v934_v32 = vpop.f32.mrb[12].mxu1 }
 0x10e   :  { %v885_v35 = vpop.f32.mrb[13].mxu0  ;;  %v524_v36 = vpop.f32.mrb[13].mxu1 }
 0x10f   :  { %v609_v37 = vadd.f32 %v608_v30, %v594_v28  ;;  %v886_v38 = vadd.f32 %v885_v35, %v884_v31  ;;  %v525_v39 = vadd.f32 %v524_v36, %v428_v33  ;;  %v573_v40 = vadd.f32 %v572_v29, %v520_v18  ;;  %v887_v41 = vpop.f32.mrb[14].mxu0  ;;  %v935_v42 = vpop.f32.mrb[14].mxu1 }
 0x110   :  { %v888_v43 = vpop.f32.mrb[15].mxu0  ;;  %v527_v45 = vpop.f32.mrb[15].mxu1  ;;  %v460_v29 = vadd.f32 %v1195_v50, %v1206_v3  ;;  %v471_v31 = vadd.f32 %v1201_v2, %v1206_v3 }
 0x111   :  { %v436_v46 = vadd.f32 %v886_v38, %v1206_v3  ;;  %v574_v47 = vadd.f32 %v573_v40, %v525_v39  ;;  %v596_v48 = vmul.f32 %v525_v39, %v525_v39  ;;  %v610_v49 = vadd.f32 %v609_v37, %v595_v34 }
 0x112   :  { %v889_v51 = vadd.f32 %v888_v43, %v887_v41  ;;  %v528_v52 = vadd.f32 %v527_v45, %v431_v44 }
 0x113   :  { %v533_v53 = vadd.f32 %v934_v32, %v436_v46  ;;  %v611_v14 = vadd.f32 %v610_v49, %v596_v48  ;;  %v463_v32 = vadd.f32 %v1197_v54, %v1206_v3 }
 0x114   :  { %v439_v55 = vadd.f32 %v889_v51, %v1206_v3  ;;  %v575_v56 = vadd.f32 %v574_v47, %v528_v52  ;;  %v597_v57 = vmul.f32 %v528_v52, %v528_v52  ;;  %v816_v58 = vpack.c.bf16 %v528_v52, %v525_v39 }
 0x115   :  { %v598_v59 = vmul.f32 %v533_v53, %v533_v53  ;;  %v890_v60 = vpop.f32.mrb[16].mxu0  ;;  %v938_v62 = vpop.f32.mrb[16].mxu1 }
 0x116   :  { %v536_v63 = vadd.f32 %v935_v42, %v439_v55  ;;  %v576_v0 = vadd.f32 %v575_v56, %v533_v53  ;;  %v612_v1 = vadd.f32 %v611_v14, %v597_v57  ;;  %844 = vst [vmem:[%s1258_s3 + $0x10] sm:$0xff] %v816_v58   ;;  %v891_v4 = vpop.f32.mrb[17].mxu0  ;;  %v540_v5 = vpop.f32.mrb[17].mxu1 }
 0x117   :  { %v892_v6 = vadd.f32 %v891_v4, %v890_v60  ;;  %v893_v7 = vpop.f32.mrb[18].mxu0  ;;  %v939_v8 = vpop.f32.mrb[18].mxu1 }
 0x118   :  { %v599_v9 = vmul.f32 %v536_v63, %v536_v63  ;;  %v821_v10 = vpack.c.bf16 %v536_v63, %v533_v53  ;;  %v613_v11 = vadd.f32 %v612_v1, %v598_v59  ;;  %v894_v12 = vpop.f32.mrb[19].mxu0  ;;  %v577_v13 = vadd.f32 %v576_v0, %v536_v63  ;;  %v543_v15 = vpop.f32.mrb[19].mxu1 }
 0x119   :  { %v895_v16 = vadd.f32 %v894_v12, %v893_v7  ;;  %v444_v17 = vadd.f32 %v892_v6, %v1206_v3 }
 0x11a   :  { %845 = vst [vmem:[%s1258_s3 + $0x18] sm:$0xff] %v821_v10   ;;  %v614_v18 = vadd.f32 %v613_v11, %v599_v9 }
 0x11b   :  { %v541_v19 = vadd.f32 %v540_v5, %v444_v17  ;;  %v447_v20 = vadd.f32 %v895_v16, %v1206_v3 }
 0x11d   :  { %v578_v22 = vadd.f32 %v577_v13, %v541_v19  ;;  %v600_v23 = vmul.f32 %v541_v19, %v541_v19  ;;  %v544_v24 = vadd.f32 %v543_v15, %v447_v20  ;;  %v896_v25 = vpop.f32.mrb[20].mxu0  ;;  %v942_v26 = vpop.f32.mrb[20].mxu1 }
 0x11e   :  { %v565_v27 = vadd.f32 %v942_v26, %v468_v21  ;;  %v897_v28 = vpop.f32.mrb[21].mxu0  ;;  %v556_v30 = vpop.f32.mrb[21].mxu1 }
 0x11f   :  { %v615_v33 = vadd.f32 %v614_v18, %v600_v23  ;;  %v579_v34 = vadd.f32 %v578_v22, %v544_v24  ;;  %v601_v61 = vmul.f32 %v544_v24, %v544_v24  ;;  %v826_v35 = vpack.c.bf16 %v544_v24, %v541_v19  ;;  %v899_v36 = vpop.f32.mrb[22].mxu0  ;;  %v943_v37 = vpop.f32.mrb[22].mxu1 }
 0x120   :  { %v898_v38 = vadd.f32 %v897_v28, %v896_v25  ;;  %v557_v39 = vadd.f32 %v556_v30, %v460_v29  ;;  %v568_v40 = vadd.f32 %v943_v37, %v471_v31  ;;  %v900_v41 = vpop.f32.mrb[23].mxu0  ;;  %v559_v42 = vpop.f32.mrb[23].mxu1 }
 0x121   :  { %v616_v43 = vadd.f32 %v615_v33, %v601_v61  ;;  %846 = vst [vmem:[%s1258_s3 + $0x20] sm:$0xff] %v826_v35   ;;  %v901_v50 = vadd.f32 %v900_v41, %v899_v36  ;;  %v560_v2 = vadd.f32 %v559_v42, %v463_v32 }
 0x122   :  { %v452_v54 = vadd.f32 %v898_v38, %v1206_v3  ;;  %v841_v44 = vpack.c.bf16 %v568_v40, %v565_v27  ;;  %v607_v1 = vmul.f32 %v568_v40, %v568_v40 }
 0x123   :  { %v455_v45 = vadd.f32 %v901_v50, %v1206_v3  ;;  %v836_v46 = vpack.c.bf16 %v560_v2, %v557_v39  ;;  %v604_v3 = vmul.f32 %v557_v39, %v557_v39  ;;  %v605_v59 = vmul.f32 %v560_v2, %v560_v2 }
 0x124   :  { %v549_v47 = vadd.f32 %v938_v62, %v452_v54  ;;  %849 = vst [vmem:[%s1258_s3 + $0x38] sm:$0xff] %v841_v44   ;;  %v606_v62 = vmul.f32 %v565_v27, %v565_v27 }
 0x125   :  { %v552_v48 = vadd.f32 %v939_v8, %v455_v45  ;;  %848 = vst [vmem:[%s1258_s3 + $0x30] sm:$0xff] %v836_v46  }
 0x126   :  { %v580_v49 = vadd.f32 %v579_v34, %v549_v47  ;;  %v602_v51 = vmul.f32 %v549_v47, %v549_v47 }
 0x127   :  { %v603_v52 = vmul.f32 %v552_v48, %v552_v48  ;;  %v831_v53 = vpack.c.bf16 %v552_v48, %v549_v47 }
 0x128   :  { %v617_v14 = vadd.f32 %v616_v43, %v602_v51  ;;  %v581_v55 = vadd.f32 %v580_v49, %v552_v48 }
 0x129   :  { %847 = vst [vmem:[%s1258_s3 + $0x28] sm:$0xff] %v831_v53  }
 0x12a   :  { %v582_v56 = vadd.f32 %v581_v55, %v557_v39  ;;  %v618_v57 = vadd.f32 %v617_v14, %v603_v52 }
 0x12c   :  { %v583_v58 = vadd.f32 %v582_v56, %v560_v2  ;;  %v619_v60 = vadd.f32 %v618_v57, %v604_v3 }
 0x12e   :  { %v584_v63 = vadd.f32 %v583_v58, %v565_v27  ;;  %v620_v0 = vadd.f32 %v619_v60, %v605_v59 }
 0x130   :  { %v585_v4 = vadd.f32 %v584_v63, %v568_v40  ;;  %v621_v5 = vadd.f32 %v620_v0, %v606_v62 }
 0x132   :  { %v586_v6 = vrot.slane %v585_v4, 4  ;;  %v622_v7 = vadd.f32 %v621_v5, %v607_v1 }
 0x134   :  { %v587_v8 = vadd.f32 %v586_v6, %v585_v4  ;;  %v623_v9 = vrot.slane %v622_v7, 4 }
 0x136   :  { %v588_v10 = vrot.slane %v587_v8, 2  ;;  %v624_v11 = vadd.f32 %v623_v9, %v622_v7 }
 0x138   :  { %v589_v12 = vadd.f32 %v588_v10, %v587_v8  ;;  %v625_v13 = vrot.slane %v624_v11, 2 }
 0x13a   :  { %v590_v15 = vrot.slane %v589_v12, 1  ;;  %v626_v16 = vadd.f32 %v625_v13, %v624_v11 }
 0x13c   :  { %v627_v17 = vrot.slane %v626_v16, 1  ;;  %v591_v18 = vadd.f32 %v590_v15, %v589_v12 }
 0x13e   :  { %v628_v19 = vadd.f32 %v627_v17, %v626_v16 }
 0x140   :  { %v630_v20 = vsel %vm629_vm1, %v591_v18, %v628_v19 }
 0x141   :  { %631 = vst [vmem:[%s1259_s4] sm:$0x3] %v630_v20 }

// kernel: unet_generator.19
= control target key start
LH: loop header
LB: loop body
LE: loop exit
PB: predicated region body
PF: predicated region fallthrough
CT: control target
= control target key end

     0   :  { %v1290_v0 = vmov 0   ;;  %vm510_vm0 = vcmask 130048   ;;  %s2237_s1 = inlined_call_operand.vmem [shape: bf16[144,128], index: 1, kind: input, shape index: {}]   ;;  %s2238_s0 = inlined_call_operand.vmem [shape: bf16[512,144], index: 0, kind: input, shape index: {}]   ;;  %s2239_s2 = inlined_call_operand.vmem [shape: f32[1,128], index: 2, kind: input, shape index: {}]   ;;  %s2240_s3 = inlined_call_operand.vmem [shape: f32[512,128], index: 3, kind: output, shape index: {}]  }
   0x1   :  { %607 = vmatprep.subr.bf16.mxu0 %v1290_v0  ;;  %1134 = vmatprep.subr.bf16.mxu1 %v1290_v0  ;;  %v1153_v1 = vld [vmem:[%s2237_s1] sm:$0xff]   ;;  %v1154_v2 = vld [vmem:[%s2237_s1 + $0x8] sm:$0xff]   ;;  %v1155_v3 = vld [vmem:[%s2237_s1 + $0x10] sm:$0xff]  }
   0x2   :  { %608 = vmatpush1.bf16.msra.mxu0 %v1153_v1  ;;  %1143 = vmatpush1.bf16.msra.mxu1 %v1153_v1  ;;  %v15_v4 = vld [vmem:[%s2238_s0] sm:$0xff]  ;;  %v16_v5 = vld [vmem:[%s2238_s0 + $0x8] sm:$0xff]  ;;  %v1156_v7 = vld [vmem:[%s2237_s1 + $0x18] sm:$0xff]  }
   0x3   :  { %609 = vmatprep.subr.bf16.mxu0 %v1290_v0  ;;  %1135 = vmatprep.subr.bf16.mxu1 %v1290_v0  ;;  %v47_v6 = vld [vmem:[%s2238_s0 + $0x100] sm:$0xff]  ;;  %v1339_v8 = vmax.bf16 %v1290_v0, %v15_v4  ;;  %v1342_v9 = vmax.bf16 %v1290_v0, %v16_v5  ;;  %v48_v10 = vld [vmem:[%s2238_s0 + $0x108] sm:$0xff]  ;;  %v17_v16 = vld [vmem:[%s2238_s0 + $0x10] sm:$0xff] }
   0x4   :  { %v1348_v11 = vmax.bf16 %v1290_v0, %v47_v6  ;;  %v1353_v12 = vmax.bf16 %v1290_v0, %v48_v10  ;;  %v1157_v15 = vld [vmem:[%s2237_s1 + $0x20] sm:$0xff]   ;;  %v18_v17 = vld [vmem:[%s2238_s0 + $0x18] sm:$0xff]  ;;  %v49_v18 = vld [vmem:[%s2238_s0 + $0x110] sm:$0xff]  ;;  %v1387_v22 = vmax.bf16 %v1290_v0, %v17_v16 }
   0x5   :  { %v1030_v13 = vcombine.high %v1339_v8, %v1342_v9  ;;  %v50_v19 = vld [vmem:[%s2238_s0 + $0x118] sm:$0xff]  ;;  %v1158_v20 = vld [vmem:[%s2237_s1 + $0x28] sm:$0xff]   ;;  %v19_v21 = vld [vmem:[%s2238_s0 + $0x20] sm:$0xff]  ;;  %v1390_v23 = vmax.bf16 %v1290_v0, %v18_v17  ;;  %v1393_v24 = vmax.bf16 %v1290_v0, %v49_v18  ;;  %v1029_v30 = vcombine.low %v1339_v8, %v1342_v9 }
   0x6   :  { %610 = vmatpush1.bf16.msra.mxu0 %v1154_v2  ;;  %1144 = vmatpush1.bf16.msra.mxu1 %v1154_v2  ;;  %v1062_v14 = vcombine.high %v1348_v11, %v1353_v12  ;;  %v1396_v25 = vmax.bf16 %v1290_v0, %v50_v19  ;;  %v20_v26 = vld [vmem:[%s2238_s0 + $0x28] sm:$0xff]  ;;  %v51_v27 = vld [vmem:[%s2238_s0 + $0x120] sm:$0xff]  ;;  %v1159_v29 = vld [vmem:[%s2237_s1 + $0x30] sm:$0xff]   ;;  %v1413_v31 = vmax.bf16 %v1290_v0, %v19_v21 }
   0x7   :  { %611 = vmatprep.subr.bf16.mxu0 %v1290_v0  ;;  %1136 = vmatprep.subr.bf16.mxu1 %v1290_v0  ;;  %v52_v28 = vld [vmem:[%s2238_s0 + $0x128] sm:$0xff]  ;;  %v29_v32 = vld [vmem:[%s2238_s0 + $0x70] sm:$0xff]  ;;  %v30_v33 = vld [vmem:[%s2238_s0 + $0x78] sm:$0xff]  ;;  %v1427_v35 = vmax.bf16 %v1290_v0, %v20_v26  ;;  %v1430_v36 = vmax.bf16 %v1290_v0, %v51_v27  ;;  %v1061_v41 = vcombine.low %v1348_v11, %v1353_v12 }
   0x8   :  { %1102 = vmatprep.mubr.msk.bf16.mxu0 %vm510_vm0, %v1030_v13  ;;  %1118 = vmatprep.mubr.msk.bf16.mxu1 %vm510_vm0, %v1062_v14  ;;  %v61_v34 = vld [vmem:[%s2238_s0 + $0x170] sm:$0xff]  ;;  %v1433_v37 = vmax.bf16 %v1290_v0, %v52_v28  ;;  %v22_v39 = vld [vmem:[%s2238_s0 + $0x38] sm:$0xff]  ;;  %v1032_v42 = vcombine.high %v1387_v22, %v1390_v23  ;;  %v1064_v43 = vcombine.high %v1393_v24, %v1396_v25  ;;  %v31_v50 = vld [vmem:[%s2238_s0 + $0x80] sm:$0xff] }
   0x9   :  { %v21_v38 = vld [vmem:[%s2238_s0 + $0x30] sm:$0xff]  ;;  %v62_v40 = vld [vmem:[%s2238_s0 + $0x178] sm:$0xff]  ;;  %v1031_v44 = vcombine.low %v1387_v22, %v1390_v23  ;;  %v1063_v46 = vcombine.low %v1393_v24, %v1396_v25  ;;  %v1458_v47 = vmax.bf16 %v1290_v0, %v29_v32  ;;  %v1461_v48 = vmax.bf16 %v1290_v0, %v30_v33  ;;  %v32_v51 = vld [vmem:[%s2238_s0 + $0x88] sm:$0xff] }
   0xa   :  { %612 = vmatpush1.bf16.msra.mxu0 %v1155_v3  ;;  %1145 = vmatpush1.bf16.msra.mxu1 %v1155_v3  ;;  %v1160_v45 = vld [vmem:[%s2237_s1 + $0x38] sm:$0xff]   ;;  %v1464_v49 = vmax.bf16 %v1290_v0, %v61_v34  ;;  %v1473_v52 = vmax.bf16 %v1290_v0, %v21_v38  ;;  %v1476_v53 = vmax.bf16 %v1290_v0, %v22_v39  ;;  %v63_v55 = vld [vmem:[%s2238_s0 + $0x180] sm:$0xff]  ;;  %v64_v56 = vld [vmem:[%s2238_s0 + $0x188] sm:$0xff] }
   0xb   :  { %613 = vmatprep.subr.bf16.mxu0 %v1290_v0  ;;  %1137 = vmatprep.subr.bf16.mxu1 %v1290_v0  ;;  %v1479_v54 = vmax.bf16 %v1290_v0, %v62_v40  ;;  %v33_v57 = vld [vmem:[%s2238_s0 + $0x90] sm:$0xff]  ;;  %v1034_v58 = vcombine.high %v1413_v31, %v1427_v35  ;;  %v1066_v59 = vcombine.high %v1430_v36, %v1433_v37  ;;  %v34_v61 = vld [vmem:[%s2238_s0 + $0x98] sm:$0xff]  ;;  %v1161_v5 = vld [vmem:[%s2237_s1 + $0x40] sm:$0xff]  }
   0xc   :  { %v1044_v60 = vcombine.high %v1458_v47, %v1461_v48  ;;  %v65_v62 = vld [vmem:[%s2238_s0 + $0x190] sm:$0xff]  ;;  %v66_v63 = vld [vmem:[%s2238_s0 + $0x198] sm:$0xff]  ;;  %v1043_v2 = vcombine.low %v1458_v47, %v1461_v48  ;;  %v1514_v4 = vmax.bf16 %v1290_v0, %v31_v50  ;;  %v1520_v6 = vmax.bf16 %v1290_v0, %v32_v51  ;;  %v35_v17 = vld [vmem:[%s2238_s0 + $0xa0] sm:$0xff] }
   0xd   :  { %v1076_v1 = vcombine.high %v1464_v49, %v1479_v54  ;;  %v1075_v3 = vcombine.low %v1464_v49, %v1479_v54  ;;  %v1526_v10 = vmax.bf16 %v1290_v0, %v64_v56  ;;  %v1529_v13 = vmax.bf16 %v1290_v0, %v33_v57  ;;  %v36_v18 = vld [vmem:[%s2238_s0 + $0xa8] sm:$0xff]  ;;  %v67_v19 = vld [vmem:[%s2238_s0 + $0x1a0] sm:$0xff]  ;;  %v37_v28 = vld [vmem:[%s2238_s0 + $0xb0] sm:$0xff] }
   0xe   :  { %614 = vmatpush1.bf16.msra.mxu0 %v1156_v7  ;;  %1146 = vmatpush1.bf16.msra.mxu1 %v1156_v7  ;;  %v1523_v7 = vmax.bf16 %v1290_v0, %v63_v55  ;;  %v1532_v14 = vmax.bf16 %v1290_v0, %v34_v61  ;;  %v1538_v16 = vmax.bf16 %v1290_v0, %v66_v63  ;;  %v68_v27 = vld [vmem:[%s2238_s0 + $0x1a8] sm:$0xff]  ;;  %v69_v39 = vld [vmem:[%s2238_s0 + $0x1b0] sm:$0xff]  ;;  %v70_v40 = vld [vmem:[%s2238_s0 + $0x1b8] sm:$0xff] }
   0xf   :  { %615 = vmatprep.subr.bf16.mxu0 %v1290_v0  ;;  %1138 = vmatprep.subr.bf16.mxu1 %v1290_v0  ;;  %v1583_v50 = vmax.bf16 %v1290_v0, %v35_v17  ;;  %v1586_v51 = vmax.bf16 %v1290_v0, %v36_v18  ;;  %v1589_v55 = vmax.bf16 %v1290_v0, %v67_v19  ;;  %v40_v63 = vld [vmem:[%s2238_s0 + $0xc8] sm:$0xff]  ;;  %v73_v38 = vld [vmem:[%s2238_s0 + $0x1d0] sm:$0xff]  ;;  %v74_v17 = vld [vmem:[%s2238_s0 + $0x1d8] sm:$0xff] }
  0x10   :  { %v1592_v56 = vmax.bf16 %v1290_v0, %v68_v27  ;;  %v1595_v57 = vmax.bf16 %v1290_v0, %v37_v28  ;;  %v1611_v18 = vmax.bf16 %v1290_v0, %v69_v39  ;;  %v1614_v19 = vmax.bf16 %v1290_v0, %v70_v40  ;;  %v71_v27 = vld [vmem:[%s2238_s0 + $0x1c0] sm:$0xff]  ;;  %v72_v28 = vld [vmem:[%s2238_s0 + $0x1c8] sm:$0xff]  ;;  %v46_v40 = vld [vmem:[%s2238_s0 + $0xf8] sm:$0xff] }
  0x11   :  { %v1664_v8 = vmax.bf16 %v1290_v0, %v40_v63  ;;  %v1667_v9 = vmax.bf16 %v1290_v0, %v71_v27  ;;  %v1670_v11 = vmax.bf16 %v1290_v0, %v72_v28  ;;  %v43_v12 = vld [vmem:[%s2238_s0 + $0xe0] sm:$0xff]  ;;  %v76_v27 = vld [vmem:[%s2238_s0 + $0x1e8] sm:$0xff]  ;;  %v45_v28 = vld [vmem:[%s2238_s0 + $0xf0] sm:$0xff]  ;;  %v1033_v25 = vcombine.low %v1413_v31, %v1427_v35 }
  0x12   :  { %616 = vmatpush1.bf16.msra.mxu0 %v1157_v15  ;;  %1147 = vmatpush1.bf16.msra.mxu1 %v1157_v15  ;;  %v1535_v15 = vmax.bf16 %v1290_v0, %v65_v62  ;;  %v39_v62 = vld [vmem:[%s2238_s0 + $0xc0] sm:$0xff]  ;;  %v1725_v33 = vmax.bf16 %v1290_v0, %v43_v12  ;;  %v54_v34 = vld [vmem:[%s2238_s0 + $0x138] sm:$0xff]  ;;  %v1743_v12 = vmax.bf16 %v1290_v0, %v45_v28  ;;  %v56_v31 = vld [vmem:[%s2238_s0 + $0x148] sm:$0xff] }
  0x13   :  { %617 = vmatprep.subr.bf16.mxu0 %v1290_v0  ;;  %1139 = vmatprep.subr.bf16.mxu1 %v1290_v0  ;;  %v1653_v39 = vmax.bf16 %v1290_v0, %v39_v62  ;;  %v1688_v62 = vmax.bf16 %v1290_v0, %v74_v17  ;;  %v75_v63 = vld [vmem:[%s2238_s0 + $0x1e0] sm:$0xff]  ;;  %v53_v17 = vld [vmem:[%s2238_s0 + $0x130] sm:$0xff]  ;;  %v118_v23 = vmax.bf16 %v1290_v0, %v54_v34  ;;  %v24_v34 = vld [vmem:[%s2238_s0 + $0x48] sm:$0xff] }
  0x14   :  { %v1731_v26 = vmax.bf16 %v1290_v0, %v75_v63  ;;  %v117_v22 = vmax.bf16 %v1290_v0, %v53_v17  ;;  %v55_v17 = vld [vmem:[%s2238_s0 + $0x140] sm:$0xff]  ;;  %v120_v24 = vmax.bf16 %v1290_v0, %v56_v31  ;;  %v2244_v47 = vcombine.low %v1523_v7, %v1526_v10 }
  0x15   :  { %v2245_v48 = vcombine.high %v1529_v13, %v1532_v14  ;;  %v2246_v49 = vcombine.high %v1535_v15, %v1538_v16  ;;  %v2247_v54 = vcombine.low %v1529_v13, %v1532_v14  ;;  %v2254_v13 = vcombine.high %v1611_v18, %v1614_v19 }
  0x16   :  { %618 = vmatpush1.bf16.msra.mxu0 %v1158_v20  ;;  %1148 = vmatpush1.bf16.msra.mxu1 %v1158_v20 }
  0x17   :  { %619 = vmatprep.subr.bf16.mxu0 %v1290_v0  ;;  %1140 = vmatprep.subr.bf16.mxu1 %v1290_v0 }
  0x1a   :  { %620 = vmatpush1.bf16.msra.mxu0 %v1159_v29  ;;  %1149 = vmatpush1.bf16.msra.mxu1 %v1159_v29  ;;  %v38_v29 = vld [vmem:[%s2238_s0 + $0xb8] sm:$0xff] }
  0x1b   :  { %621 = vmatprep.subr.bf16.mxu0 %v1290_v0  ;;  %1141 = vmatprep.subr.bf16.mxu1 %v1290_v0  ;;  %v1598_v61 = vmax.bf16 %v1290_v0, %v38_v29  ;;  %v41_v29 = vld [vmem:[%s2238_s0 + $0xd0] sm:$0xff] }
  0x1d   :  { %v2255_v14 = vcombine.low %v1595_v57, %v1598_v61 }
  0x1e   :  { %622 = vmatpush1.bf16.msra.mxu0 %v1160_v45  ;;  %1150 = vmatpush1.bf16.msra.mxu1 %v1160_v45  ;;  %v42_v45 = vld [vmem:[%s2238_s0 + $0xd8] sm:$0xff] }
  0x1f   :  { %623 = vmatprep.subr.bf16.mxu0 %v1290_v0  ;;  %1142 = vmatprep.subr.bf16.mxu1 %v1290_v0 }
  0x22   :  { %624 = vmatpush1.bf16.msra.mxu0 %v1161_v5  ;;  %1151 = vmatpush1.bf16.msra.mxu1 %v1161_v5  ;;  %v77_v5 = vld [vmem:[%s2238_s0 + $0x1f0] sm:$0xff] }
  0x23   :  { %v1749_v63 = vmax.bf16 %v1290_v0, %v77_v5 }
  0x25   :  { %640 = vmatmul.mubr.bf16.vlgmr.msra.gmra.mrb[0].mxu0 %v1029_v30  ;;  %768 = vmatmul.mubr.bf16.vlgmr.msra.gmra.mrb[0].mxu1 %v1061_v41  ;;  %v44_v30 = vld [vmem:[%s2238_s0 + $0xe8] sm:$0xff]  ;;  %v1679_v41 = vmax.bf16 %v1290_v0, %v41_v29 }
  0x26   :  { %1103 = vmatprep.mubr.msk.bf16.mxu0 %vm510_vm0, %v1032_v42  ;;  %1119 = vmatprep.mubr.msk.bf16.mxu1 %vm510_vm0, %v1064_v43  ;;  %v1682_v42 = vmax.bf16 %v1290_v0, %v42_v45  ;;  %v1685_v43 = vmax.bf16 %v1290_v0, %v73_v38  ;;  %v78_v45 = vld [vmem:[%s2238_s0 + $0x1f8] sm:$0xff]  ;;  %v1728_v32 = vmax.bf16 %v1290_v0, %v44_v30 }
  0x27   :  { %v1734_v38 = vmax.bf16 %v1290_v0, %v76_v27  ;;  %v1746_v30 = vmax.bf16 %v1290_v0, %v46_v40  ;;  %v1752_v27 = vmax.bf16 %v1290_v0, %v78_v45  ;;  %v1035_v45 = vcombine.low %v1473_v52, %v1476_v53 }
  0x28   :  { %v1058_v29 = vcombine.high %v1725_v33, %v1728_v32  ;;  %v1057_v20 = vcombine.low %v1725_v33, %v1728_v32  ;;  %v1067_v40 = vcombine.low %v117_v22, %v118_v23 }
  0x29   :  { %v1090_v21 = vcombine.high %v1731_v26, %v1734_v38 }
  0x2d   :  { %648 = vmatmul.mubr.bf16.gmra.mrb[4].mxu0 %v1031_v44  ;;  %776 = vmatmul.mubr.bf16.gmra.mrb[4].mxu1 %v1063_v46  ;;  %v1065_v44 = vcombine.low %v1430_v36, %v1433_v37  ;;  %v1036_v46 = vcombine.high %v1473_v52, %v1476_v53  ;;  %v88_v36 = vmax.bf16 %v1290_v0, %v24_v34 }
  0x2e   :  { %1104 = vmatprep.mubr.msk.bf16.mxu0 %vm510_vm0, %v1034_v58  ;;  %1120 = vmatprep.mubr.msk.bf16.mxu1 %vm510_vm0, %v1066_v59  ;;  %v1068_v58 = vcombine.high %v117_v22, %v118_v23  ;;  %v23_v59 = vld [vmem:[%s2238_s0 + $0x40] sm:$0xff]  ;;  %v119_v37 = vmax.bf16 %v1290_v0, %v55_v17 }
  0x2f   :  { %v87_v35 = vmax.bf16 %v1290_v0, %v23_v59 }
  0x30   :  { %v1070_v28 = vcombine.high %v119_v37, %v120_v24  ;;  %v1069_v34 = vcombine.low %v119_v37, %v120_v24 }
  0x31   :  { %v1038_v5 = vcombine.high %v87_v35, %v88_v36  ;;  %v1037_v59 = vcombine.low %v87_v35, %v88_v36 }
  0x35   :  { %656 = vmatmul.mubr.bf16.gmra.mrb[8].mxu0 %v1033_v25  ;;  %784 = vmatmul.mubr.bf16.gmra.mrb[8].mxu1 %v1065_v44  ;;  %v25_v25 = vld [vmem:[%s2238_s0 + $0x50] sm:$0xff]  ;;  %v26_v44 = vld [vmem:[%s2238_s0 + $0x58] sm:$0xff] }
  0x36   :  { %1105 = vmatprep.mubr.msk.bf16.mxu0 %vm510_vm0, %v1036_v46  ;;  %1121 = vmatprep.mubr.msk.bf16.mxu1 %vm510_vm0, %v1068_v58  ;;  %v57_v46 = vld [vmem:[%s2238_s0 + $0x150] sm:$0xff]  ;;  %v58_v58 = vld [vmem:[%s2238_s0 + $0x158] sm:$0xff]  ;;  %v89_v52 = vmax.bf16 %v1290_v0, %v25_v25  ;;  %v90_v53 = vmax.bf16 %v1290_v0, %v26_v44 }
  0x37   :  { %v121_v22 = vmax.bf16 %v1290_v0, %v57_v46  ;;  %v122_v23 = vmax.bf16 %v1290_v0, %v58_v58 }
  0x38   :  { %v1040_v17 = vcombine.high %v89_v52, %v90_v53  ;;  %v1039_v25 = vcombine.low %v89_v52, %v90_v53 }
  0x39   :  { %v1072_v31 = vcombine.high %v121_v22, %v122_v23  ;;  %v1071_v44 = vcombine.low %v121_v22, %v122_v23 }
  0x3d   :  { %664 = vmatmul.mubr.bf16.gmra.mrb[12].mxu0 %v1035_v45  ;;  %792 = vmatmul.mubr.bf16.gmra.mrb[12].mxu1 %v1067_v40  ;;  %v27_v40 = vld [vmem:[%s2238_s0 + $0x60] sm:$0xff]  ;;  %v60_v45 = vld [vmem:[%s2238_s0 + $0x168] sm:$0xff] }
  0x3e   :  { %1106 = vmatprep.mubr.msk.bf16.mxu0 %vm510_vm0, %v1038_v5  ;;  %1122 = vmatprep.mubr.msk.bf16.mxu1 %vm510_vm0, %v1070_v28  ;;  %v28_v5 = vld [vmem:[%s2238_s0 + $0x68] sm:$0xff]  ;;  %v59_v28 = vld [vmem:[%s2238_s0 + $0x160] sm:$0xff]  ;;  %v91_v24 = vmax.bf16 %v1290_v0, %v27_v40  ;;  %v124_v37 = vmax.bf16 %v1290_v0, %v60_v45 }
  0x3f   :  { %v92_v35 = vmax.bf16 %v1290_v0, %v28_v5  ;;  %v123_v36 = vmax.bf16 %v1290_v0, %v59_v28  ;;  %v2241_v0 = vcombine.high %v1514_v4, %v1520_v6 }
  0x41   :  { %v1042_v46 = vcombine.high %v91_v24, %v92_v35  ;;  %v1074_v58 = vcombine.high %v123_v36, %v124_v37 }
  0x45   :  { %672 = vmatmul.mubr.bf16.gmra.mrb[16].mxu0 %v1037_v59  ;;  %800 = vmatmul.mubr.bf16.gmra.mrb[16].mxu1 %v1069_v34  ;;  %v1041_v59 = vcombine.low %v91_v24, %v92_v35  ;;  %v1073_v34 = vcombine.low %v123_v36, %v124_v37 }
  0x46   :  { %1107 = vmatprep.mubr.msk.bf16.mxu0 %vm510_vm0, %v1040_v17  ;;  %1123 = vmatprep.mubr.msk.bf16.mxu1 %vm510_vm0, %v1072_v31 }
  0x4d   :  { %680 = vmatmul.mubr.bf16.gmra.mrb[20].mxu0 %v1039_v25  ;;  %808 = vmatmul.mubr.bf16.gmra.mrb[20].mxu1 %v1071_v44 }
  0x4e   :  { %1108 = vmatprep.mubr.msk.bf16.mxu0 %vm510_vm0, %v1042_v46  ;;  %1124 = vmatprep.mubr.msk.bf16.mxu1 %vm510_vm0, %v1074_v58 }
  0x55   :  { %688 = vmatmul.mubr.bf16.gmra.mrb[24].mxu0 %v1041_v59  ;;  %816 = vmatmul.mubr.bf16.gmra.mrb[24].mxu1 %v1073_v34 }
  0x56   :  { %1109 = vmatprep.mubr.msk.bf16.mxu0 %vm510_vm0, %v1044_v60  ;;  %1125 = vmatprep.mubr.msk.bf16.mxu1 %vm510_vm0, %v1076_v1  ;;  %v2242_v60 = vcombine.high %v1523_v7, %v1526_v10  ;;  %v2243_v1 = vcombine.low %v1514_v4, %v1520_v6  ;;  %v2250_v4 = vcombine.high %v1589_v55, %v1592_v56 }
  0x57   :  { %v2251_v6 = vcombine.low %v1583_v50, %v1586_v51  ;;  %v2252_v7 = vcombine.low %v1589_v55, %v1592_v56  ;;  %v2253_v10 = vcombine.high %v1595_v57, %v1598_v61  ;;  %v2260_v55 = vcombine.low %v1667_v9, %v1670_v11 }
  0x58   :  { %v2261_v56 = vcombine.high %v1679_v41, %v1682_v42  ;;  %v2262_v57 = vcombine.high %v1685_v43, %v1688_v62  ;;  %v2263_v61 = vcombine.low %v1679_v41, %v1682_v42 }
  0x5d   :  { %696 = vmatmul.mubr.bf16.gmra.mrb[28].mxu0 %v1043_v2  ;;  %824 = vmatmul.mubr.bf16.gmra.mrb[28].mxu1 %v1075_v3  ;;  %v2248_v2 = vcombine.low %v1535_v15, %v1538_v16  ;;  %v2249_v3 = vcombine.high %v1583_v50, %v1586_v51  ;;  %v2256_v15 = vcombine.low %v1611_v18, %v1614_v19 }
  0x5e   :  { %1110 = vmatprep.mubr.msk.bf16.mxu0 %vm510_vm0, %v2241_v0  ;;  %1126 = vmatprep.mubr.msk.bf16.mxu1 %vm510_vm0, %v2242_v60  ;;  %v2257_v16 = vcombine.high %v1653_v39, %v1664_v8  ;;  %v2258_v50 = vcombine.high %v1667_v9, %v1670_v11  ;;  %v2259_v51 = vcombine.low %v1653_v39, %v1664_v8 }
  0x5f   :  { %v2264_v18 = vcombine.low %v1685_v43, %v1688_v62  ;;  %v2265_v19 = vcombine.low %v1731_v26, %v1734_v38  ;;  %v2266_v39 = vcombine.high %v1743_v12, %v1746_v30  ;;  %v2267_v8 = vcombine.high %v1749_v63, %v1752_v27  ;;  %v1979_v26 = vld [vmem:[%s2239_s2] ss:$0 sm:$0xff] }
  0x65   :  { %704 = vmatmul.mubr.bf16.gmra.mrb[32].mxu0 %v2243_v1  ;;  %832 = vmatmul.mubr.bf16.gmra.mrb[32].mxu1 %v2244_v47 }
  0x66   :  { %1111 = vmatprep.mubr.msk.bf16.mxu0 %vm510_vm0, %v2245_v48  ;;  %1127 = vmatprep.mubr.msk.bf16.mxu1 %vm510_vm0, %v2246_v49 }
  0x6d   :  { %712 = vmatmul.mubr.bf16.gmra.mrb[36].mxu0 %v2247_v54  ;;  %840 = vmatmul.mubr.bf16.gmra.mrb[36].mxu1 %v2248_v2 }
  0x6e   :  { %1112 = vmatprep.mubr.msk.bf16.mxu0 %vm510_vm0, %v2249_v3  ;;  %1128 = vmatprep.mubr.msk.bf16.mxu1 %vm510_vm0, %v2250_v4 }
  0x75   :  { %720 = vmatmul.mubr.bf16.gmra.mrb[40].mxu0 %v2251_v6  ;;  %848 = vmatmul.mubr.bf16.gmra.mrb[40].mxu1 %v2252_v7 }
  0x76   :  { %1113 = vmatprep.mubr.msk.bf16.mxu0 %vm510_vm0, %v2253_v10  ;;  %1129 = vmatprep.mubr.msk.bf16.mxu1 %vm510_vm0, %v2254_v13 }
  0x7d   :  { %728 = vmatmul.mubr.bf16.gmra.mrb[44].mxu0 %v2255_v14  ;;  %856 = vmatmul.mubr.bf16.gmra.mrb[44].mxu1 %v2256_v15 }
  0x7e   :  { %1114 = vmatprep.mubr.msk.bf16.mxu0 %vm510_vm0, %v2257_v16  ;;  %1130 = vmatprep.mubr.msk.bf16.mxu1 %vm510_vm0, %v2258_v50 }
  0x85   :  { %736 = vmatmul.mubr.bf16.gmra.mrb[48].mxu0 %v2259_v51  ;;  %864 = vmatmul.mubr.bf16.gmra.mrb[48].mxu1 %v2260_v55 }
  0x86   :  { %1115 = vmatprep.mubr.msk.bf16.mxu0 %vm510_vm0, %v2261_v56  ;;  %1131 = vmatprep.mubr.msk.bf16.mxu1 %vm510_vm0, %v2262_v57 }
  0x8d   :  { %744 = vmatmul.mubr.bf16.gmra.mrb[52].mxu0 %v2263_v61  ;;  %872 = vmatmul.mubr.bf16.gmra.mrb[52].mxu1 %v2264_v18 }
  0x8e   :  { %1116 = vmatprep.mubr.msk.bf16.mxu0 %vm510_vm0, %v1058_v29  ;;  %1132 = vmatprep.mubr.msk.bf16.mxu1 %vm510_vm0, %v1090_v21  ;;  %v2268_v21 = vcombine.low %v1743_v12, %v1746_v30 }
  0x95   :  { %752 = vmatmul.mubr.bf16.gmra.mrb[56].mxu0 %v1057_v20  ;;  %880 = vmatmul.mubr.bf16.gmra.mrb[56].mxu1 %v2265_v19  ;;  %v2269_v20 = vcombine.low %v1749_v63, %v1752_v27 }
  0x96   :  { %1117 = vmatprep.mubr.msk.bf16.mxu0 %vm510_vm0, %v2266_v39  ;;  %1133 = vmatprep.mubr.msk.bf16.mxu1 %vm510_vm0, %v2267_v8 }
  0x9d   :  { %760 = vmatmul.mubr.bf16.gmra.mrb[60].mxu0 %v2268_v21  ;;  %888 = vmatmul.mubr.bf16.gmra.mrb[60].mxu1 %v2269_v20 }
  0xf8   :  { %v641_v32 = vpop.f32.mrb[0].mxu0  ;;  %v769_v33 = vpop.f32.mrb[0].mxu1 }
  0xf9   :  { %v642_v9 = vadd.f32 %v1979_v26, %v641_v32  ;;  %v770_v11 = vadd.f32 %v1979_v26, %v769_v33  ;;  %v643_v41 = vpop.f32.mrb[1].mxu0  ;;  %v771_v42 = vpop.f32.mrb[1].mxu1 }
  0xfa   :  { %v644_v43 = vpop.f32.mrb[2].mxu0  ;;  %v772_v62 = vpop.f32.mrb[2].mxu1 }
  0xfb   :  { %1162 = vtanh.f32 %v642_v9  ;;  %v645_v38 = vadd.f32 %v1979_v26, %v644_v43  ;;  %v773_v29 = vadd.f32 %v1979_v26, %v772_v62  ;;  %v646_v12 = vpop.f32.mrb[3].mxu0  ;;  %v774_v30 = vpop.f32.mrb[3].mxu1 }
  0xfc   :  { %1164 = vtanh.f32 %v770_v11 }
  0xfd   :  { %1166 = vtanh.f32 %v645_v38 }
  0xfe   :  { %1168 = vtanh.f32 %v773_v29 }
 0x100   :  { %v649_v63 = vpop.f32.mrb[4].mxu0  ;;  %v777_v27 = vpop.f32.mrb[4].mxu1 }
 0x101   :  { %v650_v52 = vadd.f32 %v1979_v26, %v649_v63  ;;  %v778_v53 = vadd.f32 %v1979_v26, %v777_v27  ;;  %v651_v22 = vpop.f32.mrb[5].mxu0  ;;  %v779_v23 = vpop.f32.mrb[5].mxu1 }
 0x102   :  { %v652_v17 = vpop.f32.mrb[6].mxu0  ;;  %v780_v31 = vpop.f32.mrb[6].mxu1 }
 0x103   :  { %1170 = vtanh.f32 %v650_v52  ;;  %v653_v40 = vadd.f32 %v1979_v26, %v652_v17  ;;  %v781_v5 = vadd.f32 %v1979_v26, %v780_v31  ;;  %v654_v28 = vpop.f32.mrb[7].mxu0  ;;  %v782_v45 = vpop.f32.mrb[7].mxu1 }
 0x104   :  { %1172 = vtanh.f32 %v778_v53 }
 0x105   :  { %v1163_v24 = vpop.eup %1162  ;;  %1174 = vtanh.f32 %v653_v40 }
 0x106   :  { %v1165_v35 = vpop.eup %1164  ;;  %960 = vst [vmem:[%s2240_s3] sm:$0xff] %v1163_v24  ;;  %1176 = vtanh.f32 %v781_v5 }
 0x107   :  { %v1167_v36 = vpop.eup %1166  ;;  %992 = vst [vmem:[%s2240_s3 + $0x100] sm:$0xff] %v1165_v35 }
 0x108   :  { %v1169_v37 = vpop.eup %1168  ;;  %961 = vst [vmem:[%s2240_s3 + $0x8] sm:$0xff] %v1167_v36  ;;  %v657_v25 = vpop.f32.mrb[8].mxu0 }
 0x109   :  { %v785_v44 = vpop.f32.mrb[8].mxu1  ;;  %993 = vst [vmem:[%s2240_s3 + $0x108] sm:$0xff] %v1169_v37  ;;  %v658_v46 = vadd.f32 %v1979_v26, %v657_v25  ;;  %v659_v59 = vpop.f32.mrb[9].mxu0 }
 0x10a   :  { %v786_v58 = vadd.f32 %v1979_v26, %v785_v44  ;;  %v787_v34 = vpop.f32.mrb[9].mxu1  ;;  %v660_v0 = vpop.f32.mrb[10].mxu0 }
 0x10b   :  { %v788_v60 = vpop.f32.mrb[10].mxu1  ;;  %1178 = vtanh.f32 %v658_v46  ;;  %v661_v1 = vadd.f32 %v1979_v26, %v660_v0  ;;  %v662_v48 = vpop.f32.mrb[11].mxu0 }
 0x10c   :  { %v789_v47 = vadd.f32 %v1979_v26, %v788_v60  ;;  %v790_v49 = vpop.f32.mrb[11].mxu1  ;;  %1180 = vtanh.f32 %v786_v58 }
 0x10d   :  { %v1171_v54 = vpop.eup %1170  ;;  %1182 = vtanh.f32 %v661_v1 }
 0x10e   :  { %v1173_v2 = vpop.eup %1172  ;;  %962 = vst [vmem:[%s2240_s3 + $0x10] sm:$0xff] %v1171_v54  ;;  %1184 = vtanh.f32 %v789_v47 }
 0x10f   :  { %v1175_v3 = vpop.eup %1174  ;;  %994 = vst [vmem:[%s2240_s3 + $0x110] sm:$0xff] %v1173_v2 }
 0x110   :  { %v1177_v4 = vpop.eup %1176  ;;  %963 = vst [vmem:[%s2240_s3 + $0x18] sm:$0xff] %v1175_v3  ;;  %v665_v6 = vpop.f32.mrb[12].mxu0 }
 0x111   :  { %v793_v7 = vpop.f32.mrb[12].mxu1  ;;  %995 = vst [vmem:[%s2240_s3 + $0x118] sm:$0xff] %v1177_v4  ;;  %v666_v10 = vadd.f32 %v1979_v26, %v665_v6  ;;  %v667_v14 = vpop.f32.mrb[13].mxu0 }
 0x112   :  { %v794_v13 = vadd.f32 %v1979_v26, %v793_v7  ;;  %v795_v15 = vpop.f32.mrb[13].mxu1  ;;  %v668_v16 = vpop.f32.mrb[14].mxu0 }
 0x113   :  { %v796_v50 = vpop.f32.mrb[14].mxu1  ;;  %1186 = vtanh.f32 %v666_v10  ;;  %v669_v51 = vadd.f32 %v1979_v26, %v668_v16  ;;  %v670_v56 = vpop.f32.mrb[15].mxu0 }
 0x114   :  { %v797_v55 = vadd.f32 %v1979_v26, %v796_v50  ;;  %v798_v57 = vpop.f32.mrb[15].mxu1  ;;  %1188 = vtanh.f32 %v794_v13 }
 0x115   :  { %v1179_v61 = vpop.eup %1178  ;;  %1190 = vtanh.f32 %v669_v51 }
 0x116   :  { %v1181_v18 = vpop.eup %1180  ;;  %964 = vst [vmem:[%s2240_s3 + $0x20] sm:$0xff] %v1179_v61  ;;  %1192 = vtanh.f32 %v797_v55 }
 0x117   :  { %v1183_v19 = vpop.eup %1182  ;;  %996 = vst [vmem:[%s2240_s3 + $0x120] sm:$0xff] %v1181_v18 }
 0x118   :  { %v1185_v39 = vpop.eup %1184  ;;  %965 = vst [vmem:[%s2240_s3 + $0x28] sm:$0xff] %v1183_v19  ;;  %v673_v8 = vpop.f32.mrb[16].mxu0 }
 0x119   :  { %v801_v21 = vpop.f32.mrb[16].mxu1  ;;  %997 = vst [vmem:[%s2240_s3 + $0x128] sm:$0xff] %v1185_v39  ;;  %v674_v20 = vadd.f32 %v1979_v26, %v673_v8  ;;  %v675_v33 = vpop.f32.mrb[17].mxu0 }
 0x11a   :  { %v802_v32 = vadd.f32 %v1979_v26, %v801_v21  ;;  %v803_v9 = vpop.f32.mrb[17].mxu1  ;;  %v676_v11 = vpop.f32.mrb[18].mxu0 }
 0x11b   :  { %v804_v41 = vpop.f32.mrb[18].mxu1  ;;  %1194 = vtanh.f32 %v674_v20  ;;  %v677_v42 = vadd.f32 %v1979_v26, %v676_v11  ;;  %v678_v62 = vpop.f32.mrb[19].mxu0 }
 0x11c   :  { %v805_v43 = vadd.f32 %v1979_v26, %v804_v41  ;;  %v806_v38 = vpop.f32.mrb[19].mxu1  ;;  %1196 = vtanh.f32 %v802_v32 }
 0x11d   :  { %v1187_v29 = vpop.eup %1186  ;;  %1198 = vtanh.f32 %v677_v42 }
 0x11e   :  { %v1189_v12 = vpop.eup %1188  ;;  %966 = vst [vmem:[%s2240_s3 + $0x30] sm:$0xff] %v1187_v29  ;;  %1200 = vtanh.f32 %v805_v43 }
 0x11f   :  { %v1191_v30 = vpop.eup %1190  ;;  %998 = vst [vmem:[%s2240_s3 + $0x130] sm:$0xff] %v1189_v12 }
 0x120   :  { %v1193_v63 = vpop.eup %1192  ;;  %967 = vst [vmem:[%s2240_s3 + $0x38] sm:$0xff] %v1191_v30  ;;  %v681_v27 = vpop.f32.mrb[20].mxu0 }
 0x121   :  { %v809_v52 = vpop.f32.mrb[20].mxu1  ;;  %999 = vst [vmem:[%s2240_s3 + $0x138] sm:$0xff] %v1193_v63  ;;  %v682_v53 = vadd.f32 %v1979_v26, %v681_v27  ;;  %v683_v23 = vpop.f32.mrb[21].mxu0 }
 0x122   :  { %v810_v22 = vadd.f32 %v1979_v26, %v809_v52  ;;  %v811_v17 = vpop.f32.mrb[21].mxu1  ;;  %v684_v31 = vpop.f32.mrb[22].mxu0 }
 0x123   :  { %v812_v40 = vpop.f32.mrb[22].mxu1  ;;  %1202 = vtanh.f32 %v682_v53  ;;  %v685_v5 = vadd.f32 %v1979_v26, %v684_v31  ;;  %v686_v45 = vpop.f32.mrb[23].mxu0 }
 0x124   :  { %v813_v28 = vadd.f32 %v1979_v26, %v812_v40  ;;  %v814_v24 = vpop.f32.mrb[23].mxu1  ;;  %1204 = vtanh.f32 %v810_v22 }
 0x125   :  { %v1195_v35 = vpop.eup %1194  ;;  %1206 = vtanh.f32 %v685_v5 }
 0x126   :  { %v1197_v36 = vpop.eup %1196  ;;  %968 = vst [vmem:[%s2240_s3 + $0x40] sm:$0xff] %v1195_v35  ;;  %1208 = vtanh.f32 %v813_v28 }
 0x127   :  { %v1199_v37 = vpop.eup %1198  ;;  %1000 = vst [vmem:[%s2240_s3 + $0x140] sm:$0xff] %v1197_v36 }
 0x128   :  { %v1201_v25 = vpop.eup %1200  ;;  %969 = vst [vmem:[%s2240_s3 + $0x48] sm:$0xff] %v1199_v37  ;;  %v689_v44 = vpop.f32.mrb[24].mxu0 }
 0x129   :  { %v817_v46 = vpop.f32.mrb[24].mxu1  ;;  %1001 = vst [vmem:[%s2240_s3 + $0x148] sm:$0xff] %v1201_v25  ;;  %v690_v58 = vadd.f32 %v1979_v26, %v689_v44  ;;  %v691_v34 = vpop.f32.mrb[25].mxu0 }
 0x12a   :  { %v818_v59 = vadd.f32 %v1979_v26, %v817_v46  ;;  %v819_v0 = vpop.f32.mrb[25].mxu1  ;;  %v692_v60 = vpop.f32.mrb[26].mxu0 }
 0x12b   :  { %v820_v1 = vpop.f32.mrb[26].mxu1  ;;  %1210 = vtanh.f32 %v690_v58  ;;  %v693_v47 = vadd.f32 %v1979_v26, %v692_v60  ;;  %v694_v49 = vpop.f32.mrb[27].mxu0 }
 0x12c   :  { %v821_v48 = vadd.f32 %v1979_v26, %v820_v1  ;;  %v822_v54 = vpop.f32.mrb[27].mxu1  ;;  %1212 = vtanh.f32 %v818_v59 }
 0x12d   :  { %v1203_v2 = vpop.eup %1202  ;;  %1214 = vtanh.f32 %v693_v47 }
 0x12e   :  { %v1205_v3 = vpop.eup %1204  ;;  %970 = vst [vmem:[%s2240_s3 + $0x50] sm:$0xff] %v1203_v2  ;;  %1216 = vtanh.f32 %v821_v48 }
 0x12f   :  { %v1207_v4 = vpop.eup %1206  ;;  %1002 = vst [vmem:[%s2240_s3 + $0x150] sm:$0xff] %v1205_v3 }
 0x130   :  { %v1209_v6 = vpop.eup %1208  ;;  %971 = vst [vmem:[%s2240_s3 + $0x58] sm:$0xff] %v1207_v4  ;;  %v697_v7 = vpop.f32.mrb[28].mxu0 }
 0x131   :  { %v825_v10 = vpop.f32.mrb[28].mxu1  ;;  %1003 = vst [vmem:[%s2240_s3 + $0x158] sm:$0xff] %v1209_v6  ;;  %v698_v13 = vadd.f32 %v1979_v26, %v697_v7  ;;  %v699_v15 = vpop.f32.mrb[29].mxu0 }
 0x132   :  { %v826_v14 = vadd.f32 %v1979_v26, %v825_v10  ;;  %v827_v16 = vpop.f32.mrb[29].mxu1  ;;  %v700_v50 = vpop.f32.mrb[30].mxu0 }
 0x133   :  { %v828_v51 = vpop.f32.mrb[30].mxu1  ;;  %1218 = vtanh.f32 %v698_v13  ;;  %v701_v55 = vadd.f32 %v1979_v26, %v700_v50  ;;  %v702_v57 = vpop.f32.mrb[31].mxu0 }
 0x134   :  { %v829_v56 = vadd.f32 %v1979_v26, %v828_v51  ;;  %v830_v61 = vpop.f32.mrb[31].mxu1  ;;  %1220 = vtanh.f32 %v826_v14 }
 0x135   :  { %v1211_v18 = vpop.eup %1210  ;;  %1222 = vtanh.f32 %v701_v55 }
 0x136   :  { %v1213_v19 = vpop.eup %1212  ;;  %972 = vst [vmem:[%s2240_s3 + $0x60] sm:$0xff] %v1211_v18  ;;  %1224 = vtanh.f32 %v829_v56 }
 0x137   :  { %v1215_v39 = vpop.eup %1214  ;;  %1004 = vst [vmem:[%s2240_s3 + $0x160] sm:$0xff] %v1213_v19 }
 0x138   :  { %v1217_v8 = vpop.eup %1216  ;;  %973 = vst [vmem:[%s2240_s3 + $0x68] sm:$0xff] %v1215_v39  ;;  %v705_v21 = vpop.f32.mrb[32].mxu0 }
 0x139   :  { %v833_v20 = vpop.f32.mrb[32].mxu1  ;;  %1005 = vst [vmem:[%s2240_s3 + $0x168] sm:$0xff] %v1217_v8  ;;  %v706_v32 = vadd.f32 %v1979_v26, %v705_v21  ;;  %v707_v9 = vpop.f32.mrb[33].mxu0 }
 0x13a   :  { %v834_v33 = vadd.f32 %v1979_v26, %v833_v20  ;;  %v835_v11 = vpop.f32.mrb[33].mxu1  ;;  %v708_v41 = vpop.f32.mrb[34].mxu0 }
 0x13b   :  { %v836_v42 = vpop.f32.mrb[34].mxu1  ;;  %1226 = vtanh.f32 %v706_v32  ;;  %v709_v43 = vadd.f32 %v1979_v26, %v708_v41  ;;  %v710_v38 = vpop.f32.mrb[35].mxu0 }
 0x13c   :  { %v837_v62 = vadd.f32 %v1979_v26, %v836_v42  ;;  %v838_v29 = vpop.f32.mrb[35].mxu1  ;;  %1228 = vtanh.f32 %v834_v33 }
 0x13d   :  { %v1219_v12 = vpop.eup %1218  ;;  %1230 = vtanh.f32 %v709_v43 }
 0x13e   :  { %v1221_v30 = vpop.eup %1220  ;;  %974 = vst [vmem:[%s2240_s3 + $0x70] sm:$0xff] %v1219_v12  ;;  %1232 = vtanh.f32 %v837_v62 }
 0x13f   :  { %v1223_v63 = vpop.eup %1222  ;;  %1006 = vst [vmem:[%s2240_s3 + $0x170] sm:$0xff] %v1221_v30 }
 0x140   :  { %v1225_v27 = vpop.eup %1224  ;;  %975 = vst [vmem:[%s2240_s3 + $0x78] sm:$0xff] %v1223_v63  ;;  %v713_v52 = vpop.f32.mrb[36].mxu0 }
 0x141   :  { %v841_v53 = vpop.f32.mrb[36].mxu1  ;;  %1007 = vst [vmem:[%s2240_s3 + $0x178] sm:$0xff] %v1225_v27  ;;  %v714_v22 = vadd.f32 %v1979_v26, %v713_v52  ;;  %v715_v17 = vpop.f32.mrb[37].mxu0 }
 0x142   :  { %v842_v23 = vadd.f32 %v1979_v26, %v841_v53  ;;  %v843_v31 = vpop.f32.mrb[37].mxu1  ;;  %v716_v40 = vpop.f32.mrb[38].mxu0 }
 0x143   :  { %v844_v5 = vpop.f32.mrb[38].mxu1  ;;  %1234 = vtanh.f32 %v714_v22  ;;  %v717_v28 = vadd.f32 %v1979_v26, %v716_v40  ;;  %v718_v24 = vpop.f32.mrb[39].mxu0 }
 0x144   :  { %v845_v45 = vadd.f32 %v1979_v26, %v844_v5  ;;  %v846_v35 = vpop.f32.mrb[39].mxu1  ;;  %1236 = vtanh.f32 %v842_v23 }
 0x145   :  { %v1227_v36 = vpop.eup %1226  ;;  %1238 = vtanh.f32 %v717_v28 }
 0x146   :  { %v1229_v37 = vpop.eup %1228  ;;  %976 = vst [vmem:[%s2240_s3 + $0x80] sm:$0xff] %v1227_v36  ;;  %1240 = vtanh.f32 %v845_v45 }
 0x147   :  { %v1231_v25 = vpop.eup %1230  ;;  %1008 = vst [vmem:[%s2240_s3 + $0x180] sm:$0xff] %v1229_v37 }
 0x148   :  { %v1233_v44 = vpop.eup %1232  ;;  %977 = vst [vmem:[%s2240_s3 + $0x88] sm:$0xff] %v1231_v25  ;;  %v721_v46 = vpop.f32.mrb[40].mxu0 }
 0x149   :  { %v849_v58 = vpop.f32.mrb[40].mxu1  ;;  %1009 = vst [vmem:[%s2240_s3 + $0x188] sm:$0xff] %v1233_v44  ;;  %v722_v59 = vadd.f32 %v1979_v26, %v721_v46  ;;  %v723_v0 = vpop.f32.mrb[41].mxu0 }
 0x14a   :  { %v850_v34 = vadd.f32 %v1979_v26, %v849_v58  ;;  %v851_v60 = vpop.f32.mrb[41].mxu1  ;;  %v724_v1 = vpop.f32.mrb[42].mxu0 }
 0x14b   :  { %v852_v47 = vpop.f32.mrb[42].mxu1  ;;  %1242 = vtanh.f32 %v722_v59  ;;  %v725_v48 = vadd.f32 %v1979_v26, %v724_v1  ;;  %v726_v54 = vpop.f32.mrb[43].mxu0 }
 0x14c   :  { %v853_v49 = vadd.f32 %v1979_v26, %v852_v47  ;;  %v854_v2 = vpop.f32.mrb[43].mxu1  ;;  %1244 = vtanh.f32 %v850_v34 }
 0x14d   :  { %v1235_v3 = vpop.eup %1234  ;;  %1246 = vtanh.f32 %v725_v48 }
 0x14e   :  { %v1237_v4 = vpop.eup %1236  ;;  %978 = vst [vmem:[%s2240_s3 + $0x90] sm:$0xff] %v1235_v3  ;;  %1248 = vtanh.f32 %v853_v49 }
 0x14f   :  { %v1239_v6 = vpop.eup %1238  ;;  %1010 = vst [vmem:[%s2240_s3 + $0x190] sm:$0xff] %v1237_v4 }
 0x150   :  { %v1241_v7 = vpop.eup %1240  ;;  %979 = vst [vmem:[%s2240_s3 + $0x98] sm:$0xff] %v1239_v6  ;;  %v729_v10 = vpop.f32.mrb[44].mxu0 }
 0x151   :  { %v857_v13 = vpop.f32.mrb[44].mxu1  ;;  %1011 = vst [vmem:[%s2240_s3 + $0x198] sm:$0xff] %v1241_v7  ;;  %v730_v14 = vadd.f32 %v1979_v26, %v729_v10  ;;  %v731_v16 = vpop.f32.mrb[45].mxu0 }
 0x152   :  { %v858_v15 = vadd.f32 %v1979_v26, %v857_v13  ;;  %v859_v50 = vpop.f32.mrb[45].mxu1  ;;  %v732_v51 = vpop.f32.mrb[46].mxu0 }
 0x153   :  { %v860_v55 = vpop.f32.mrb[46].mxu1  ;;  %1250 = vtanh.f32 %v730_v14  ;;  %v733_v56 = vadd.f32 %v1979_v26, %v732_v51  ;;  %v734_v61 = vpop.f32.mrb[47].mxu0 }
 0x154   :  { %v861_v57 = vadd.f32 %v1979_v26, %v860_v55  ;;  %v862_v18 = vpop.f32.mrb[47].mxu1  ;;  %1252 = vtanh.f32 %v858_v15 }
 0x155   :  { %v1243_v19 = vpop.eup %1242  ;;  %1254 = vtanh.f32 %v733_v56 }
 0x156   :  { %v1245_v39 = vpop.eup %1244  ;;  %980 = vst [vmem:[%s2240_s3 + $0xa0] sm:$0xff] %v1243_v19  ;;  %1256 = vtanh.f32 %v861_v57 }
 0x157   :  { %v1247_v8 = vpop.eup %1246  ;;  %1012 = vst [vmem:[%s2240_s3 + $0x1a0] sm:$0xff] %v1245_v39 }
 0x158   :  { %v1249_v21 = vpop.eup %1248  ;;  %981 = vst [vmem:[%s2240_s3 + $0xa8] sm:$0xff] %v1247_v8  ;;  %v737_v20 = vpop.f32.mrb[48].mxu0 }
 0x159   :  { %v865_v32 = vpop.f32.mrb[48].mxu1  ;;  %1013 = vst [vmem:[%s2240_s3 + $0x1a8] sm:$0xff] %v1249_v21  ;;  %v738_v33 = vadd.f32 %v1979_v26, %v737_v20  ;;  %v739_v11 = vpop.f32.mrb[49].mxu0 }
 0x15a   :  { %v866_v9 = vadd.f32 %v1979_v26, %v865_v32  ;;  %v867_v41 = vpop.f32.mrb[49].mxu1  ;;  %v740_v42 = vpop.f32.mrb[50].mxu0 }
 0x15b   :  { %v868_v43 = vpop.f32.mrb[50].mxu1  ;;  %1258 = vtanh.f32 %v738_v33  ;;  %v741_v62 = vadd.f32 %v1979_v26, %v740_v42  ;;  %v742_v29 = vpop.f32.mrb[51].mxu0 }
 0x15c   :  { %v869_v38 = vadd.f32 %v1979_v26, %v868_v43  ;;  %v870_v12 = vpop.f32.mrb[51].mxu1  ;;  %1260 = vtanh.f32 %v866_v9 }
 0x15d   :  { %v1251_v30 = vpop.eup %1250  ;;  %1262 = vtanh.f32 %v741_v62 }
 0x15e   :  { %v1253_v63 = vpop.eup %1252  ;;  %982 = vst [vmem:[%s2240_s3 + $0xb0] sm:$0xff] %v1251_v30  ;;  %1264 = vtanh.f32 %v869_v38 }
 0x15f   :  { %v1255_v27 = vpop.eup %1254  ;;  %1014 = vst [vmem:[%s2240_s3 + $0x1b0] sm:$0xff] %v1253_v63 }
 0x160   :  { %v1257_v52 = vpop.eup %1256  ;;  %983 = vst [vmem:[%s2240_s3 + $0xb8] sm:$0xff] %v1255_v27  ;;  %v745_v53 = vpop.f32.mrb[52].mxu0 }
 0x161   :  { %v873_v22 = vpop.f32.mrb[52].mxu1  ;;  %1015 = vst [vmem:[%s2240_s3 + $0x1b8] sm:$0xff] %v1257_v52  ;;  %v746_v23 = vadd.f32 %v1979_v26, %v745_v53  ;;  %v747_v31 = vpop.f32.mrb[53].mxu0 }
 0x162   :  { %v874_v17 = vadd.f32 %v1979_v26, %v873_v22  ;;  %v875_v40 = vpop.f32.mrb[53].mxu1  ;;  %v748_v5 = vpop.f32.mrb[54].mxu0 }
 0x163   :  { %v876_v28 = vpop.f32.mrb[54].mxu1  ;;  %1266 = vtanh.f32 %v746_v23  ;;  %v749_v45 = vadd.f32 %v1979_v26, %v748_v5  ;;  %v750_v35 = vpop.f32.mrb[55].mxu0 }
 0x164   :  { %v877_v24 = vadd.f32 %v1979_v26, %v876_v28  ;;  %v878_v36 = vpop.f32.mrb[55].mxu1  ;;  %1268 = vtanh.f32 %v874_v17 }
 0x165   :  { %v1259_v37 = vpop.eup %1258  ;;  %1270 = vtanh.f32 %v749_v45 }
 0x166   :  { %v1261_v25 = vpop.eup %1260  ;;  %984 = vst [vmem:[%s2240_s3 + $0xc0] sm:$0xff] %v1259_v37  ;;  %1272 = vtanh.f32 %v877_v24 }
 0x167   :  { %v1263_v44 = vpop.eup %1262  ;;  %1016 = vst [vmem:[%s2240_s3 + $0x1c0] sm:$0xff] %v1261_v25 }
 0x168   :  { %v1265_v46 = vpop.eup %1264  ;;  %985 = vst [vmem:[%s2240_s3 + $0xc8] sm:$0xff] %v1263_v44  ;;  %v753_v58 = vpop.f32.mrb[56].mxu0 }
 0x169   :  { %v881_v59 = vpop.f32.mrb[56].mxu1  ;;  %1017 = vst [vmem:[%s2240_s3 + $0x1c8] sm:$0xff] %v1265_v46  ;;  %v754_v34 = vadd.f32 %v1979_v26, %v753_v58  ;;  %v755_v60 = vpop.f32.mrb[57].mxu0 }
 0x16a   :  { %v882_v0 = vadd.f32 %v1979_v26, %v881_v59  ;;  %v883_v1 = vpop.f32.mrb[57].mxu1  ;;  %v756_v47 = vpop.f32.mrb[58].mxu0 }
 0x16b   :  { %v884_v48 = vpop.f32.mrb[58].mxu1  ;;  %1274 = vtanh.f32 %v754_v34  ;;  %v757_v49 = vadd.f32 %v1979_v26, %v756_v47  ;;  %v758_v2 = vpop.f32.mrb[59].mxu0 }
 0x16c   :  { %v885_v54 = vadd.f32 %v1979_v26, %v884_v48  ;;  %v886_v3 = vpop.f32.mrb[59].mxu1  ;;  %1276 = vtanh.f32 %v882_v0 }
 0x16d   :  { %v1267_v4 = vpop.eup %1266  ;;  %1278 = vtanh.f32 %v757_v49 }
 0x16e   :  { %v1269_v6 = vpop.eup %1268  ;;  %986 = vst [vmem:[%s2240_s3 + $0xd0] sm:$0xff] %v1267_v4  ;;  %1280 = vtanh.f32 %v885_v54 }
 0x16f   :  { %v1271_v7 = vpop.eup %1270  ;;  %1018 = vst [vmem:[%s2240_s3 + $0x1d0] sm:$0xff] %v1269_v6 }
 0x170   :  { %v1273_v10 = vpop.eup %1272  ;;  %987 = vst [vmem:[%s2240_s3 + $0xd8] sm:$0xff] %v1271_v7  ;;  %v761_v13 = vpop.f32.mrb[60].mxu0 }
 0x171   :  { %v889_v14 = vpop.f32.mrb[60].mxu1  ;;  %1019 = vst [vmem:[%s2240_s3 + $0x1d8] sm:$0xff] %v1273_v10  ;;  %v762_v15 = vadd.f32 %v1979_v26, %v761_v13  ;;  %v763_v50 = vpop.f32.mrb[61].mxu0 }
 0x172   :  { %v890_v16 = vadd.f32 %v1979_v26, %v889_v14  ;;  %v891_v51 = vpop.f32.mrb[61].mxu1  ;;  %v764_v55 = vpop.f32.mrb[62].mxu0 }
 0x173   :  { %v892_v56 = vpop.f32.mrb[62].mxu1  ;;  %1282 = vtanh.f32 %v762_v15  ;;  %v765_v57 = vadd.f32 %v1979_v26, %v764_v55  ;;  %v766_v18 = vpop.f32.mrb[63].mxu0 }
 0x174   :  { %v893_v61 = vadd.f32 %v1979_v26, %v892_v56  ;;  %v894_v19 = vpop.f32.mrb[63].mxu1  ;;  %1284 = vtanh.f32 %v890_v16 }
 0x175   :  { %v1275_v39 = vpop.eup %1274  ;;  %1286 = vtanh.f32 %v765_v57 }
 0x176   :  { %v1277_v8 = vpop.eup %1276  ;;  %988 = vst [vmem:[%s2240_s3 + $0xe0] sm:$0xff] %v1275_v39  ;;  %1288 = vtanh.f32 %v893_v61 }
 0x177   :  { %v1279_v21 = vpop.eup %1278  ;;  %1020 = vst [vmem:[%s2240_s3 + $0x1e0] sm:$0xff] %v1277_v8 }
 0x178   :  { %v1281_v20 = vpop.eup %1280  ;;  %989 = vst [vmem:[%s2240_s3 + $0xe8] sm:$0xff] %v1279_v21 }
 0x179   :  { %1021 = vst [vmem:[%s2240_s3 + $0x1e8] sm:$0xff] %v1281_v20 }
 0x17d   :  { %v1283_v26 = vpop.eup %1282 }
 0x17e   :  { %v1285_v32 = vpop.eup %1284  ;;  %990 = vst [vmem:[%s2240_s3 + $0xf0] sm:$0xff] %v1283_v26 }
 0x17f   :  { %v1287_v33 = vpop.eup %1286  ;;  %1022 = vst [vmem:[%s2240_s3 + $0x1f0] sm:$0xff] %v1285_v32 }
 0x180   :  { %v1289_v9 = vpop.eup %1288  ;;  %991 = vst [vmem:[%s2240_s3 + $0xf8] sm:$0xff] %v1287_v33 }
 0x181   :  { %1023 = vst [vmem:[%s2240_s3 + $0x1f8] sm:$0xff] %v1289_v9 }

</bundles_post_ra>
